<compile_context>
chip_gen: v7x
topology: tpu7x:2x2x1
jax: 0.10.0
libtpu: 0.0.40
codegen_flags: <defaults>
</compile_context>

<pallas_src>
import functools

import jax
import jax.numpy as jnp
from jax.experimental import pallas as pl
from jax.experimental.pallas import tpu as pltpu

_EPS = 1e-5


# ------------------------------ fused kernel -------------------------------- #

def _choice_block_kernel(x_ref, pvec_ref, wbuf_ref, o_ref,
                         pad_ref, col_ref, pool_ref,
                         *, descrs, H, W, ph_max, pw_max, need_pad, need_pool):
    """Whole ChoiceBlock forward for Nb batch images (one grid step).

    x_ref    : (Nb, H, W, Cin) f32 input block.
    pvec_ref : (P, pv)  f32 packed per-channel scales / shifts / biases.
    wbuf_ref : (R, wl)  bf16 packed im2col conv weights.
    pad_ref  : (Nb, H+2*ph_max, W+2*pw_max, c_pad) f32 zero-padded activations.
    col_ref  : (Nb*H*W, k_max) bf16 im2col LHS scratch.
    pool_ref : (Nb, H+2, W+2, c_pool) f32 pooling pad scratch.
    """
    x = x_ref[...]                                   # (Nb, H, W, Cin) f32
    Nb = x.shape[0]
    M = Nb * H * W

    # Zero the pad scratches once per grid step: every conv/pool rewrites its
    # interior (always at the same offset) before reading, and only the halo
    # rings are ever read un-written, so a single clear is sufficient.
    if need_pad:
        pad_ref[...] = jnp.zeros(pad_ref.shape, jnp.float32)
    if need_pool:
        pool_ref[...] = jnp.zeros(pool_ref.shape, jnp.float32)

    def vec(idx, c):
        # One row of the packed f32 parameter table -> (1, c), broadcasts on lanes.
        return pvec_ref[idx:idx + 1, :c]

    def conv_same(h, lay):
        """BN-folded 'same' conv as ONE bf16 MXU matmul (im2col for k > 1)."""
        kh, kw, cin, cout = lay["kh"], lay["kw"], lay["cin"], lay["cout"]
        K = kh * kw * cin
        w = wbuf_ref[lay["w_off"]:lay["w_off"] + K, :cout]       # (K, cout) bf16
        if kh == 1 and kw == 1:
            # Fast path: no padding / im2col, single matmul.
            lhs = h.reshape(M, cin).astype(jnp.bfloat16)
        else:
            ph, pw = (kh - 1) // 2, (kw - 1) // 2
            # Interior written exactly once at a fixed offset; halo stays zero.
            pad_ref[:, ph_max:ph_max + H, pw_max:pw_max + W, :cin] = h
            # Build the im2col LHS: tap t lands at lane offset t*cin.
            for th in range(kh):
                for tw in range(kw):
                    t = th * kw + tw
                    r0 = ph_max - ph + th
                    c0 = pw_max - pw + tw
                    patch = pad_ref[:, r0:r0 + H, c0:c0 + W, :cin]
                    col_ref[:, t * cin:(t + 1) * cin] = (
                        patch.reshape(M, cin).astype(jnp.bfloat16))
            lhs = col_ref[:, :K]
        out = jnp.dot(lhs, w, preferred_element_type=jnp.float32)   # MXU, f32 acc
        out = out + vec(lay["b_idx"], cout)                         # conv bias (+BN fold)
        return out.reshape(Nb, H, W, cout)

    def pool3x3(h, mode, c):
        """3x3 stride-1 'same' pooling, separable (kw pass, then kh pass).

        Zero padding matches PyTorch MaxPool2d because h >= 0 post-ReLU; AvgPool2d
        uses count_include_pad=True -> unconditional /9."""
        red = jnp.maximum if mode == "max" else jnp.add
        pool_ref[:, 1:1 + H, 1:1 + W, :c] = h
        row = red(red(pool_ref[:, 1:1 + H, 0:W, :c],
                      pool_ref[:, 1:1 + H, 1:1 + W, :c]),
                  pool_ref[:, 1:1 + H, 2:2 + W, :c])
        pool_ref[:, 1:1 + H, 1:1 + W, :c] = row
        out = red(red(pool_ref[:, 0:H, 1:1 + W, :c],
                      pool_ref[:, 1:1 + H, 1:1 + W, :c]),
                  pool_ref[:, 2:2 + H, 1:1 + W, :c])
        if mode == "avg":
            out = out * (1.0 / 9.0)
        return out

    branch_sum = None
    for d in descrs:                                  # static (trace-time) branches
        cin0 = d["cin"]
        # First BN of the branch (on x) is explicit; interior BNs were folded away.
        h = jnp.maximum(x * vec(d["s_idx"], cin0) + vec(d["sh_idx"], cin0), 0.0)
        if d["kind"] == "convs":                      # branches 1-4: 3 ConvBlocks
            for li, lay in enumerate(d["layers"]):
                if li > 0:
                    h = jnp.maximum(h, 0.0)
                h = conv_same(h, lay)
        else:                                         # branches 5-7: conv1x1 + BN + ReLU + pool
            lay = d["layers"][0]
            h = conv_same(h, lay)
            h = jnp.maximum(h, 0.0)
            if d["mode"] != "identity":
                h = pool3x3(h, d["mode"], lay["cout"])
        # Cross-branch sum kept as a traced f32 value (a few vregs).
        branch_sum = h if branch_sum is None else branch_sum + h

    o_ref[...] = branch_sum                           # single store per grid step


# --------------------------- pallas_call wrapper ----------------------------- #

def choice_block_forward(packed, x):
    """Matches ChoiceBlock.forward for the ids used at pack time (branch sum)."""
    pvec, wbuf = packed["pvec"], packed["wbuf"]
    descrs, meta = packed["descrs"], packed["meta"]

    N, H, W, Cin = x.shape
    Cout = meta["cout"]

    # 2-way 'parallel' batch split keeps both v7x TensorCores busy; on single-TC
    # v5e/v6e the extra grid step costs ~0.35 us.  Each step folds Nb = N // G
    # images into the matmul M dimension.
    G = 2 if (N >= 2 and N % 2 == 0) else 1
    Nb = N // G

    ph_max, pw_max = meta["ph_max"], meta["pw_max"]
    kernel = functools.partial(
        _choice_block_kernel, descrs=descrs, H=H, W=W,
        ph_max=ph_max, pw_max=pw_max,
        need_pad=meta["need_pad"], need_pool=meta["need_pool"])

    return pl.pallas_call(
        kernel,
        out_shape=jax.ShapeDtypeStruct((N, H, W, Cout), jnp.float32),
        grid=(G,),
        in_specs=[
            pl.BlockSpec((Nb, H, W, Cin), lambda n: (n, 0, 0, 0)),
            pl.BlockSpec(pvec.shape, lambda n: (0, 0)),   # whole table, one DMA
            pl.BlockSpec(wbuf.shape, lambda n: (0, 0)),   # whole table, one DMA
        ],
        out_specs=pl.BlockSpec((Nb, H, W, Cout), lambda n: (n, 0, 0, 0)),
        scratch_shapes=[
            pltpu.VMEM((Nb, H + 2 * ph_max, W + 2 * pw_max, meta["c_pad"]),
                       jnp.float32),                                  # padded acts
            pltpu.VMEM((Nb * H * W, meta["k_max"]), jnp.bfloat16),    # im2col LHS
            pltpu.VMEM((Nb, H + 2, W + 2, meta["c_pool"]), jnp.float32),  # pool pad
        ],
        compiler_params=pltpu.CompilerParams(
            dimension_semantics=("parallel",)),
    )(x.astype(jnp.float32), pvec, wbuf)


# --------------------------- host-side packing -------------------------------- #

def pack_choice_block(params, ids):
    """Select branches per `ids`, fold interior BatchNorms into the preceding conv,
    and pack every small parameter into two flat tables (one f32 vector table,
    one bf16 im2col weight table).  Runs ONCE at init time, outside jit."""
    selected = [int(ids[0])] + [int(b) for b in ids[1:] if int(b) != 0]
    for b in selected:
        if not 1 <= b <= 7:
            raise ValueError(f"Wrong ID: {b}")

    cout_block = int(params["out_channels"])

    # ---- per-branch layer lists with interior BNs folded (all f32) ----
    branch_infos = []
    for bid in selected:
        p = params[f"l2_{bid}"]
        if bid <= 4:
            cbs = p
            layers = []
            for j, cb in enumerate(cbs):
                w, b = cb["w"], cb["b"]
                if j + 1 < len(cbs):                  # fold next ConvBlock's BN here
                    s_n, sh_n = cbs[j + 1]["bn_scale"], cbs[j + 1]["bn_shift"]
                    w = w * s_n.reshape(1, 1, 1, -1)
                    b = b * s_n + sh_n
                layers.append((cb["kshape"], w, b))
            branch_infos.append(dict(kind="convs", mode=None,
                                     s0=cbs[0]["bn_scale"], sh0=cbs[0]["bn_shift"],
                                     layers=layers))
        else:
            cb, bn = p["conv"], p["bn"]
            w = cb["w"] * bn["scale"].reshape(1, 1, 1, -1)   # fold trailing BN
            b = cb["b"] * bn["scale"] + bn["shift"]
            branch_infos.append(dict(kind="pool", mode=p["mode"],
                                     s0=cb["bn_scale"], sh0=cb["bn_shift"],
                                     layers=[(cb["kshape"], w, b)]))

    # ---- lane widths of the two packed tables ----
    pv, wl = 8, 8
    for info in branch_infos:
        pv = max(pv, int(info["s0"].shape[0]))
        for (ks_, _, b) in info["layers"]:
            pv = max(pv, int(b.shape[0]))
            wl = max(wl, int(ks_[3]))

    def pad_row(v):
        v = jnp.asarray(v, jnp.float32).reshape(-1)
        return jnp.pad(v, (0, pv - v.shape[0]))

    # ---- build tables + static kernel descriptors ----
    pvec_rows, w_blocks, descrs = [], [], []
    woff = 0
    ph_max = pw_max = 0
    c_pad, k_max = 8, 8
    need_pool = False
    for info in branch_infos:
        s_idx = len(pvec_rows); pvec_rows.append(pad_row(info["s0"]))
        sh_idx = len(pvec_rows); pvec_rows.append(pad_row(info["sh0"]))
        lays = []
        for (kshape, w, b) in info["layers"]:
            kh, kw, cin, cout = kshape
            assert kh % 2 == 1 and kw % 2 == 1, "only odd 'same' kernels supported"
            assert cout <= wl and cin <= pv
            K = kh * kw * cin
            wf = w.reshape(K, cout)                       # im2col row order
            wf = jnp.pad(wf, ((0, (-K) % 8), (0, wl - cout)))   # 8-aligned offsets
            b_idx = len(pvec_rows); pvec_rows.append(pad_row(b))
            lays.append(dict(kh=kh, kw=kw, cin=cin, cout=cout,
                             w_off=woff, b_idx=b_idx))
            w_blocks.append(wf)
            woff += int(wf.shape[0])
            if kh > 1 or kw > 1:
                ph_max = max(ph_max, (kh - 1) // 2)
                pw_max = max(pw_max, (kw - 1) // 2)
                c_pad = max(c_pad, cin)
                k_max = max(k_max, K)
        if info["mode"] in ("max", "avg"):
            need_pool = True
        descrs.append(dict(kind=info["kind"], mode=info["mode"],
                           cin=int(info["s0"].shape[0]),
                           s_idx=s_idx, sh_idx=sh_idx, layers=tuple(lays)))

    pvec = jnp.stack(pvec_rows).astype(jnp.float32)                 # (P, pv)
    wbuf = jnp.concatenate(w_blocks, axis=0).astype(jnp.bfloat16)   # (R, wl)

    meta = dict(cout=cout_block, ph_max=ph_max, pw_max=pw_max,
                c_pad=c_pad, k_max=k_max, c_pool=max(8, cout_block),
                need_pad=(ph_max > 0 or pw_max > 0), need_pool=need_pool)
    return dict(pvec=pvec, wbuf=wbuf, descrs=tuple(descrs), meta=meta)


# ------------------------------ parameter init ------------------------------- #

def _init_convblock(key, cin, cout, kh, kw):
    ks = jax.random.split(key, 6)
    gamma = jax.random.uniform(ks[0], (cin,), minval=0.5, maxval=1.5)
    beta = 0.1 * jax.random.normal(ks[1], (cin,))
    r_mean = 0.1 * jax.random.normal(ks[2], (cin,))
    r_var = jax.random.uniform(ks[3], (cin,), minval=0.5, maxval=1.5)
    scale = gamma / jnp.sqrt(r_var + _EPS)          # folded inference BN
    shift = beta - r_mean * scale
    w = jax.random.normal(ks[4], (kh, kw, cin, cout)) / jnp.sqrt(cin * kh * kw)
    b = 0.05 * jax.random.normal(ks[5], (cout,))
    return {"bn_scale": scale.astype(jnp.float32),
            "bn_shift": shift.astype(jnp.float32),
            "w": w.astype(jnp.float32),
            "b": b.astype(jnp.float32),
            "kshape": (kh, kw, cin, cout)}


def _init_bn(key, c):
    ks = jax.random.split(key, 4)
    gamma = jax.random.uniform(ks[0], (c,), minval=0.5, maxval=1.5)
    beta = 0.1 * jax.random.normal(ks[1], (c,))
    r_mean = 0.1 * jax.random.normal(ks[2], (c,))
    r_var = jax.random.uniform(ks[3], (c,), minval=0.5, maxval=1.5)
    scale = gamma / jnp.sqrt(r_var + _EPS)
    shift = beta - r_mean * scale
    return {"scale": scale.astype(jnp.float32), "shift": shift.astype(jnp.float32)}


def init_choice_block(key, cin, cout):
    ks = jax.random.split(key, 18)
    p = {"out_channels": cout}
    p["l2_1"] = [_init_convblock(ks[0], cin, 8, 1, 1),
                 _init_convblock(ks[1], 8, 16, 3, 3),
                 _init_convblock(ks[2], 16, cout, 3, 3)]
    p["l2_2"] = [_init_convblock(ks[3], cin, 8, 1, 1),
                 _init_convblock(ks[4], 8, 16, 5, 5),
                 _init_convblock(ks[5], 16, cout, 5, 5)]
    p["l2_3"] = [_init_convblock(ks[6], cin, 8, 1, 1),
                 _init_convblock(ks[7], 8, 16, 7, 7),
                 _init_convblock(ks[8], 16, cout, 7, 7)]
    p["l2_4"] = [_init_convblock(ks[9], cin, 8, 1, 1),
                 _init_convblock(ks[10], 8, 16, 1, 7),
                 _init_convblock(ks[11], 16, cout, 7, 1)]
    p["l2_5"] = {"conv": _init_convblock(ks[12], cin, cout, 1, 1),
                 "bn": _init_bn(ks[13], cout), "mode": "max"}
    p["l2_6"] = {"conv": _init_convblock(ks[14], cin, cout, 1, 1),
                 "bn": _init_bn(ks[15], cout), "mode": "avg"}
    p["l2_7"] = {"conv": _init_convblock(ks[16], cin, cout, 1, 1),
                 "bn": _init_bn(ks[17], cout), "mode": "identity"}
    return p


# ----------------------------------- main ------------------------------------ #

if __name__ == "__main__":
    key = jax.random.PRNGKey(0)
    k_param, k_x = jax.random.split(key)

    N, Cin, H, W = 2, 4, 16, 16
    Cout = 8

    params = init_choice_block(k_param, Cin, Cout)

    # branch 4 (1x1 / 1x7 / 7x1 convs) + branch 5 (maxpool) + skip + branch 7 (identity)
    ids = (4, 5, 0, 7)

    # Host-side: fold BNs, flatten weights to im2col order, pack into 2 tables. Once.
    packed = pack_choice_block(params, ids)

    x_nchw = jax.random.normal(k_x, (N, Cin, H, W), dtype=jnp.float32)  # PyTorch layout

    @jax.jit
    def fwd(xb):
        x = jnp.transpose(xb, (0, 2, 3, 1))        # NCHW -> NHWC
        y = choice_block_forward(packed, x)        # single fused Pallas kernel
        return jnp.transpose(y, (0, 3, 1, 2))      # NHWC -> NCHW

    out = jax.block_until_ready(fwd(x_nchw))

    assert out.shape == (N, Cout, H, W), out.shape
    assert bool(jnp.all(jnp.isfinite(out)))
    print("KERNEL_OK")
</pallas_src>

<mosaic_0001>
module attributes {stable_mosaic.version = 11 : i64} {
  func.func @_choice_block_kernel(%arg0: i32, %arg1: memref<1x16x16x4xf32, #tpu.memory_space<vmem>>, %arg2: memref<11x16xf32, #tpu.memory_space<vmem>>, %arg3: memref<192x16xbf16, #tpu.memory_space<vmem>>, %arg4: memref<1x16x16x8xf32, #tpu.memory_space<vmem>>, %arg5: memref<1x22x22x16xf32, #tpu.memory_space<vmem>>, %arg6: memref<256x112xbf16, #tpu.memory_space<vmem>>, %arg7: memref<1x18x18x8xf32, #tpu.memory_space<vmem>>) attributes {dimension_semantics = [#tpu.dimension_semantics<parallel>], iteration_bounds = array<i64: 2>, scalar_prefetch = 0 : i64, scratch_operands = 3 : i64, tpu.core_type = #tpu.core_type<tc>, window_params = [{transform_indices = @transform_0, window_bounds = array<i64: 1, 16, 16, 4>}, {pipeline_mode = #tpu.pipeline_mode<synchronous>, transform_indices = @transform_1, window_bounds = array<i64: 11, 16>}, {pipeline_mode = #tpu.pipeline_mode<synchronous>, transform_indices = @transform_2, window_bounds = array<i64: 192, 16>}, {transform_indices = @transform_3, window_bounds = array<i64: 1, 16, 16, 8>}]} {
    %c0 = arith.constant 0 : index
    %c0_0 = arith.constant 0 : index
    %c0_1 = arith.constant 0 : index
    %c0_2 = arith.constant 0 : index
    %0 = vector.load %arg1[%c0, %c0_0, %c0_1, %c0_2] : memref<1x16x16x4xf32, #tpu.memory_space<vmem>>, vector<1x16x16x4xf32>
    %cst = arith.constant 0.000000e+00 : f32
    %1 = vector.broadcast %cst : f32 to vector<1x22x22x16xf32>
    %c0_3 = arith.constant 0 : index
    %c0_4 = arith.constant 0 : index
    %c0_5 = arith.constant 0 : index
    %c0_6 = arith.constant 0 : index
    %2 = vector.load %arg5[%c0_3, %c0_4, %c0_5, %c0_6] : memref<1x22x22x16xf32, #tpu.memory_space<vmem>>, vector<1x22x22x16xf32>
    tpu.vector_store %arg5[%c0_3, %c0_4, %c0_5, %c0_6], %1 {strides = array<i32>} : memref<1x22x22x16xf32, #tpu.memory_space<vmem>>, vector<1x22x22x16xf32>,
    %cst_7 = arith.constant 0.000000e+00 : f32
    %3 = vector.broadcast %cst_7 : f32 to vector<1x18x18x8xf32>
    %c0_8 = arith.constant 0 : index
    %c0_9 = arith.constant 0 : index
    %c0_10 = arith.constant 0 : index
    %c0_11 = arith.constant 0 : index
    %4 = vector.load %arg7[%c0_8, %c0_9, %c0_10, %c0_11] : memref<1x18x18x8xf32, #tpu.memory_space<vmem>>, vector<1x18x18x8xf32>
    tpu.vector_store %arg7[%c0_8, %c0_9, %c0_10, %c0_11], %3 {strides = array<i32>} : memref<1x18x18x8xf32, #tpu.memory_space<vmem>>, vector<1x18x18x8xf32>,
    %c0_12 = arith.constant 0 : index
    %c0_13 = arith.constant 0 : index
    %5 = vector.load %arg2[%c0_12, %c0_13] : memref<11x16xf32, #tpu.memory_space<vmem>>, vector<1x4xf32>
    %6 = vector.shape_cast %5 : vector<1x4xf32> to vector<1x1x1x4xf32>
    %7 = vector.broadcast %6 : vector<1x1x1x4xf32> to vector<1x16x16x4xf32>
    %8 = arith.mulf %0, %7 : vector<1x16x16x4xf32>
    %c1 = arith.constant 1 : index
    %c0_14 = arith.constant 0 : index
    %9 = vector.load %arg2[%c1, %c0_14] : memref<11x16xf32, #tpu.memory_space<vmem>>, vector<1x4xf32>
    %10 = vector.shape_cast %9 : vector<1x4xf32> to vector<1x1x1x4xf32>
    %11 = vector.broadcast %10 : vector<1x1x1x4xf32> to vector<1x16x16x4xf32>
    %12 = arith.addf %8, %11 : vector<1x16x16x4xf32>
    %cst_15 = arith.constant 0.000000e+00 : f32
    %13 = vector.broadcast %cst_15 : f32 to vector<1x16x16x4xf32>
    %14 = arith.maximumf %12, %13 : vector<1x16x16x4xf32>
    %c0_16 = arith.constant 0 : index
    %c0_17 = arith.constant 0 : index
    %15 = vector.load %arg3[%c0_16, %c0_17] : memref<192x16xbf16, #tpu.memory_space<vmem>>, vector<4x8xbf16>
    %16 = vector.shape_cast %14 : vector<1x16x16x4xf32> to vector<256x4xf32>
    %17 = arith.truncf %16 : vector<256x4xf32> to vector<256x4xbf16>
    %cst_18 = arith.constant dense<0.000000e+00> : vector<256x8xf32>
    %18 = tpu.matmul %17, %15, %cst_18 {dimension_numbers = #tpu.dot_dimension_numbers<[1], [0], [0], [1], [0, 0, 1, 1], [], []>} : vector<256x4xbf16>, vector<4x8xbf16>, vector<256x8xf32> -> vector<256x8xf32>
    %c2 = arith.constant 2 : index
    %c0_19 = arith.constant 0 : index
    %19 = vector.load %arg2[%c2, %c0_19] : memref<11x16xf32, #tpu.memory_space<vmem>>, vector<1x8xf32>
    %20 = vector.broadcast %19 : vector<1x8xf32> to vector<256x8xf32>
    %21 = arith.addf %18, %20 : vector<256x8xf32>
    %22 = vector.shape_cast %21 : vector<256x8xf32> to vector<1x16x16x8xf32>
    %cst_20 = arith.constant 0.000000e+00 : f32
    %23 = vector.broadcast %cst_20 : f32 to vector<1x16x16x8xf32>
    %24 = arith.maximumf %22, %23 : vector<1x16x16x8xf32>
    %c8 = arith.constant 8 : index
    %c0_21 = arith.constant 0 : index
    %25 = vector.load %arg3[%c8, %c0_21] : memref<192x16xbf16, #tpu.memory_space<vmem>>, vector<56x16xbf16>
    %c0_22 = arith.constant 0 : index
    %c3 = arith.constant 3 : index
    %c3_23 = arith.constant 3 : index
    %c0_24 = arith.constant 0 : index
    %26 = vector.load %arg5[%c0_22, %c3, %c3_23, %c0_24] : memref<1x22x22x16xf32, #tpu.memory_space<vmem>>, vector<1x16x16x8xf32>
    tpu.vector_store %arg5[%c0_22, %c3, %c3_23, %c0_24], %24 {strides = array<i32>} : memref<1x22x22x16xf32, #tpu.memory_space<vmem>>, vector<1x16x16x8xf32>,
    %c0_25 = arith.constant 0 : index
    %c3_26 = arith.constant 3 : index
    %c0_27 = arith.constant 0 : index
    %c0_28 = arith.constant 0 : index
    %27 = vector.load %arg5[%c0_25, %c3_26, %c0_27, %c0_28] : memref<1x22x22x16xf32, #tpu.memory_space<vmem>>, vector<1x16x16x8xf32>
    %28 = vector.shape_cast %27 : vector<1x16x16x8xf32> to vector<256x8xf32>
    %29 = arith.truncf %28 : vector<256x8xf32> to vector<256x8xbf16>
    %c0_29 = arith.constant 0 : index
    %c0_30 = arith.constant 0 : index
    %30 = vector.load %arg6[%c0_29, %c0_30] : memref<256x112xbf16, #tpu.memory_space<vmem>>, vector<256x8xbf16>
    tpu.vector_store %arg6[%c0_29, %c0_30], %29 {strides = array<i32>} : memref<256x112xbf16, #tpu.memory_space<vmem>>, vector<256x8xbf16>,
    %c0_31 = arith.constant 0 : index
    %c3_32 = arith.constant 3 : index
    %c1_33 = arith.constant 1 : index
    %c0_34 = arith.constant 0 : index
    %31 = vector.load %arg5[%c0_31, %c3_32, %c1_33, %c0_34] : memref<1x22x22x16xf32, #tpu.memory_space<vmem>>, vector<1x16x16x8xf32>
    %32 = vector.shape_cast %31 : vector<1x16x16x8xf32> to vector<256x8xf32>
    %33 = arith.truncf %32 : vector<256x8xf32> to vector<256x8xbf16>
    %c0_35 = arith.constant 0 : index
    %c8_36 = arith.constant 8 : index
    %34 = vector.load %arg6[%c0_35, %c8_36] : memref<256x112xbf16, #tpu.memory_space<vmem>>, vector<256x8xbf16>
    tpu.vector_store %arg6[%c0_35, %c8_36], %33 {strides = array<i32>} : memref<256x112xbf16, #tpu.memory_space<vmem>>, vector<256x8xbf16>,
    %c0_37 = arith.constant 0 : index
    %c3_38 = arith.constant 3 : index
    %c2_39 = arith.constant 2 : index
    %c0_40 = arith.constant 0 : index
    %35 = vector.load %arg5[%c0_37, %c3_38, %c2_39, %c0_40] : memref<1x22x22x16xf32, #tpu.memory_space<vmem>>, vector<1x16x16x8xf32>
    %36 = vector.shape_cast %35 : vector<1x16x16x8xf32> to vector<256x8xf32>
    %37 = arith.truncf %36 : vector<256x8xf32> to vector<256x8xbf16>
    %c0_41 = arith.constant 0 : index
    %c16 = arith.constant 16 : index
    %38 = vector.load %arg6[%c0_41, %c16] : memref<256x112xbf16, #tpu.memory_space<vmem>>, vector<256x8xbf16>
    tpu.vector_store %arg6[%c0_41, %c16], %37 {strides = array<i32>} : memref<256x112xbf16, #tpu.memory_space<vmem>>, vector<256x8xbf16>,
    %c0_42 = arith.constant 0 : index
    %c3_43 = arith.constant 3 : index
    %c3_44 = arith.constant 3 : index
    %c0_45 = arith.constant 0 : index
    %39 = vector.load %arg5[%c0_42, %c3_43, %c3_44, %c0_45] : memref<1x22x22x16xf32, #tpu.memory_space<vmem>>, vector<1x16x16x8xf32>
    %40 = vector.shape_cast %39 : vector<1x16x16x8xf32> to vector<256x8xf32>
    %41 = arith.truncf %40 : vector<256x8xf32> to vector<256x8xbf16>
    %c0_46 = arith.constant 0 : index
    %c24 = arith.constant 24 : index
    %42 = vector.load %arg6[%c0_46, %c24] : memref<256x112xbf16, #tpu.memory_space<vmem>>, vector<256x8xbf16>
    tpu.vector_store %arg6[%c0_46, %c24], %41 {strides = array<i32>} : memref<256x112xbf16, #tpu.memory_space<vmem>>, vector<256x8xbf16>,
    %c0_47 = arith.constant 0 : index
    %c3_48 = arith.constant 3 : index
    %c4 = arith.constant 4 : index
    %c0_49 = arith.constant 0 : index
    %43 = vector.load %arg5[%c0_47, %c3_48, %c4, %c0_49] : memref<1x22x22x16xf32, #tpu.memory_space<vmem>>, vector<1x16x16x8xf32>
    %44 = vector.shape_cast %43 : vector<1x16x16x8xf32> to vector<256x8xf32>
    %45 = arith.truncf %44 : vector<256x8xf32> to vector<256x8xbf16>
    %c0_50 = arith.constant 0 : index
    %c32 = arith.constant 32 : index
    %46 = vector.load %arg6[%c0_50, %c32] : memref<256x112xbf16, #tpu.memory_space<vmem>>, vector<256x8xbf16>
    tpu.vector_store %arg6[%c0_50, %c32], %45 {strides = array<i32>} : memref<256x112xbf16, #tpu.memory_space<vmem>>, vector<256x8xbf16>,
    %c0_51 = arith.constant 0 : index
    %c3_52 = arith.constant 3 : index
    %c5 = arith.constant 5 : index
    %c0_53 = arith.constant 0 : index
    %47 = vector.load %arg5[%c0_51, %c3_52, %c5, %c0_53] : memref<1x22x22x16xf32, #tpu.memory_space<vmem>>, vector<1x16x16x8xf32>
    %48 = vector.shape_cast %47 : vector<1x16x16x8xf32> to vector<256x8xf32>
    %49 = arith.truncf %48 : vector<256x8xf32> to vector<256x8xbf16>
    %c0_54 = arith.constant 0 : index
    %c40 = arith.constant 40 : index
    %50 = vector.load %arg6[%c0_54, %c40] : memref<256x112xbf16, #tpu.memory_space<vmem>>, vector<256x8xbf16>
    tpu.vector_store %arg6[%c0_54, %c40], %49 {strides = array<i32>} : memref<256x112xbf16, #tpu.memory_space<vmem>>, vector<256x8xbf16>,
    %c0_55 = arith.constant 0 : index
    %c3_56 = arith.constant 3 : index
    %c6 = arith.constant 6 : index
    %c0_57 = arith.constant 0 : index
    %51 = vector.load %arg5[%c0_55, %c3_56, %c6, %c0_57] : memref<1x22x22x16xf32, #tpu.memory_space<vmem>>, vector<1x16x16x8xf32>
    %52 = vector.shape_cast %51 : vector<1x16x16x8xf32> to vector<256x8xf32>
    %53 = arith.truncf %52 : vector<256x8xf32> to vector<256x8xbf16>
    %c0_58 = arith.constant 0 : index
    %c48 = arith.constant 48 : index
    %54 = vector.load %arg6[%c0_58, %c48] : memref<256x112xbf16, #tpu.memory_space<vmem>>, vector<256x8xbf16>
    tpu.vector_store %arg6[%c0_58, %c48], %53 {strides = array<i32>} : memref<256x112xbf16, #tpu.memory_space<vmem>>, vector<256x8xbf16>,
    %c0_59 = arith.constant 0 : index
    %c0_60 = arith.constant 0 : index
    %55 = vector.load %arg6[%c0_59, %c0_60] : memref<256x112xbf16, #tpu.memory_space<vmem>>, vector<256x56xbf16>
    %cst_61 = arith.constant dense<0.000000e+00> : vector<256x16xf32>
    %56 = tpu.matmul %55, %25, %cst_61 {dimension_numbers = #tpu.dot_dimension_numbers<[1], [0], [0], [1], [0, 0, 1, 1], [], []>} : vector<256x56xbf16>, vector<56x16xbf16>, vector<256x16xf32> -> vector<256x16xf32>
    %c3_62 = arith.constant 3 : index
    %c0_63 = arith.constant 0 : index
    %57 = vector.load %arg2[%c3_62, %c0_63] : memref<11x16xf32, #tpu.memory_space<vmem>>, vector<1x16xf32>
    %58 = vector.broadcast %57 : vector<1x16xf32> to vector<256x16xf32>
    %59 = arith.addf %56, %58 : vector<256x16xf32>
    %60 = vector.shape_cast %59 : vector<256x16xf32> to vector<1x16x16x16xf32>
    %cst_64 = arith.constant 0.000000e+00 : f32
    %61 = vector.broadcast %cst_64 : f32 to vector<1x16x16x16xf32>
    %62 = arith.maximumf %60, %61 : vector<1x16x16x16xf32>
    %c64 = arith.constant 64 : index
    %c0_65 = arith.constant 0 : index
    %63 = vector.load %arg3[%c64, %c0_65] : memref<192x16xbf16, #tpu.memory_space<vmem>>, vector<112x8xbf16>
    %c0_66 = arith.constant 0 : index
    %c3_67 = arith.constant 3 : index
    %c3_68 = arith.constant 3 : index
    %c0_69 = arith.constant 0 : index
    %64 = vector.load %arg5[%c0_66, %c3_67, %c3_68, %c0_69] : memref<1x22x22x16xf32, #tpu.memory_space<vmem>>, vector<1x16x16x16xf32>
    tpu.vector_store %arg5[%c0_66, %c3_67, %c3_68, %c0_69], %62 {strides = array<i32>} : memref<1x22x22x16xf32, #tpu.memory_space<vmem>>, vector<1x16x16x16xf32>,
    %c0_70 = arith.constant 0 : index
    %c0_71 = arith.constant 0 : index
    %c3_72 = arith.constant 3 : index
    %c0_73 = arith.constant 0 : index
    %65 = vector.load %arg5[%c0_70, %c0_71, %c3_72, %c0_73] : memref<1x22x22x16xf32, #tpu.memory_space<vmem>>, vector<1x16x16x16xf32>
    %66 = vector.shape_cast %65 : vector<1x16x16x16xf32> to vector<256x16xf32>
    %67 = arith.truncf %66 : vector<256x16xf32> to vector<256x16xbf16>
    %c0_74 = arith.constant 0 : index
    %c0_75 = arith.constant 0 : index
    %68 = vector.load %arg6[%c0_74, %c0_75] : memref<256x112xbf16, #tpu.memory_space<vmem>>, vector<256x16xbf16>
    tpu.vector_store %arg6[%c0_74, %c0_75], %67 {strides = array<i32>} : memref<256x112xbf16, #tpu.memory_space<vmem>>, vector<256x16xbf16>,
    %c0_76 = arith.constant 0 : index
    %c1_77 = arith.constant 1 : index
    %c3_78 = arith.constant 3 : index
    %c0_79 = arith.constant 0 : index
    %69 = vector.load %arg5[%c0_76, %c1_77, %c3_78, %c0_79] : memref<1x22x22x16xf32, #tpu.memory_space<vmem>>, vector<1x16x16x16xf32>
    %70 = vector.shape_cast %69 : vector<1x16x16x16xf32> to vector<256x16xf32>
    %71 = arith.truncf %70 : vector<256x16xf32> to vector<256x16xbf16>
    %c0_80 = arith.constant 0 : index
    %c16_81 = arith.constant 16 : index
    %72 = vector.load %arg6[%c0_80, %c16_81] : memref<256x112xbf16, #tpu.memory_space<vmem>>, vector<256x16xbf16>
    tpu.vector_store %arg6[%c0_80, %c16_81], %71 {strides = array<i32>} : memref<256x112xbf16, #tpu.memory_space<vmem>>, vector<256x16xbf16>,
    %c0_82 = arith.constant 0 : index
    %c2_83 = arith.constant 2 : index
    %c3_84 = arith.constant 3 : index
    %c0_85 = arith.constant 0 : index
    %73 = vector.load %arg5[%c0_82, %c2_83, %c3_84, %c0_85] : memref<1x22x22x16xf32, #tpu.memory_space<vmem>>, vector<1x16x16x16xf32>
    %74 = vector.shape_cast %73 : vector<1x16x16x16xf32> to vector<256x16xf32>
    %75 = arith.truncf %74 : vector<256x16xf32> to vector<256x16xbf16>
    %c0_86 = arith.constant 0 : index
    %c32_87 = arith.constant 32 : index
    %76 = vector.load %arg6[%c0_86, %c32_87] : memref<256x112xbf16, #tpu.memory_space<vmem>>, vector<256x16xbf16>
    tpu.vector_store %arg6[%c0_86, %c32_87], %75 {strides = array<i32>} : memref<256x112xbf16, #tpu.memory_space<vmem>>, vector<256x16xbf16>,
    %c0_88 = arith.constant 0 : index
    %c3_89 = arith.constant 3 : index
    %c3_90 = arith.constant 3 : index
    %c0_91 = arith.constant 0 : index
    %77 = vector.load %arg5[%c0_88, %c3_89, %c3_90, %c0_91] : memref<1x22x22x16xf32, #tpu.memory_space<vmem>>, vector<1x16x16x16xf32>
    %78 = vector.shape_cast %77 : vector<1x16x16x16xf32> to vector<256x16xf32>
    %79 = arith.truncf %78 : vector<256x16xf32> to vector<256x16xbf16>
    %c0_92 = arith.constant 0 : index
    %c48_93 = arith.constant 48 : index
    %80 = vector.load %arg6[%c0_92, %c48_93] : memref<256x112xbf16, #tpu.memory_space<vmem>>, vector<256x16xbf16>
    tpu.vector_store %arg6[%c0_92, %c48_93], %79 {strides = array<i32>} : memref<256x112xbf16, #tpu.memory_space<vmem>>, vector<256x16xbf16>,
    %c0_94 = arith.constant 0 : index
    %c4_95 = arith.constant 4 : index
    %c3_96 = arith.constant 3 : index
    %c0_97 = arith.constant 0 : index
    %81 = vector.load %arg5[%c0_94, %c4_95, %c3_96, %c0_97] : memref<1x22x22x16xf32, #tpu.memory_space<vmem>>, vector<1x16x16x16xf32>
    %82 = vector.shape_cast %81 : vector<1x16x16x16xf32> to vector<256x16xf32>
    %83 = arith.truncf %82 : vector<256x16xf32> to vector<256x16xbf16>
    %c0_98 = arith.constant 0 : index
    %c64_99 = arith.constant 64 : index
    %84 = vector.load %arg6[%c0_98, %c64_99] : memref<256x112xbf16, #tpu.memory_space<vmem>>, vector<256x16xbf16>
    tpu.vector_store %arg6[%c0_98, %c64_99], %83 {strides = array<i32>} : memref<256x112xbf16, #tpu.memory_space<vmem>>, vector<256x16xbf16>,
    %c0_100 = arith.constant 0 : index
    %c5_101 = arith.constant 5 : index
    %c3_102 = arith.constant 3 : index
    %c0_103 = arith.constant 0 : index
    %85 = vector.load %arg5[%c0_100, %c5_101, %c3_102, %c0_103] : memref<1x22x22x16xf32, #tpu.memory_space<vmem>>, vector<1x16x16x16xf32>
    %86 = vector.shape_cast %85 : vector<1x16x16x16xf32> to vector<256x16xf32>
    %87 = arith.truncf %86 : vector<256x16xf32> to vector<256x16xbf16>
    %c0_104 = arith.constant 0 : index
    %c80 = arith.constant 80 : index
    %88 = vector.load %arg6[%c0_104, %c80] : memref<256x112xbf16, #tpu.memory_space<vmem>>, vector<256x16xbf16>
    tpu.vector_store %arg6[%c0_104, %c80], %87 {strides = array<i32>} : memref<256x112xbf16, #tpu.memory_space<vmem>>, vector<256x16xbf16>,
    %c0_105 = arith.constant 0 : index
    %c6_106 = arith.constant 6 : index
    %c3_107 = arith.constant 3 : index
    %c0_108 = arith.constant 0 : index
    %89 = vector.load %arg5[%c0_105, %c6_106, %c3_107, %c0_108] : memref<1x22x22x16xf32, #tpu.memory_space<vmem>>, vector<1x16x16x16xf32>
    %90 = vector.shape_cast %89 : vector<1x16x16x16xf32> to vector<256x16xf32>
    %91 = arith.truncf %90 : vector<256x16xf32> to vector<256x16xbf16>
    %c0_109 = arith.constant 0 : index
    %c96 = arith.constant 96 : index
    %92 = vector.load %arg6[%c0_109, %c96] : memref<256x112xbf16, #tpu.memory_space<vmem>>, vector<256x16xbf16>
    tpu.vector_store %arg6[%c0_109, %c96], %91 {strides = array<i32>} : memref<256x112xbf16, #tpu.memory_space<vmem>>, vector<256x16xbf16>,
    %c0_110 = arith.constant 0 : index
    %c0_111 = arith.constant 0 : index
    %93 = vector.load %arg6[%c0_110, %c0_111] : memref<256x112xbf16, #tpu.memory_space<vmem>>, vector<256x112xbf16>
    %cst_112 = arith.constant dense<0.000000e+00> : vector<256x8xf32>
    %94 = tpu.matmul %93, %63, %cst_112 {dimension_numbers = #tpu.dot_dimension_numbers<[1], [0], [0], [1], [0, 0, 1, 1], [], []>} : vector<256x112xbf16>, vector<112x8xbf16>, vector<256x8xf32> -> vector<256x8xf32>
    %c4_113 = arith.constant 4 : index
    %c0_114 = arith.constant 0 : index
    %95 = vector.load %arg2[%c4_113, %c0_114] : memref<11x16xf32, #tpu.memory_space<vmem>>, vector<1x8xf32>
    %96 = vector.broadcast %95 : vector<1x8xf32> to vector<256x8xf32>
    %97 = arith.addf %94, %96 : vector<256x8xf32>
    %98 = vector.shape_cast %97 : vector<256x8xf32> to vector<1x16x16x8xf32>
    %c5_115 = arith.constant 5 : index
    %c0_116 = arith.constant 0 : index
    %99 = vector.load %arg2[%c5_115, %c0_116] : memref<11x16xf32, #tpu.memory_space<vmem>>, vector<1x4xf32>
    %100 = vector.shape_cast %99 : vector<1x4xf32> to vector<1x1x1x4xf32>
    %101 = vector.broadcast %100 : vector<1x1x1x4xf32> to vector<1x16x16x4xf32>
    %102 = arith.mulf %0, %101 : vector<1x16x16x4xf32>
    %c6_117 = arith.constant 6 : index
    %c0_118 = arith.constant 0 : index
    %103 = vector.load %arg2[%c6_117, %c0_118] : memref<11x16xf32, #tpu.memory_space<vmem>>, vector<1x4xf32>
    %104 = vector.shape_cast %103 : vector<1x4xf32> to vector<1x1x1x4xf32>
    %105 = vector.broadcast %104 : vector<1x1x1x4xf32> to vector<1x16x16x4xf32>
    %106 = arith.addf %102, %105 : vector<1x16x16x4xf32>
    %cst_119 = arith.constant 0.000000e+00 : f32
    %107 = vector.broadcast %cst_119 : f32 to vector<1x16x16x4xf32>
    %108 = arith.maximumf %106, %107 : vector<1x16x16x4xf32>
    %c176 = arith.constant 176 : index
    %c0_120 = arith.constant 0 : index
    %109 = vector.load %arg3[%c176, %c0_120] : memref<192x16xbf16, #tpu.memory_space<vmem>>, vector<4x8xbf16>
    %110 = vector.shape_cast %108 : vector<1x16x16x4xf32> to vector<256x4xf32>
    %111 = arith.truncf %110 : vector<256x4xf32> to vector<256x4xbf16>
    %cst_121 = arith.constant dense<0.000000e+00> : vector<256x8xf32>
    %112 = tpu.matmul %111, %109, %cst_121 {dimension_numbers = #tpu.dot_dimension_numbers<[1], [0], [0], [1], [0, 0, 1, 1], [], []>} : vector<256x4xbf16>, vector<4x8xbf16>, vector<256x8xf32> -> vector<256x8xf32>
    %c7 = arith.constant 7 : index
    %c0_122 = arith.constant 0 : index
    %113 = vector.load %arg2[%c7, %c0_122] : memref<11x16xf32, #tpu.memory_space<vmem>>, vector<1x8xf32>
    %114 = vector.broadcast %113 : vector<1x8xf32> to vector<256x8xf32>
    %115 = arith.addf %112, %114 : vector<256x8xf32>
    %116 = vector.shape_cast %115 : vector<256x8xf32> to vector<1x16x16x8xf32>
    %cst_123 = arith.constant 0.000000e+00 : f32
    %117 = vector.broadcast %cst_123 : f32 to vector<1x16x16x8xf32>
    %118 = arith.maximumf %116, %117 : vector<1x16x16x8xf32>
    %c0_124 = arith.constant 0 : index
    %c1_125 = arith.constant 1 : index
    %c1_126 = arith.constant 1 : index
    %c0_127 = arith.constant 0 : index
    %119 = vector.load %arg7[%c0_124, %c1_125, %c1_126, %c0_127] : memref<1x18x18x8xf32, #tpu.memory_space<vmem>>, vector<1x16x16x8xf32>
    tpu.vector_store %arg7[%c0_124, %c1_125, %c1_126, %c0_127], %118 {strides = array<i32>} : memref<1x18x18x8xf32, #tpu.memory_space<vmem>>, vector<1x16x16x8xf32>,
    %c0_128 = arith.constant 0 : index
    %c1_129 = arith.constant 1 : index
    %c0_130 = arith.constant 0 : index
    %c0_131 = arith.constant 0 : index
    %120 = vector.load %arg7[%c0_128, %c1_129, %c0_130, %c0_131] : memref<1x18x18x8xf32, #tpu.memory_space<vmem>>, vector<1x16x16x8xf32>
    %c0_132 = arith.constant 0 : index
    %c1_133 = arith.constant 1 : index
    %c1_134 = arith.constant 1 : index
    %c0_135 = arith.constant 0 : index
    %121 = vector.load %arg7[%c0_132, %c1_133, %c1_134, %c0_135] : memref<1x18x18x8xf32, #tpu.memory_space<vmem>>, vector<1x16x16x8xf32>
    %122 = arith.maximumf %120, %121 : vector<1x16x16x8xf32>
    %c0_136 = arith.constant 0 : index
    %c1_137 = arith.constant 1 : index
    %c2_138 = arith.constant 2 : index
    %c0_139 = arith.constant 0 : index
    %123 = vector.load %arg7[%c0_136, %c1_137, %c2_138, %c0_139] : memref<1x18x18x8xf32, #tpu.memory_space<vmem>>, vector<1x16x16x8xf32>
    %124 = arith.maximumf %122, %123 : vector<1x16x16x8xf32>
    %c0_140 = arith.constant 0 : index
    %c1_141 = arith.constant 1 : index
    %c1_142 = arith.constant 1 : index
    %c0_143 = arith.constant 0 : index
    %125 = vector.load %arg7[%c0_140, %c1_141, %c1_142, %c0_143] : memref<1x18x18x8xf32, #tpu.memory_space<vmem>>, vector<1x16x16x8xf32>
    tpu.vector_store %arg7[%c0_140, %c1_141, %c1_142, %c0_143], %124 {strides = array<i32>} : memref<1x18x18x8xf32, #tpu.memory_space<vmem>>, vector<1x16x16x8xf32>,
    %c0_144 = arith.constant 0 : index
    %c0_145 = arith.constant 0 : index
    %c1_146 = arith.constant 1 : index
    %c0_147 = arith.constant 0 : index
    %126 = vector.load %arg7[%c0_144, %c0_145, %c1_146, %c0_147] : memref<1x18x18x8xf32, #tpu.memory_space<vmem>>, vector<1x16x16x8xf32>
    %c0_148 = arith.constant 0 : index
    %c1_149 = arith.constant 1 : index
    %c1_150 = arith.constant 1 : index
    %c0_151 = arith.constant 0 : index
    %127 = vector.load %arg7[%c0_148, %c1_149, %c1_150, %c0_151] : memref<1x18x18x8xf32, #tpu.memory_space<vmem>>, vector<1x16x16x8xf32>
    %128 = arith.maximumf %126, %127 : vector<1x16x16x8xf32>
    %c0_152 = arith.constant 0 : index
    %c2_153 = arith.constant 2 : index
    %c1_154 = arith.constant 1 : index
    %c0_155 = arith.constant 0 : index
    %129 = vector.load %arg7[%c0_152, %c2_153, %c1_154, %c0_155] : memref<1x18x18x8xf32, #tpu.memory_space<vmem>>, vector<1x16x16x8xf32>
    %130 = arith.maximumf %128, %129 : vector<1x16x16x8xf32>
    %131 = arith.addf %98, %130 : vector<1x16x16x8xf32>
    %c8_156 = arith.constant 8 : index
    %c0_157 = arith.constant 0 : index
    %132 = vector.load %arg2[%c8_156, %c0_157] : memref<11x16xf32, #tpu.memory_space<vmem>>, vector<1x4xf32>
    %133 = vector.shape_cast %132 : vector<1x4xf32> to vector<1x1x1x4xf32>
    %134 = vector.broadcast %133 : vector<1x1x1x4xf32> to vector<1x16x16x4xf32>
    %135 = arith.mulf %0, %134 : vector<1x16x16x4xf32>
    %c9 = arith.constant 9 : index
    %c0_158 = arith.constant 0 : index
    %136 = vector.load %arg2[%c9, %c0_158] : memref<11x16xf32, #tpu.memory_space<vmem>>, vector<1x4xf32>
    %137 = vector.shape_cast %136 : vector<1x4xf32> to vector<1x1x1x4xf32>
    %138 = vector.broadcast %137 : vector<1x1x1x4xf32> to vector<1x16x16x4xf32>
    %139 = arith.addf %135, %138 : vector<1x16x16x4xf32>
    %cst_159 = arith.constant 0.000000e+00 : f32
    %140 = vector.broadcast %cst_159 : f32 to vector<1x16x16x4xf32>
    %141 = arith.maximumf %139, %140 : vector<1x16x16x4xf32>
    %c184 = arith.constant 184 : index
    %c0_160 = arith.constant 0 : index
    %142 = vector.load %arg3[%c184, %c0_160] : memref<192x16xbf16, #tpu.memory_space<vmem>>, vector<4x8xbf16>
    %143 = vector.shape_cast %141 : vector<1x16x16x4xf32> to vector<256x4xf32>
    %144 = arith.truncf %143 : vector<256x4xf32> to vector<256x4xbf16>
    %cst_161 = arith.constant dense<0.000000e+00> : vector<256x8xf32>
    %145 = tpu.matmul %144, %142, %cst_161 {dimension_numbers = #tpu.dot_dimension_numbers<[1], [0], [0], [1], [0, 0, 1, 1], [], []>} : vector<256x4xbf16>, vector<4x8xbf16>, vector<256x8xf32> -> vector<256x8xf32>
    %c10 = arith.constant 10 : index
    %c0_162 = arith.constant 0 : index
    %146 = vector.load %arg2[%c10, %c0_162] : memref<11x16xf32, #tpu.memory_space<vmem>>, vector<1x8xf32>
    %147 = vector.broadcast %146 : vector<1x8xf32> to vector<256x8xf32>
    %148 = arith.addf %145, %147 : vector<256x8xf32>
    %149 = vector.shape_cast %148 : vector<256x8xf32> to vector<1x16x16x8xf32>
    %cst_163 = arith.constant 0.000000e+00 : f32
    %150 = vector.broadcast %cst_163 : f32 to vector<1x16x16x8xf32>
    %151 = arith.maximumf %149, %150 : vector<1x16x16x8xf32>
    %152 = arith.addf %131, %151 : vector<1x16x16x8xf32>
    %c0_164 = arith.constant 0 : index
    %c0_165 = arith.constant 0 : index
    %c0_166 = arith.constant 0 : index
    %c0_167 = arith.constant 0 : index
    %153 = vector.load %arg4[%c0_164, %c0_165, %c0_166, %c0_167] : memref<1x16x16x8xf32, #tpu.memory_space<vmem>>, vector<1x16x16x8xf32>
    tpu.vector_store %arg4[%c0_164, %c0_165, %c0_166, %c0_167], %152 {strides = array<i32>} : memref<1x16x16x8xf32, #tpu.memory_space<vmem>>, vector<1x16x16x8xf32>,
    return
  }
  func.func @transform_0(%arg0: i32) -> (i32, i32, i32, i32) {
    %c0_i32 = arith.constant 0 : i32
    %c0_i32_0 = arith.constant 0 : i32
    %c0_i32_1 = arith.constant 0 : i32
    %c0_i32_2 = arith.constant 0 : i32
    return %arg0, %c0_i32, %c0_i32_0, %c0_i32_1 : i32, i32, i32, i32
  }
  func.func @transform_1(%arg0: i32) -> (i32, i32) {
    %c0_i32 = arith.constant 0 : i32
    %c0_i32_0 = arith.constant 0 : i32
    %c0_i32_1 = arith.constant 0 : i32
    return %c0_i32, %c0_i32_0 : i32, i32
  }
  func.func @transform_2(%arg0: i32) -> (i32, i32) {
    %c0_i32 = arith.constant 0 : i32
    %c0_i32_0 = arith.constant 0 : i32
    %c0_i32_1 = arith.constant 0 : i32
    return %c0_i32, %c0_i32_0 : i32, i32
  }
  func.func @transform_3(%arg0: i32) -> (i32, i32, i32, i32) {
    %c0_i32 = arith.constant 0 : i32
    %c0_i32_0 = arith.constant 0 : i32
    %c0_i32_1 = arith.constant 0 : i32
    %c0_i32_2 = arith.constant 0 : i32
    return %arg0, %c0_i32, %c0_i32_0, %c0_i32_1 : i32, i32, i32, i32
  }
}

</mosaic_0001>

<bundles_post_ra>
// kernel: fwd.1
= control target key start
LH: loop header
LB: loop body
LE: loop exit
PB: predicated region body
PF: predicated region fallthrough
CT: control target
= control target key end

     0   :  { %s4842_s12 = smov 0   ;;  %s6634_s0 = inlined_call_operand.vmem [shape: f32[2,16,16,4], index: 0, kind: input, shape index: {}]   ;;  %s6635_s1 = inlined_call_operand.vmem [shape: f32[11,16], index: 1, kind: input, shape index: {}]   ;;  %s6636_s2 = inlined_call_operand.vmem [shape: bf16[192,16], index: 2, kind: input, shape index: {}]   ;;  %s6637_s3 = inlined_call_operand.vmem [shape: f32[2,16,16,8], index: 3, kind: output, shape index: {}]  }
   0x1 LB: > { %s4311_s13 = sadd.s32 4294967295, %s4810_s12   ;;  %p4315_p0 = scmp.ge.s32.totalorder %s4810_s12, 1  ;;  %s4810_s12 = sphi %s4842_s12, %s13_s12  }
   0x2   : > { %p137_p1 = scmp.lt.s32.totalorder %s4810_s12, 3 }
   0x4   : > { %p138_p2 = pnand %p4315_p0, %p137_p1 }
   0x5   : > { %v434_v0 = vld [vmem:[%s6636_s2] sm:$0x3] (!%p138_p2)  ;;  %vm505_vm0 = vcmask (!%p138_p2), 1041408   ;;  %p161_p3 = scmp.lt.s32.totalorder (!%p138_p2), %s4311_s13, 1  ;;  %vm204_vm1 = vcmask (!%p138_p2), 130048   ;;  %vm272_vm2 = vcmask (!%p138_p2), 64512  }
   0x6   : > { %141 = sbr.rel (%p138_p2) target bundleno = 1295 (0x50f), region = 32  ;;  %4710 = vmatprep.subr.msk.bf16.mxu0 (!%p138_p2), %vm505_vm0, %v434_v0  ;;  %v507_v1 = vsel (!%p138_p2), %vm505_vm0, %v434_v0, 0  ;;  %4711 = vmatprep.subr.msk.bf16.mxu1 (!%p138_p2), %vm505_vm0, %v434_v0  ;;  %v4861_v2 = vld [vmem:[%s6635_s1] ss:$0 sm:$0xff] (!%p138_p2)  ;;  %v4867_v3 = vld [vmem:[%s6635_s1 + $0x1] ss:$0 sm:$0xff] (!%p138_p2) }
   0x7   : > { %4521 = vmatpush3.bf16.msra.mxu0 (!%p138_p2), %v507_v1  ;;  %4709 = vmatpush3.bf16.msra.mxu1 (!%p138_p2), %v507_v1  ;;  %v4812_v4 = vmov (!%p138_p2), 0.0   ;;  %vm456_vm3 = vcmask (!%p138_p2), 31744   ;;  %vm207_vm4 = vcmask (!%p138_p2), 128000   ;;  %s4813_s26 = smov (!%p138_p2), 16   ;;  %s4814_s27 = smov (!%p138_p2), 8   ;;  %vm1671_vm5 = vcmask (!%p138_p2), 1043456  }
   0x8   : > { %218 = vst.msk [vmem:[#allocation2 + $0x60] sm:$0xff] (!%p138_p2), %vm204_vm1, %v4812_v4  ;;  %219 = vst.msk [vmem:[#allocation2 + $0x68] sm:$0xff] (!%p138_p2), %vm204_vm1, %v4812_v4  ;;  %s4815_s28 = smov (!%p138_p2), 24   ;;  %s4816_s29 = smov (!%p138_p2), 32   ;;  %vm918_vm6 = vcmask (!%p138_p2), 130112   ;;  %vm1047_vm7 = vcmask (!%p138_p2), 195712  }
   0x9   : > { %205 = vst.msk [vmem:[#allocation2] sm:$0xff] (!%p138_p2), %vm204_vm1, %v4812_v4  ;;  %206 = vst.msk [vmem:[#allocation2 + $0x8] sm:$0xff] (!%p138_p2), %vm204_vm1, %v4812_v4  ;;  %s4817_s30 = smov (!%p138_p2), 40   ;;  %s4818_s4 = smov (!%p138_p2), 48   ;;  %vm1176_vm8 = vcmask (!%p138_p2), 261312   ;;  %vm1305_vm9 = vcmask (!%p138_p2), 326912  }
   0xa   : > { %209 = vst.msk [vmem:[#allocation2 + $0x18] sm:$0xff] (!%p138_p2), %vm204_vm1, %v4812_v4  ;;  %210 = vst.msk [vmem:[#allocation2 + $0x20] sm:$0xff] (!%p138_p2), %vm204_vm1, %v4812_v4  ;;  %vm1434_vm10 = vcmask (!%p138_p2), 392512   ;;  %vm1563_vm11 = vcmask (!%p138_p2), 458112   ;;  %vm1622_vm12 = vcmask (!%p138_p2), 457728   ;;  %s4819_s15 = smov (!%p138_p2), 96  }
   0xb   : > { %212 = vst.msk [vmem:[#allocation2 + $0x30] sm:$0xff] (!%p138_p2), %vm204_vm1, %v4812_v4  ;;  %213 = vst.msk [vmem:[#allocation2 + $0x38] sm:$0xff] (!%p138_p2), %vm204_vm1, %v4812_v4  ;;  %s4820_s16 = smov (!%p138_p2), 64   ;;  %vm2091_vm13 = vcmask (!%p138_p2), 261248   ;;  %vm2221_vm14 = vcmask (!%p138_p2), 392448   ;;  %s4821_s20 = smov (!%p138_p2), 80  }
   0xc   : > { %215 = vst.msk [vmem:[#allocation2 + $0x48] sm:$0xff] (!%p138_p2), %vm204_vm1, %v4812_v4  ;;  %216 = vst.msk [vmem:[#allocation2 + $0x50] sm:$0xff] (!%p138_p2), %vm204_vm1, %v4812_v4  ;;  %vm2350_vm15 = vcmask (!%p138_p2), 523648  }
   0xd   : > { %s6639_s13 = smov (!%p161_p3, %s4311_s13), 1  ;;  %221 = vst.msk [vmem:[#allocation2 + $0x78] sm:$0xff] %vm204_vm1, %v4812_v4  ;;  %222 = vst.msk [vmem:[#allocation2 + $0x80] sm:$0xff] %vm204_vm1, %v4812_v4 }
   0xe   : > { %s4424_s18 = sshll.u32 %s6639_s13, 8  ;;  %224 = vst.msk [vmem:[#allocation2 + $0x90] sm:$0xff] %vm204_vm1, %v4812_v4  ;;  %225 = vst.msk [vmem:[#allocation2 + $0x98] sm:$0xff] %vm204_vm1, %v4812_v4 }
   0xf   : > { %227 = vst.msk [vmem:[#allocation2 + $0xa8] sm:$0xff] %vm204_vm1, %v4812_v4  ;;  %228 = vst.msk [vmem:[#allocation2 + $0xb0] sm:$0xff] %vm204_vm1, %v4812_v4  ;;  %s5034_s23 = scalar_lea.vmem %s6634_s0, %s4424_s18  ;;  %s6424_s14 = scalar_lea.vmem %s6637_s3, %s4424_s18 }
  0x10   : > { %230 = vst.msk [vmem:[#allocation2 + $0xc0] sm:$0xff] %vm204_vm1, %v4812_v4  ;;  %231 = vst.msk [vmem:[#allocation2 + $0xc8] sm:$0xff] %vm204_vm1, %v4812_v4  ;;  %v172_v5 = vld [vmem:[%s5034_s23] sm:$0xff]  ;;  %v173_v6 = vld [vmem:[%s5034_s23 + $0x8] sm:$0xff] }
  0x11   : > { %233 = vst.msk [vmem:[#allocation2 + $0xd8] sm:$0xff] %vm204_vm1, %v4812_v4  ;;  %234 = vst.msk [vmem:[#allocation2 + $0xe0] sm:$0xff] %vm204_vm1, %v4812_v4  ;;  %v174_v7 = vld [vmem:[%s5034_s23 + $0x10] sm:$0xff]  ;;  %v333_v8 = vmul.f32 %v4861_v2, %v172_v5  ;;  %v334_v9 = vmul.f32 %v4861_v2, %v173_v6  ;;  %v175_v10 = vld [vmem:[%s5034_s23 + $0x18] sm:$0xff] }
  0x12   : > { %236 = vst.msk [vmem:[#allocation2 + $0xf0] sm:$0xff] %vm204_vm1, %v4812_v4  ;;  %237 = vst.msk [vmem:[#allocation2 + $0xf8] sm:$0xff] %vm204_vm1, %v4812_v4  ;;  %v335_v11 = vmul.f32 %v4861_v2, %v174_v7  ;;  %v336_v12 = vmul.f32 %v4861_v2, %v175_v10  ;;  %v188_v17 = vld [vmem:[%s5034_s23 + $0x80] sm:$0xff]  ;;  %v189_v20 = vld [vmem:[%s5034_s23 + $0x88] sm:$0xff] }
  0x13   : > { %239 = vst.msk [vmem:[#allocation2 + $0x108] sm:$0xff] %vm204_vm1, %v4812_v4  ;;  %240 = vst.msk [vmem:[#allocation2 + $0x110] sm:$0xff] %vm204_vm1, %v4812_v4  ;;  %v370_v13 = vadd.f32 %v4867_v3, %v333_v8  ;;  %v371_v14 = vadd.f32 %v4867_v3, %v334_v9  ;;  %v349_v24 = vmul.f32 %v4861_v2, %v188_v17  ;;  %v190_v25 = vld [vmem:[%s5034_s23 + $0x90] sm:$0xff]  ;;  %v191_v26 = vld [vmem:[%s5034_s23 + $0x98] sm:$0xff] }
  0x14   : > { %242 = vst.msk [vmem:[#allocation2 + $0x120] sm:$0xff] %vm204_vm1, %v4812_v4  ;;  %243 = vst.msk [vmem:[#allocation2 + $0x128] sm:$0xff] %vm204_vm1, %v4812_v4  ;;  %v372_v15 = vadd.f32 %v4867_v3, %v335_v11  ;;  %v373_v16 = vadd.f32 %v4867_v3, %v336_v12  ;;  %v350_v28 = vmul.f32 %v4861_v2, %v189_v20  ;;  %v176_v29 = vld [vmem:[%s5034_s23 + $0x20] sm:$0xff]  ;;  %v177_v30 = vld [vmem:[%s5034_s23 + $0x28] sm:$0xff] }
  0x15   : > { %245 = vst.msk [vmem:[#allocation2 + $0x138] sm:$0xff] %vm204_vm1, %v4812_v4  ;;  %246 = vst.msk [vmem:[#allocation2 + $0x140] sm:$0xff] %vm204_vm1, %v4812_v4  ;;  %v402_v18 = vmax.f32 %v370_v13, 0.0  ;;  %v403_v19 = vmax.f32 %v371_v14, 0.0  ;;  %v178_v31 = vld [vmem:[%s5034_s23 + $0x30] sm:$0xff]  ;;  %v386_v32 = vadd.f32 %v4867_v3, %v349_v24  ;;  %v179_v33 = vld [vmem:[%s5034_s23 + $0x38] sm:$0xff]  ;;  %v351_v35 = vmul.f32 %v4861_v2, %v190_v25 }
  0x16   : > { %248 = vst.msk [vmem:[#allocation2 + $0x150] sm:$0xff] %vm204_vm1, %v4812_v4  ;;  %249 = vst.msk [vmem:[#allocation2 + $0x158] sm:$0xff] %vm204_vm1, %v4812_v4  ;;  %v404_v21 = vmax.f32 %v372_v15, 0.0  ;;  %v405_v22 = vmax.f32 %v373_v16, 0.0  ;;  %v387_v34 = vadd.f32 %v4867_v3, %v350_v28  ;;  %v352_v36 = vmul.f32 %v4861_v2, %v191_v26  ;;  %v192_v37 = vld [vmem:[%s5034_s23 + $0xa0] sm:$0xff]  ;;  %v193_v38 = vld [vmem:[%s5034_s23 + $0xa8] sm:$0xff] }
  0x17   : > { %251 = vst.msk [vmem:[#allocation2 + $0x168] sm:$0xff] %vm204_vm1, %v4812_v4  ;;  %252 = vst.msk [vmem:[#allocation2 + $0x170] sm:$0xff] %vm204_vm1, %v4812_v4  ;;  %v435_v23 = vpack.c.bf16 %v403_v19, %v402_v18  ;;  %v418_v39 = vmax.f32 %v386_v32, 0.0  ;;  %v337_v40 = vmul.f32 %v4861_v2, %v176_v29  ;;  %v338_v41 = vmul.f32 %v4861_v2, %v177_v30  ;;  %v194_v43 = vld [vmem:[%s5034_s23 + $0xb0] sm:$0xff]  ;;  %v195_v48 = vld [vmem:[%s5034_s23 + $0xb8] sm:$0xff] }
  0x18   : > { %254 = vst.msk [vmem:[#allocation2 + $0x180] sm:$0xff] %vm204_vm1, %v4812_v4  ;;  %255 = vst.msk [vmem:[#allocation2 + $0x188] sm:$0xff] %vm204_vm1, %v4812_v4  ;;  %v436_v27 = vpack.c.bf16 %v405_v22, %v404_v21  ;;  %v339_v42 = vmul.f32 %v4861_v2, %v178_v31  ;;  %v419_v44 = vmax.f32 %v387_v34, 0.0  ;;  %v388_v45 = vadd.f32 %v4867_v3, %v351_v35  ;;  %v180_v49 = vld [vmem:[%s5034_s23 + $0x40] sm:$0xff]  ;;  %v181_v54 = vld [vmem:[%s5034_s23 + $0x48] sm:$0xff] }
  0x19   : > { %257 = vst.msk [vmem:[#allocation2 + $0x198] sm:$0xff] %vm204_vm1, %v4812_v4  ;;  %258 = vst.msk [vmem:[#allocation2 + $0x1a0] sm:$0xff] %vm204_vm1, %v4812_v4  ;;  %4522 = vmatprep.mubr.msk.bf16.mxu0 %vm456_vm3, %v435_v23  ;;  %v389_v46 = vadd.f32 %v4867_v3, %v352_v36  ;;  %v340_v47 = vmul.f32 %v4861_v2, %v179_v33  ;;  %v374_v50 = vadd.f32 %v4867_v3, %v337_v40  ;;  %v182_v63 = vld [vmem:[%s5034_s23 + $0x50] sm:$0xff]  ;;  %v183_v7 = vld [vmem:[%s5034_s23 + $0x58] sm:$0xff] }
  0x1a   : > { %260 = vst.msk [vmem:[#allocation2 + $0x1b0] sm:$0xff] %vm204_vm1, %v4812_v4  ;;  %261 = vst.msk [vmem:[#allocation2 + $0x1b8] sm:$0xff] %vm204_vm1, %v4812_v4  ;;  %4523 = vmatmul.mubr.msk.bf16.vlgmr.msra.gmra.mrb[0].mxu0 %vm456_vm3, %v436_v27  ;;  %v375_v51 = vadd.f32 %v4867_v3, %v338_v41  ;;  %v376_v52 = vadd.f32 %v4867_v3, %v339_v42  ;;  %v353_v53 = vmul.f32 %v4861_v2, %v192_v37  ;;  %v196_v12 = vld [vmem:[%s5034_s23 + $0xc0] sm:$0xff]  ;;  %v197_v21 = vld [vmem:[%s5034_s23 + $0xc8] sm:$0xff] }
  0x1b   : > { %263 = vst.msk [vmem:[#allocation2 + $0x1c8] sm:$0xff] %vm204_vm1, %v4812_v4  ;;  %264 = vst.msk [vmem:[#allocation2 + $0x1d0] sm:$0xff] %vm204_vm1, %v4812_v4  ;;  %v443_v55 = vpack.c.bf16 %v419_v44, %v418_v39  ;;  %v420_v56 = vmax.f32 %v388_v45, 0.0  ;;  %v421_v57 = vmax.f32 %v389_v46, 0.0  ;;  %v377_v58 = vadd.f32 %v4867_v3, %v340_v47  ;;  %v198_v26 = vld [vmem:[%s5034_s23 + $0xd0] sm:$0xff]  ;;  %v199_v27 = vld [vmem:[%s5034_s23 + $0xd8] sm:$0xff] }
  0x1c   : > { %266 = vst.msk [vmem:[#allocation2 + $0x1e0] sm:$0xff] %vm204_vm1, %v4812_v4  ;;  %267 = vst.msk [vmem:[#allocation2 + $0x1e8] sm:$0xff] %vm204_vm1, %v4812_v4  ;;  %v406_v59 = vmax.f32 %v374_v50, 0.0  ;;  %v407_v60 = vmax.f32 %v375_v51, 0.0  ;;  %v408_v61 = vmax.f32 %v376_v52, 0.0  ;;  %v354_v62 = vmul.f32 %v4861_v2, %v193_v38  ;;  %v184_v36 = vld [vmem:[%s5034_s23 + $0x60] sm:$0xff] }
  0x1d   : > { %269 = vst.msk [vmem:[#allocation2 + $0x1f8] sm:$0xff] %vm204_vm1, %v4812_v4  ;;  %270 = vst.msk [vmem:[#allocation2 + $0x200] sm:$0xff] %vm204_vm1, %v4812_v4  ;;  %4538 = vmatprep.mubr.msk.bf16.mxu1 %vm456_vm3, %v443_v55  ;;  %v444_v0 = vpack.c.bf16 %v421_v57, %v420_v56  ;;  %v409_v1 = vmax.f32 %v377_v58, 0.0  ;;  %v390_v5 = vadd.f32 %v4867_v3, %v353_v53  ;;  %v185_v37 = vld [vmem:[%s5034_s23 + $0x68] sm:$0xff]  ;;  %v186_v42 = vld [vmem:[%s5034_s23 + $0x70] sm:$0xff] }
  0x1e   : > { %273 = vst.msk [vmem:[#allocation4] sm:$0xff] %vm272_vm2, %v4812_v4  ;;  %274 = vst.msk [vmem:[#allocation4 + $0x8] sm:$0xff] %vm272_vm2, %v4812_v4  ;;  %v355_v6 = vmul.f32 %v4861_v2, %v194_v43  ;;  %v437_v8 = vpack.c.bf16 %v407_v60, %v406_v59  ;;  %v391_v9 = vadd.f32 %v4867_v3, %v354_v62  ;;  %v187_v43 = vld [vmem:[%s5034_s23 + $0x78] sm:$0xff]  ;;  %v200_v52 = vld [vmem:[%s5034_s23 + $0xe0] sm:$0xff] }
  0x1f   : > { %277 = vst.msk [vmem:[#allocation4 + $0x18] sm:$0xff] %vm272_vm2, %v4812_v4  ;;  %278 = vst.msk [vmem:[#allocation4 + $0x20] sm:$0xff] %vm272_vm2, %v4812_v4  ;;  %v356_v10 = vmul.f32 %v4861_v2, %v195_v48  ;;  %v341_v11 = vmul.f32 %v4861_v2, %v180_v49  ;;  %4539 = vmatmul.mubr.msk.bf16.vlgmr.msra.gmra.mrb[0].mxu1 %vm456_vm3, %v444_v0  ;;  %v438_v13 = vpack.c.bf16 %v409_v1, %v408_v61  ;;  %v201_v57 = vld [vmem:[%s5034_s23 + $0xe8] sm:$0xff]  ;;  %v202_v62 = vld [vmem:[%s5034_s23 + $0xf0] sm:$0xff] }
  0x20   : > { %280 = vst.msk [vmem:[#allocation4 + $0x30] sm:$0xff] %vm272_vm2, %v4812_v4  ;;  %281 = vst.msk [vmem:[#allocation4 + $0x38] sm:$0xff] %vm272_vm2, %v4812_v4  ;;  %v422_v14 = vmax.f32 %v390_v5, 0.0  ;;  %v392_v15 = vadd.f32 %v4867_v3, %v355_v6  ;;  %v342_v16 = vmul.f32 %v4861_v2, %v181_v54  ;;  %4526 = vmatprep.mubr.msk.bf16.mxu0 %vm456_vm3, %v437_v8  ;;  %v423_v17 = vmax.f32 %v391_v9, 0.0  ;;  %v203_v6 = vld [vmem:[%s5034_s23 + $0xf8] sm:$0xff] }
  0x21   : > { %283 = vst.msk [vmem:[#allocation4 + $0x48] sm:$0xff] %vm272_vm2, %v4812_v4  ;;  %284 = vst.msk [vmem:[#allocation4 + $0x50] sm:$0xff] %vm272_vm2, %v4812_v4  ;;  %v393_v18 = vadd.f32 %v4867_v3, %v356_v10  ;;  %v378_v19 = vadd.f32 %v4867_v3, %v341_v11  ;;  %v343_v20 = vmul.f32 %v4861_v2, %v182_v63 }
  0x22   : > { %286 = vst.msk [vmem:[#allocation4 + $0x60] sm:$0xff] %vm272_vm2, %v4812_v4  ;;  %287 = vst.msk [vmem:[#allocation4 + $0x68] sm:$0xff] %vm272_vm2, %v4812_v4  ;;  %4527 = vmatmul.mubr.msk.bf16.gmra.mrb[4].mxu0 %vm456_vm3, %v438_v13  ;;  %v424_v22 = vmax.f32 %v392_v15, 0.0  ;;  %v379_v23 = vadd.f32 %v4867_v3, %v342_v16  ;;  %v344_v24 = vmul.f32 %v4861_v2, %v183_v7 }
  0x23   : > { %289 = vst.msk [vmem:[#allocation4 + $0x78] sm:$0xff] %vm272_vm2, %v4812_v4  ;;  %290 = vst.msk [vmem:[#allocation4 + $0x80] sm:$0xff] %vm272_vm2, %v4812_v4  ;;  %v357_v25 = vmul.f32 %v4861_v2, %v196_v12  ;;  %v445_v28 = vpack.c.bf16 %v423_v17, %v422_v14  ;;  %v425_v29 = vmax.f32 %v393_v18, 0.0  ;;  %v410_v30 = vmax.f32 %v378_v19, 0.0 }
  0x24   : > { %292 = vst.msk [vmem:[#allocation4 + $0x90] sm:$0xff] %vm272_vm2, %v4812_v4  ;;  %293 = vst.msk [vmem:[#allocation4 + $0x98] sm:$0xff] %vm272_vm2, %v4812_v4  ;;  %v380_v31 = vadd.f32 %v4867_v3, %v343_v20  ;;  %v411_v32 = vmax.f32 %v379_v23, 0.0  ;;  %v381_v33 = vadd.f32 %v4867_v3, %v344_v24  ;;  %v358_v34 = vmul.f32 %v4861_v2, %v197_v21 }
  0x25   : > { %295 = vst.msk [vmem:[#allocation4 + $0xa8] sm:$0xff] %vm272_vm2, %v4812_v4  ;;  %296 = vst.msk [vmem:[#allocation4 + $0xb0] sm:$0xff] %vm272_vm2, %v4812_v4  ;;  %v394_v35 = vadd.f32 %v4867_v3, %v357_v25  ;;  %4542 = vmatprep.mubr.msk.bf16.mxu1 %vm456_vm3, %v445_v28  ;;  %v446_v38 = vpack.c.bf16 %v425_v29, %v424_v22  ;;  %v359_v40 = vmul.f32 %v4861_v2, %v198_v26 }
  0x26   : > { %298 = vst.msk [vmem:[#allocation4 + $0xc0] sm:$0xff] %vm272_vm2, %v4812_v4  ;;  %299 = vst.msk [vmem:[#allocation4 + $0xc8] sm:$0xff] %vm272_vm2, %v4812_v4  ;;  %v412_v39 = vmax.f32 %v380_v31, 0.0  ;;  %v360_v41 = vmul.f32 %v4861_v2, %v199_v27  ;;  %v439_v44 = vpack.c.bf16 %v411_v32, %v410_v30  ;;  %v413_v45 = vmax.f32 %v381_v33, 0.0 }
  0x27   : > { %301 = vst.msk [vmem:[#allocation4 + $0xd8] sm:$0xff] %vm272_vm2, %v4812_v4  ;;  %302 = vst.msk [vmem:[#allocation4 + $0xe0] sm:$0xff] %vm272_vm2, %v4812_v4  ;;  %v395_v46 = vadd.f32 %v4867_v3, %v358_v34  ;;  %v426_v47 = vmax.f32 %v394_v35, 0.0  ;;  %v396_v48 = vadd.f32 %v4867_v3, %v359_v40  ;;  %v345_v50 = vmul.f32 %v4861_v2, %v184_v36 }
  0x28   : > { %304 = vst.msk [vmem:[#allocation4 + $0xf0] sm:$0xff] %vm272_vm2, %v4812_v4  ;;  %305 = vst.msk [vmem:[#allocation4 + $0xf8] sm:$0xff] %vm272_vm2, %v4812_v4  ;;  %v397_v49 = vadd.f32 %v4867_v3, %v360_v41  ;;  %v346_v51 = vmul.f32 %v4861_v2, %v185_v37  ;;  %4543 = vmatmul.mubr.msk.bf16.gmra.mrb[4].mxu1 %vm456_vm3, %v446_v38  ;;  %4530 = vmatprep.mubr.msk.bf16.mxu0 %vm456_vm3, %v439_v44 }
  0x29   : > { %307 = vst.msk [vmem:[#allocation4 + $0x108] sm:$0xff] %vm272_vm2, %v4812_v4  ;;  %308 = vst.msk [vmem:[#allocation4 + $0x110] sm:$0xff] %vm272_vm2, %v4812_v4  ;;  %v440_v53 = vpack.c.bf16 %v413_v45, %v412_v39  ;;  %v427_v54 = vmax.f32 %v395_v46, 0.0  ;;  %v347_v55 = vmul.f32 %v4861_v2, %v186_v42  ;;  %v348_v56 = vmul.f32 %v4861_v2, %v187_v43 }
  0x2a   : > { %310 = vst.msk [vmem:[#allocation4 + $0x120] sm:$0xff] %vm272_vm2, %v4812_v4  ;;  %311 = vst.msk [vmem:[#allocation4 + $0x128] sm:$0xff] %vm272_vm2, %v4812_v4  ;;  %v428_v58 = vmax.f32 %v396_v48, 0.0  ;;  %v429_v59 = vmax.f32 %v397_v49, 0.0  ;;  %v382_v60 = vadd.f32 %v4867_v3, %v345_v50  ;;  %v383_v61 = vadd.f32 %v4867_v3, %v346_v51 }
  0x2b   : > { %313 = vst.msk [vmem:[#allocation4 + $0x138] sm:$0xff] %vm272_vm2, %v4812_v4  ;;  %314 = vst.msk [vmem:[#allocation4 + $0x140] sm:$0xff] %vm272_vm2, %v4812_v4  ;;  %4531 = vmatmul.mubr.msk.bf16.gmra.mrb[8].mxu0 %vm456_vm3, %v440_v53  ;;  %v447_v63 = vpack.c.bf16 %v427_v54, %v426_v47  ;;  %v384_v0 = vadd.f32 %v4867_v3, %v347_v55  ;;  %v385_v1 = vadd.f32 %v4867_v3, %v348_v56 }
  0x2c   : > { %316 = vst.msk [vmem:[#allocation4 + $0x150] sm:$0xff] %vm272_vm2, %v4812_v4  ;;  %317 = vst.msk [vmem:[#allocation4 + $0x158] sm:$0xff] %vm272_vm2, %v4812_v4  ;;  %v361_v5 = vmul.f32 %v4861_v2, %v200_v52  ;;  %v448_v7 = vpack.c.bf16 %v429_v59, %v428_v58  ;;  %v414_v8 = vmax.f32 %v382_v60, 0.0  ;;  %v415_v9 = vmax.f32 %v383_v61, 0.0 }
  0x2d   : > { %319 = vst.msk [vmem:[#allocation4 + $0x168] sm:$0xff] %vm272_vm2, %v4812_v4  ;;  %320 = vst.msk [vmem:[#allocation4 + $0x170] sm:$0xff] %vm272_vm2, %v4812_v4  ;;  %v362_v10 = vmul.f32 %v4861_v2, %v201_v57  ;;  %4546 = vmatprep.mubr.msk.bf16.mxu1 %vm456_vm3, %v447_v63  ;;  %v416_v11 = vmax.f32 %v384_v0, 0.0  ;;  %v417_v12 = vmax.f32 %v385_v1, 0.0  ;;  %v363_v14 = vmul.f32 %v4861_v2, %v202_v62 }
  0x2e   : > { %322 = vst.msk [vmem:[#allocation4 + $0x180] sm:$0xff] %vm272_vm2, %v4812_v4  ;;  %323 = vst.msk [vmem:[#allocation4 + $0x188] sm:$0xff] %vm272_vm2, %v4812_v4  ;;  %v398_v13 = vadd.f32 %v4867_v3, %v361_v5  ;;  %v441_v15 = vpack.c.bf16 %v415_v9, %v414_v8  ;;  %v364_v17 = vmul.f32 %v4861_v2, %v203_v6  ;;  %v5195_v2 = vld [vmem:[%s6635_s1 + $0x2] ss:$0 sm:$0xff] }
  0x2f   : > { %325 = vst.msk [vmem:[#allocation4 + $0x198] sm:$0xff] %vm272_vm2, %v4812_v4  ;;  %326 = vst.msk [vmem:[#allocation4 + $0x1a0] sm:$0xff] %vm272_vm2, %v4812_v4  ;;  %v399_v16 = vadd.f32 %v4867_v3, %v362_v10  ;;  %v442_v18 = vpack.c.bf16 %v417_v12, %v416_v11  ;;  %v400_v20 = vadd.f32 %v4867_v3, %v363_v14 }
  0x30   : > { %v430_v19 = vmax.f32 %v398_v13, 0.0  ;;  %4534 = vmatprep.mubr.msk.bf16.mxu0 %vm456_vm3, %v441_v15  ;;  %v401_v22 = vadd.f32 %v4867_v3, %v364_v17  ;;  %4547 = vmatmul.mubr.msk.bf16.gmra.mrb[8].mxu1 %vm456_vm3, %v448_v7  ;;  %220 = vst.msk [vmem:[#allocation2 + $0x70] sm:$0x3f] %vm207_vm4, %v4812_v4  ;;  %208 = vst.msk [vmem:[#allocation2 + $0x10] sm:$0x3f] %vm207_vm4, %v4812_v4 }
  0x31   : > { %v431_v21 = vmax.f32 %v399_v16, 0.0  ;;  %v432_v23 = vmax.f32 %v400_v20, 0.0  ;;  %211 = vst.msk [vmem:[#allocation2 + $0x28] sm:$0x3f] %vm207_vm4, %v4812_v4  ;;  %214 = vst.msk [vmem:[#allocation2 + $0x40] sm:$0x3f] %vm207_vm4, %v4812_v4 }
  0x32   : > { %v433_v25 = vmax.f32 %v401_v22, 0.0  ;;  %217 = vst.msk [vmem:[#allocation2 + $0x58] sm:$0x3f] %vm207_vm4, %v4812_v4  ;;  %223 = vst.msk [vmem:[#allocation2 + $0x88] sm:$0x3f] %vm207_vm4, %v4812_v4 }
  0x33   : > { %v449_v24 = vpack.c.bf16 %v431_v21, %v430_v19  ;;  %4535 = vmatmul.mubr.msk.bf16.gmra.mrb[12].mxu0 %vm456_vm3, %v442_v18  ;;  %226 = vst.msk [vmem:[#allocation2 + $0xa0] sm:$0x3f] %vm207_vm4, %v4812_v4  ;;  %229 = vst.msk [vmem:[#allocation2 + $0xb8] sm:$0x3f] %vm207_vm4, %v4812_v4 }
  0x34   : > { %v450_v26 = vpack.c.bf16 %v433_v25, %v432_v23  ;;  %232 = vst.msk [vmem:[#allocation2 + $0xd0] sm:$0x3f] %vm207_vm4, %v4812_v4  ;;  %235 = vst.msk [vmem:[#allocation2 + $0xe8] sm:$0x3f] %vm207_vm4, %v4812_v4 }
  0x35   : > { %4550 = vmatprep.mubr.msk.bf16.mxu1 %vm456_vm3, %v449_v24  ;;  %238 = vst.msk [vmem:[#allocation2 + $0x100] sm:$0x3f] %vm207_vm4, %v4812_v4  ;;  %241 = vst.msk [vmem:[#allocation2 + $0x118] sm:$0x3f] %vm207_vm4, %v4812_v4 }
  0x36   : > { %244 = vst.msk [vmem:[#allocation2 + $0x130] sm:$0x3f] %vm207_vm4, %v4812_v4  ;;  %247 = vst.msk [vmem:[#allocation2 + $0x148] sm:$0x3f] %vm207_vm4, %v4812_v4 }
  0x37   : > { %250 = vst.msk [vmem:[#allocation2 + $0x160] sm:$0x3f] %vm207_vm4, %v4812_v4  ;;  %253 = vst.msk [vmem:[#allocation2 + $0x178] sm:$0x3f] %vm207_vm4, %v4812_v4 }
  0x38   : > { %4551 = vmatmul.mubr.msk.bf16.gmra.mrb[12].mxu1 %vm456_vm3, %v450_v26  ;;  %256 = vst.msk [vmem:[#allocation2 + $0x190] sm:$0x3f] %vm207_vm4, %v4812_v4  ;;  %259 = vst.msk [vmem:[#allocation2 + $0x1a8] sm:$0x3f] %vm207_vm4, %v4812_v4 }
  0x39   : > { %262 = vst.msk [vmem:[#allocation2 + $0x1c0] sm:$0x3f] %vm207_vm4, %v4812_v4  ;;  %265 = vst.msk [vmem:[#allocation2 + $0x1d8] sm:$0x3f] %vm207_vm4, %v4812_v4 }
  0x3a   : > { %268 = vst.msk [vmem:[#allocation2 + $0x1f0] sm:$0x3f] %vm207_vm4, %v4812_v4  ;;  %271 = vst.msk [vmem:[#allocation2 + $0x208] sm:$0x3f] %vm207_vm4, %v4812_v4  ;;  %vm2480_vm4 = vcmask 654848  }
  0xed   : > { %v4524_v3 = vpop.f32.mrb[0].mxu0 }
  0xee   : > { %v552_v27 = vadd.f32 %v4524_v3, %v5195_v2  ;;  %v543_v28 = vpop.f32.mrb[1].mxu0 }
  0xef   : > { %v544_v29 = vadd.f32 %v5195_v2, %v543_v28  ;;  %v4525_v30 = vpop.f32.mrb[2].mxu0 }
  0xf0   : > { %v672_v31 = vmax.f32 %v552_v27, 0.0  ;;  %v555_v32 = vadd.f32 %v4525_v30, %v5195_v2  ;;  %v546_v33 = vpop.f32.mrb[3].mxu0 }
  0xf1   : > { %v670_v34 = vmax.f32 %v544_v29, 0.0  ;;  %v547_v35 = vadd.f32 %v5195_v2, %v546_v33 }
  0xf2   : > { %712 = vst.msk [vmem:[#allocation2 + $0x63] sm:$0xff] %vm272_vm2, %v672_v31  ;;  %v673_v36 = vmax.f32 %v555_v32, 0.0  ;;  %v4540_v38 = vpop.f32.mrb[0].mxu1 }
  0xf3   : > { %710 = vst.msk [vmem:[#allocation2 + $0x4b] sm:$0xff] %vm272_vm2, %v670_v34  ;;  %v671_v37 = vmax.f32 %v547_v35, 0.0  ;;  %v616_v39 = vadd.f32 %v4540_v38, %v5195_v2  ;;  %v607_v40 = vpop.f32.mrb[1].mxu1 }
  0xf4   : > { %713 = vst.msk [vmem:[#allocation2 + $0x6b] sm:$0xff] %vm272_vm2, %v673_v36  ;;  %v608_v41 = vadd.f32 %v5195_v2, %v607_v40  ;;  %v4541_v42 = vpop.f32.mrb[2].mxu1 }
  0xf5   : > { %711 = vst.msk [vmem:[#allocation2 + $0x53] sm:$0xff] %vm272_vm2, %v671_v37  ;;  %v4528_v43 = vpop.f32.mrb[4].mxu0  ;;  %v688_v44 = vmax.f32 %v616_v39, 0.0  ;;  %v619_v45 = vadd.f32 %v4541_v42, %v5195_v2  ;;  %v610_v46 = vpop.f32.mrb[3].mxu1 }
  0xf6   : > { %v568_v47 = vadd.f32 %v4528_v43, %v5195_v2  ;;  %v559_v48 = vpop.f32.mrb[5].mxu0  ;;  %v686_v49 = vmax.f32 %v608_v41, 0.0  ;;  %v611_v50 = vadd.f32 %v5195_v2, %v610_v46 }
  0xf7   : > { %v560_v51 = vadd.f32 %v5195_v2, %v559_v48  ;;  %v4529_v52 = vpop.f32.mrb[6].mxu0  ;;  %728 = vst.msk [vmem:[#allocation2 + $0x123] sm:$0xff] %vm272_vm2, %v688_v44  ;;  %v689_v54 = vmax.f32 %v619_v45, 0.0 }
  0xf8   : > { %v676_v55 = vmax.f32 %v568_v47, 0.0  ;;  %v571_v56 = vadd.f32 %v4529_v52, %v5195_v2  ;;  %v562_v57 = vpop.f32.mrb[7].mxu0  ;;  %726 = vst.msk [vmem:[#allocation2 + $0x10b] sm:$0xff] %vm272_vm2, %v686_v49  ;;  %v687_v61 = vmax.f32 %v611_v50, 0.0 }
  0xf9   : > { %v937_v53 = vld [vmem:[#allocation2 + $0x62] sm:$0xff]  ;;  %v674_v62 = vmax.f32 %v560_v51, 0.0  ;;  %v563_v63 = vadd.f32 %v5195_v2, %v562_v57  ;;  %729 = vst.msk [vmem:[#allocation2 + $0x12b] sm:$0xff] %vm272_vm2, %v689_v54 }
  0xfa   : > { %v808_v59 = vld [vmem:[#allocation2 + $0x61] sm:$0xff]  ;;  %716 = vst.msk [vmem:[#allocation2 + $0x93] sm:$0xff] %vm272_vm2, %v676_v55  ;;  %v677_v5 = vmax.f32 %v571_v56, 0.0  ;;  %727 = vst.msk [vmem:[#allocation2 + $0x113] sm:$0xff] %vm272_vm2, %v687_v61  ;;  %v806_v13 = vld [vmem:[#allocation2 + $0x49] sm:$0xff] }
  0xfb   : > { %v938_v58 = vld [vmem:[#allocation2 + $0x6a] sm:$0xff]  ;;  %714 = vst.msk [vmem:[#allocation2 + $0x7b] sm:$0xff] %vm272_vm2, %v674_v62  ;;  %v675_v8 = vmax.f32 %v563_v63, 0.0  ;;  %v4544_v9 = vpop.f32.mrb[4].mxu1 }
  0xfc   : > { %v809_v60 = vld [vmem:[#allocation2 + $0x69] sm:$0xff]  ;;  %v968_v0 = vpack.c.bf16 %v938_v58, %v937_v53  ;;  %v807_v7 = vld [vmem:[#allocation2 + $0x51] sm:$0xff]  ;;  %717 = vst.msk [vmem:[#allocation2 + $0x9b] sm:$0xff] %vm272_vm2, %v677_v5  ;;  %v632_v10 = vadd.f32 %v4544_v9, %v5195_v2  ;;  %v623_v11 = vpop.f32.mrb[5].mxu1 }
  0xfd   : > { %v839_v1 = vpack.c.bf16 %v809_v60, %v808_v59  ;;  %v1067_v6 = vld [vmem:[#allocation2 + $0x6b] sm:$0xff]  ;;  %v1066_v12 = vld [vmem:[#allocation2 + $0x63] sm:$0xff]  ;;  %715 = vst.msk [vmem:[#allocation2 + $0x83] sm:$0xff] %vm272_vm2, %v675_v8  ;;  %v624_v14 = vadd.f32 %v5195_v2, %v623_v11  ;;  %v4545_v15 = vpop.f32.mrb[6].mxu1  ;;  %v838_v18 = vpack.c.bf16 %v807_v7, %v806_v13  ;;  %v1065_v25 = vld [vmem:[#allocation2 + $0x53] sm:$0xff] }
  0xfe   : > { %1001 = vrot.lane.b32.xlu1 %v968_v0, %s4813_s26  ;;  %v4532_v16 = vpop.f32.mrb[8].mxu0  ;;  %v1097_v17 = vpack.c.bf16 %v1067_v6, %v1066_v12  ;;  %v692_v19 = vmax.f32 %v632_v10, 0.0  ;;  %v635_v20 = vadd.f32 %v4545_v15, %v5195_v2  ;;  %v626_v21 = vpop.f32.mrb[7].mxu1  ;;  %v1195_v23 = vld [vmem:[#allocation2 + $0x64] sm:$0xff]  ;;  %v1196_v24 = vld [vmem:[#allocation2 + $0x6c] sm:$0xff]  ;;  %v1194_v42 = vld [vmem:[#allocation2 + $0x54] sm:$0xff] }
  0xff   : > { %872 = vrot.lane.b32.xlu0 %v839_v1, %s4814_s27  ;;  %v575_v22 = vpop.f32.mrb[9].mxu0  ;;  %v690_v26 = vmax.f32 %v624_v14, 0.0  ;;  %v627_v3 = vadd.f32 %v5195_v2, %v626_v21  ;;  %v584_v29 = vadd.f32 %v4532_v16, %v5195_v2  ;;  %v1064_v33 = vld [vmem:[#allocation2 + $0x4b] sm:$0xff]  ;;  %v1226_v36 = vpack.c.bf16 %v1196_v24, %v1195_v23  ;;  %v1323_v62 = vld [vmem:[#allocation2 + $0x55] sm:$0xff]  ;;  %v824_v9 = vld [vmem:[#allocation2 + $0x121] sm:$0xff] }
 0x100   : > { %v4533_v27 = vpop.f32.mrb[10].mxu0  ;;  %732 = vst.msk [vmem:[#allocation2 + $0x153] sm:$0xff] %vm272_vm2, %v692_v19  ;;  %v693_v28 = vmax.f32 %v635_v20, 0.0  ;;  %v576_v30 = vadd.f32 %v5195_v2, %v575_v22  ;;  %v1096_v37 = vpack.c.bf16 %v1065_v25, %v1064_v33  ;;  %v1324_v38 = vld [vmem:[#allocation2 + $0x65] sm:$0xff]  ;;  %v1325_v39 = vld [vmem:[#allocation2 + $0x6d] sm:$0xff] }
 0x101   : > { %v587_v31 = vadd.f32 %v4533_v27, %v5195_v2  ;;  %v578_v32 = vpop.f32.mrb[11].mxu0  ;;  %730 = vst.msk [vmem:[#allocation2 + $0x13b] sm:$0xff] %vm272_vm2, %v690_v26  ;;  %v691_v34 = vmax.f32 %v627_v3, 0.0  ;;  %v680_v40 = vmax.f32 %v584_v29, 0.0  ;;  %v1193_v41 = vld [vmem:[#allocation2 + $0x4c] sm:$0xff]  ;;  %v1355_v49 = vpack.c.bf16 %v1325_v39, %v1324_v38  ;;  %v953_v23 = vld [vmem:[#allocation2 + $0x122] sm:$0xff] }
 0x102   : > { %1130 = vrot.lane.b32.xlu1 %v1097_v17, %s4815_s28  ;;  %v579_v35 = vadd.f32 %v5195_v2, %v578_v32  ;;  %733 = vst.msk [vmem:[#allocation2 + $0x15b] sm:$0xff] %vm272_vm2, %v693_v28  ;;  %v678_v43 = vmax.f32 %v576_v30, 0.0  ;;  %v1225_v53 = vpack.c.bf16 %v1194_v42, %v1193_v41  ;;  %v1453_v54 = vld [vmem:[#allocation2 + $0x66] sm:$0xff]  ;;  %v1454_v60 = vld [vmem:[#allocation2 + $0x6e] sm:$0xff] }
 0x103   : > { %870 = vrot.lane.b32.xlu0 %v838_v18, %s4814_s27  ;;  %731 = vst.msk [vmem:[#allocation2 + $0x143] sm:$0xff] %vm272_vm2, %v691_v34  ;;  %v681_v44 = vmax.f32 %v587_v31, 0.0  ;;  %v4548_v45 = vpop.f32.mrb[8].mxu1  ;;  %720 = vst.msk [vmem:[#allocation2 + $0xc3] sm:$0xff] %vm272_vm2, %v680_v40  ;;  %v1322_v61 = vld [vmem:[#allocation2 + $0x4d] sm:$0xff]  ;;  %v1484_v13 = vpack.c.bf16 %v1454_v60, %v1453_v54  ;;  %v1452_v18 = vld [vmem:[#allocation2 + $0x56] sm:$0xff] }
 0x104   : > { %v679_v46 = vmax.f32 %v579_v35, 0.0  ;;  %v648_v47 = vadd.f32 %v4548_v45, %v5195_v2  ;;  %v639_v48 = vpop.f32.mrb[9].mxu1  ;;  %718 = vst.msk [vmem:[#allocation2 + $0xab] sm:$0xff] %vm272_vm2, %v678_v43  ;;  %v825_v10 = vld [vmem:[#allocation2 + $0x129] sm:$0xff]  ;;  %v1354_v14 = vpack.c.bf16 %v1323_v62, %v1322_v61  ;;  %v823_v26 = vld [vmem:[#allocation2 + $0x111] sm:$0xff]  ;;  %v760_v62 = vld [vmem:[#allocation2 + $0x120] sm:$0xff] }
 0x105   : > { %721 = vst.msk [vmem:[#allocation2 + $0xcb] sm:$0xff] %vm272_vm2, %v681_v44  ;;  %v640_v50 = vadd.f32 %v5195_v2, %v639_v48  ;;  %v4549_v51 = vpop.f32.mrb[10].mxu1  ;;  %v1451_v17 = vld [vmem:[#allocation2 + $0x4e] sm:$0xff]  ;;  %v847_v20 = vpack.c.bf16 %v825_v10, %v824_v9  ;;  %v1082_v28 = vld [vmem:[#allocation2 + $0x123] sm:$0xff]  ;;  %v1468_v60 = vld [vmem:[#allocation2 + $0x116] sm:$0xff] }
 0x106   : > { %1259 = vrot.lane.b32.xlu1 %v1226_v36, %s4816_s29  ;;  %v4536_v52 = vpop.f32.mrb[12].mxu0  ;;  %719 = vst.msk [vmem:[#allocation2 + $0xb3] sm:$0xff] %vm272_vm2, %v679_v46  ;;  %v696_v55 = vmax.f32 %v648_v47, 0.0  ;;  %v651_v56 = vadd.f32 %v4549_v51, %v5195_v2  ;;  %v642_v57 = vpop.f32.mrb[11].mxu1  ;;  %v1483_v22 = vpack.c.bf16 %v1452_v18, %v1451_v17  ;;  %v954_v24 = vld [vmem:[#allocation2 + $0x12a] sm:$0xff]  ;;  %v952_v31 = vld [vmem:[#allocation2 + $0x112] sm:$0xff] }
 0x107   : > { %1128 = vrot.lane.b32.xlu0 %v1096_v37, %s4815_s28  ;;  %v600_v58 = vadd.f32 %v4536_v52, %v5195_v2  ;;  %v591_v59 = vpop.f32.mrb[13].mxu0  ;;  %v694_v63 = vmax.f32 %v640_v50, 0.0  ;;  %v643_v0 = vadd.f32 %v5195_v2, %v642_v57  ;;  %v822_v25 = vld [vmem:[#allocation2 + $0x109] sm:$0xff]  ;;  %v976_v3 = vpack.c.bf16 %v954_v24, %v953_v23  ;;  %v1081_v37 = vld [vmem:[#allocation2 + $0x113] sm:$0xff]  ;;  %v744_v47 = vld [vmem:[#allocation2 + $0x60] sm:$0xff] }
 0x108   : > { %v4537_v1 = vpop.f32.mrb[14].mxu0  ;;  %736 = vst.msk [vmem:[#allocation2 + $0x183] sm:$0xff] %vm272_vm2, %v696_v55  ;;  %v697_v5 = vmax.f32 %v651_v56, 0.0  ;;  %v592_v7 = vadd.f32 %v5195_v2, %v591_v59  ;;  %v846_v27 = vpack.c.bf16 %v823_v26, %v822_v25  ;;  %v1083_v29 = vld [vmem:[#allocation2 + $0x12b] sm:$0xff]  ;;  %v1210_v43 = vld [vmem:[#allocation2 + $0x114] sm:$0xff]  ;;  %v940_v18 = vld [vmem:[#allocation2 + $0x82] sm:$0xff] }
 0x109   : > { %v684_v6 = vmax.f32 %v600_v58, 0.0  ;;  %v594_v8 = vpop.f32.mrb[15].mxu0  ;;  %734 = vst.msk [vmem:[#allocation2 + $0x16b] sm:$0xff] %vm272_vm2, %v694_v63  ;;  %v695_v11 = vmax.f32 %v643_v0, 0.0  ;;  %v603_v12 = vadd.f32 %v4537_v1, %v5195_v2  ;;  %v951_v30 = vld [vmem:[#allocation2 + $0x10a] sm:$0xff]  ;;  %v1105_v32 = vpack.c.bf16 %v1083_v29, %v1082_v28  ;;  %v1339_v51 = vld [vmem:[#allocation2 + $0x115] sm:$0xff] }
 0x10a   : > { %1388 = vrot.lane.b32.xlu1 %v1355_v49, %s4817_s30  ;;  %737 = vst.msk [vmem:[#allocation2 + $0x18b] sm:$0xff] %vm272_vm2, %v697_v5  ;;  %v682_v15 = vmax.f32 %v592_v7, 0.0  ;;  %v595_v16 = vadd.f32 %v5195_v2, %v594_v8  ;;  %v975_v33 = vpack.c.bf16 %v952_v31, %v951_v30  ;;  %v1080_v34 = vld [vmem:[#allocation2 + $0x10b] sm:$0xff]  ;;  %v813_v5 = vld [vmem:[#allocation2 + $0x99] sm:$0xff]  ;;  %v811_v8 = vld [vmem:[#allocation2 + $0x81] sm:$0xff] }
 0x10b   : > { %1257 = vrot.lane.b32.xlu0 %v1225_v53, %s4816_s29  ;;  %724 = vst.msk [vmem:[#allocation2 + $0xf3] sm:$0xff] %vm272_vm2, %v684_v6  ;;  %735 = vst.msk [vmem:[#allocation2 + $0x173] sm:$0xff] %vm272_vm2, %v695_v11  ;;  %v685_v19 = vmax.f32 %v603_v12, 0.0  ;;  %v1211_v35 = vld [vmem:[#allocation2 + $0x124] sm:$0xff]  ;;  %v1212_v36 = vld [vmem:[#allocation2 + $0x12c] sm:$0xff]  ;;  %v1104_v39 = vpack.c.bf16 %v1081_v37, %v1080_v34 }
 0x10c   : > { %722 = vst.msk [vmem:[#allocation2 + $0xdb] sm:$0xff] %vm272_vm2, %v682_v15  ;;  %v683_v21 = vmax.f32 %v595_v16, 0.0  ;;  %v1234_v38 = vpack.c.bf16 %v1212_v36, %v1211_v35  ;;  %v1340_v40 = vld [vmem:[#allocation2 + $0x125] sm:$0xff]  ;;  %v1341_v41 = vld [vmem:[#allocation2 + $0x12d] sm:$0xff]  ;;  %v810_v7 = vld [vmem:[#allocation2 + $0x79] sm:$0xff] }
 0x10d   : > { %725 = vst.msk [vmem:[#allocation2 + $0xfb] sm:$0xff] %vm272_vm2, %v685_v19  ;;  %v1209_v42 = vld [vmem:[#allocation2 + $0x10c] sm:$0xff]  ;;  %v1363_v44 = vpack.c.bf16 %v1341_v41, %v1340_v40  ;;  %v942_v16 = vld [vmem:[#allocation2 + $0x9a] sm:$0xff]  ;;  %v4733_v19 = vld [vmem:[%s6636_s2 + $0x4] sm:$0xff]  }
 0x10e   : > { %1517 = vrot.lane.b32.xlu1 %v1484_v13, %s4818_s4  ;;  %723 = vst.msk [vmem:[#allocation2 + $0xe3] sm:$0xff] %vm272_vm2, %v683_v21  ;;  %v1233_v45 = vpack.c.bf16 %v1210_v43, %v1209_v42  ;;  %v1469_v46 = vld [vmem:[#allocation2 + $0x126] sm:$0xff]  ;;  %v1470_v49 = vld [vmem:[#allocation2 + $0x12e] sm:$0xff]  ;;  %v939_v17 = vld [vmem:[#allocation2 + $0x7a] sm:$0xff]  ;;  %4554 = vmatprep.subr.bf16.mxu1 %v4733_v19 }
 0x10f   : > { %1386 = vrot.lane.b32.xlu0 %v1354_v14, %s4817_s30  ;;  %v745_v48 = vld [vmem:[#allocation2 + $0x68] sm:$0xff]  ;;  %v743_v54 = vld [vmem:[#allocation2 + $0x50] sm:$0xff]  ;;  %v1492_v56 = vpack.c.bf16 %v1470_v49, %v1469_v46  ;;  %v840_v14 = vpack.c.bf16 %v811_v8, %v810_v7  ;;  %v969_v21 = vpack.c.bf16 %v940_v18, %v939_v17  ;;  %v1071_v23 = vld [vmem:[#allocation2 + $0x9b] sm:$0xff]  ;;  %4555 = vmatpush3.bf16.msra.mxu1 %v4733_v19 }
 0x110   : > { %v1338_v50 = vld [vmem:[#allocation2 + $0x10d] sm:$0xff]  ;;  %v775_v52 = vpack.c.bf16 %v745_v48, %v744_v47  ;;  %v1068_v24 = vld [vmem:[#allocation2 + $0x7b] sm:$0xff]  ;;  %v1069_v25 = vld [vmem:[#allocation2 + $0x83] sm:$0xff] }
 0x111   : > { %v742_v53 = vld [vmem:[#allocation2 + $0x48] sm:$0xff]  ;;  %v1362_v57 = vpack.c.bf16 %v1339_v51, %v1338_v50  ;;  %v936_v58 = vld [vmem:[#allocation2 + $0x52] sm:$0xff]  ;;  %v747_v35 = vld [vmem:[#allocation2 + $0x80] sm:$0xff] }
 0x112   : > { %888 = vrot.lane.b32.xlu1 %v847_v20, %s4814_s27  ;;  %791 = vst.msk [vmem:[#allocation3 + $0x8] sm:$0xff] %vm272_vm2, %v775_v52  ;;  %v774_v55 = vpack.c.bf16 %v743_v54, %v742_v53  ;;  %v1467_v59 = vld [vmem:[#allocation2 + $0x10e] sm:$0xff]  ;;  %v749_v29 = vld [vmem:[#allocation2 + $0x98] sm:$0xff]  ;;  %v1198_v37 = vld [vmem:[#allocation2 + $0x84] sm:$0xff] }
 0x113   : > { %1515 = vrot.lane.b32.xlu0 %v1483_v22, %s4818_s4  ;;  %v935_v61 = vld [vmem:[#allocation2 + $0x4a] sm:$0xff]  ;;  %v1491_v0 = vpack.c.bf16 %v1468_v60, %v1467_v59  ;;  %v941_v15 = vld [vmem:[#allocation2 + $0x92] sm:$0xff]  ;;  %v5300_v41 = vld [vmem:[#allocation2 + $0x7d] sm:$0xff] }
 0x114   : > { %790 = vst.msk [vmem:[#allocation3] sm:$0xff] %vm272_vm2, %v774_v55  ;;  %v967_v63 = vpack.c.bf16 %v936_v58, %v935_v61  ;;  %v812_v1 = vld [vmem:[#allocation2 + $0x91] sm:$0xff]  ;;  %v761_v6 = vld [vmem:[#allocation2 + $0x128] sm:$0xff]  ;;  %v970_v20 = vpack.c.bf16 %v942_v16, %v941_v15  ;;  %v4736_v43 = vld [vmem:[%s6636_s2 + $0x1c] ss:$0 sps:$4 sm:$0xff]  }
 0x115   : > { %v783_v9 = vpack.c.bf16 %v761_v6, %v760_v62  ;;  %v758_v10 = vld [vmem:[#allocation2 + $0x108] sm:$0xff]  ;;  %v759_v11 = vld [vmem:[#allocation2 + $0x110] sm:$0xff]  ;;  %v841_v13 = vpack.c.bf16 %v813_v5, %v812_v1  ;;  %v746_v30 = vld [vmem:[#allocation2 + $0x78] sm:$0xff]  ;;  %v1673_v16 = vsel %vm1671_vm5, %v4736_v43, 0 }
 0x116   : > { %1017 = vrot.lane.b32.xlu1 %v976_v3, %s4813_s26  ;;  %v782_v12 = vpack.c.bf16 %v759_v11, %v758_v10  ;;  %v1070_v22 = vld [vmem:[#allocation2 + $0x93] sm:$0xff]  ;;  %v776_v40 = vpack.c.bf16 %v747_v35, %v746_v30  ;;  %v1327_v42 = vld [vmem:[#allocation2 + $0x85] sm:$0xff] }
 0x117   : > { %886 = vrot.lane.b32.xlu0 %v846_v27, %s4814_s27  ;;  %799 = vst.msk [vmem:[#allocation3 + $0x48] sm:$0xff] %vm272_vm2, %v783_v9  ;;  %v4734_v26 = vld [vmem:[%s6636_s2 + $0xc] sm:$0xff]   ;;  %v1199_v3 = vld [vmem:[#allocation2 + $0x94] sm:$0xff]  ;;  %v1200_v27 = vld [vmem:[#allocation2 + $0x9c] sm:$0xff]  ;;  %v1099_v31 = vpack.c.bf16 %v1071_v23, %v1070_v22  ;;  %v1356_v8 = vpack.c.bf16 %v1327_v42, %v5300_v41 }
 0x118   : > { %798 = vst.msk [vmem:[#allocation3 + $0x40] sm:$0xff] %vm272_vm2, %v782_v12  ;;  %v748_v28 = vld [vmem:[#allocation2 + $0x90] sm:$0xff]  ;;  %4556 = vmatprep.subr.bf16.mxu1 %v4734_v26  ;;  %792 = vst.msk [vmem:[#allocation3 + $0x10] sm:$0xff] %vm272_vm2, %v776_v40  ;;  %v762_v47 = vld [vmem:[#allocation2 + $0x138] sm:$0xff]  ;;  %v1228_v50 = vpack.c.bf16 %v1200_v27, %v1199_v3 }
 0x119   : > { %v777_v34 = vpack.c.bf16 %v749_v29, %v748_v28  ;;  %v4735_v36 = vld [vmem:[%s6636_s2 + $0x14] sm:$0xff]   ;;  %4557 = vmatpush3.bf16.msra.mxu1 %v4734_v26  ;;  %v763_v48 = vld [vmem:[#allocation2 + $0x140] sm:$0xff]  ;;  %v753_v53 = vld [vmem:[#allocation2 + $0xc8] sm:$0xff] }
 0x11a   : > { %1146 = vrot.lane.b32.xlu1 %v1105_v32, %s4815_s28  ;;  %v1098_v32 = vpack.c.bf16 %v1069_v25, %v1068_v24  ;;  %v752_v49 = vld [vmem:[#allocation2 + $0xc0] sm:$0xff]  ;;  %4558 = vmatprep.subr.bf16.mxu1 %v4735_v36  ;;  %v784_v52 = vpack.c.bf16 %v763_v48, %v762_v47  ;;  %v750_v54 = vld [vmem:[#allocation2 + $0xa8] sm:$0xff]  ;;  %v751_v55 = vld [vmem:[#allocation2 + $0xb0] sm:$0xff] }
 0x11b   : > { %1015 = vrot.lane.b32.xlu0 %v975_v33, %s4813_s26  ;;  %v1197_v33 = vld [vmem:[#allocation2 + $0x7c] sm:$0xff]  ;;  %793 = vst.msk [vmem:[#allocation3 + $0x18] sm:$0xff] %vm272_vm2, %v777_v34  ;;  %v778_v58 = vpack.c.bf16 %v751_v55, %v750_v54  ;;  %v769_v60 = vld [vmem:[#allocation2 + $0x188] sm:$0xff]  ;;  %v767_v5 = vld [vmem:[#allocation2 + $0x170] sm:$0xff] }
 0x11c   : > { %v1227_v51 = vpack.c.bf16 %v1198_v37, %v1197_v33  ;;  %v768_v59 = vld [vmem:[#allocation2 + $0x180] sm:$0xff]  ;;  %v766_v61 = vld [vmem:[#allocation2 + $0x168] sm:$0xff]  ;;  %800 = vst.msk [vmem:[#allocation3 + $0x50] sm:$0xff] %vm272_vm2, %v784_v52  ;;  %v756_v6 = vld [vmem:[#allocation2 + $0xf0] sm:$0xff] }
 0x11d   : > { %v787_v1 = vpack.c.bf16 %v769_v60, %v768_v59  ;;  %v757_v7 = vld [vmem:[#allocation2 + $0xf8] sm:$0xff]  ;;  %4559 = vmatpush3.bf16.msra.mxu1 %v4735_v36  ;;  %794 = vst.msk [vmem:[#allocation3 + $0x20] sm:$0xff] %vm272_vm2, %v778_v58  ;;  %v786_v11 = vpack.c.bf16 %v767_v5, %v766_v61  ;;  %v1456_v23 = vld [vmem:[#allocation2 + $0x86] sm:$0xff] }
 0x11e   : > { %1275 = vrot.lane.b32.xlu1 %v1234_v38, %s4816_s29  ;;  %v5294_v38 = vld [vmem:[#allocation2 + $0x95] sm:$0xff]  ;;  %v781_v12 = vpack.c.bf16 %v757_v7, %v756_v6  ;;  %4712 = vmatprep.subr.msk.bf16.mxu1 %vm1671_vm5, %v4736_v43  ;;  %v1455_v22 = vld [vmem:[#allocation2 + $0x7e] sm:$0xff]  ;;  %v1472_v61 = vld [vmem:[#allocation2 + $0x146] sm:$0xff]  ;;  %vm2740_vm5 = vcmask 917248  }
 0x11f   : > { %1144 = vrot.lane.b32.xlu0 %v1104_v39, %s4815_s28  ;;  %v5296_v39 = vld [vmem:[#allocation2 + $0x9d] sm:$0xff]  ;;  %803 = vst.msk [vmem:[#allocation3 + $0x68] sm:$0xff] %vm272_vm2, %v787_v1  ;;  %802 = vst.msk [vmem:[#allocation3 + $0x60] sm:$0xff] %vm272_vm2, %v786_v11  ;;  %v1485_v28 = vpack.c.bf16 %v1456_v23, %v1455_v22  ;;  %v957_v34 = vld [vmem:[#allocation2 + $0x152] sm:$0xff] }
 0x120   : > { %v1357_v62 = vpack.c.bf16 %v5296_v39, %v5294_v38  ;;  %v1457_v15 = vld [vmem:[#allocation2 + $0x96] sm:$0xff]  ;;  %797 = vst.msk [vmem:[#allocation3 + $0x38] sm:$0xff] %vm272_vm2, %v781_v12  ;;  %v956_v37 = vld [vmem:[#allocation2 + $0x142] sm:$0xff]  ;;  %v943_v11 = vld [vmem:[#allocation2 + $0xaa] sm:$0xff] }
 0x121   : > { %4561 = vmatpush3.bf16.msra.mxu1 %v1673_v16  ;;  %v829_v29 = vld [vmem:[#allocation2 + $0x159] sm:$0xff]  ;;  %v1085_v43 = vld [vmem:[#allocation2 + $0x143] sm:$0xff]  ;;  %v815_v6 = vld [vmem:[#allocation2 + $0xb1] sm:$0xff] }
 0x122   : > { %1404 = vrot.lane.b32.xlu1 %v1363_v44, %s4817_s30  ;;  %v764_v44 = vld [vmem:[#allocation2 + $0x150] sm:$0xff]  ;;  %v826_v30 = vld [vmem:[#allocation2 + $0x139] sm:$0xff]  ;;  %v1343_v55 = vld [vmem:[#allocation2 + $0x145] sm:$0xff] }
 0x123   : > { %1273 = vrot.lane.b32.xlu0 %v1233_v45, %s4816_s29  ;;  %v765_v45 = vld [vmem:[#allocation2 + $0x158] sm:$0xff]  ;;  %v817_v1 = vld [vmem:[#allocation2 + $0xc9] sm:$0xff] }
 0x124   : > { %v785_v46 = vpack.c.bf16 %v765_v45, %v764_v44  ;;  %v958_v35 = vld [vmem:[#allocation2 + $0x15a] sm:$0xff]  ;;  %v814_v5 = vld [vmem:[#allocation2 + $0xa9] sm:$0xff]  ;;  %v944_v12 = vld [vmem:[#allocation2 + $0xb2] sm:$0xff] }
 0x125   : > { %v955_v36 = vld [vmem:[#allocation2 + $0x13a] sm:$0xff]  ;;  %v978_v38 = vpack.c.bf16 %v958_v35, %v957_v34  ;;  %v1075_v16 = vld [vmem:[#allocation2 + $0xcb] sm:$0xff] }
 0x126   : > { %1533 = vrot.lane.b32.xlu1 %v1492_v56, %s4818_s4  ;;  %801 = vst.msk [vmem:[#allocation3 + $0x58] sm:$0xff] %vm272_vm2, %v785_v46  ;;  %v4552_v56 = vpop.f32.mrb[12].mxu1  ;;  %v977_v39 = vpack.c.bf16 %v956_v37, %v955_v36  ;;  %v1086_v40 = vld [vmem:[#allocation2 + $0x153] sm:$0xff]  ;;  %v1087_v41 = vld [vmem:[#allocation2 + $0x15b] sm:$0xff] }
 0x127   : > { %1402 = vrot.lane.b32.xlu0 %v1362_v57, %s4817_s30  ;;  %v779_v57 = vpack.c.bf16 %v753_v53, %v752_v49  ;;  %v1084_v42 = vld [vmem:[#allocation2 + $0x13b] sm:$0xff]  ;;  %v1107_v44 = vpack.c.bf16 %v1087_v41, %v1086_v40  ;;  %v1214_v49 = vld [vmem:[#allocation2 + $0x144] sm:$0xff]  ;;  %v1204_v22 = vld [vmem:[#allocation2 + $0xcc] sm:$0xff] }
 0x128   : > { %v1106_v45 = vpack.c.bf16 %v1085_v43, %v1084_v42  ;;  %v1215_v46 = vld [vmem:[#allocation2 + $0x154] sm:$0xff]  ;;  %v1216_v47 = vld [vmem:[#allocation2 + $0x15c] sm:$0xff]  ;;  %v1201_v23 = vld [vmem:[#allocation2 + $0xac] sm:$0xff] }
 0x129   : > { %795 = vst.msk [vmem:[#allocation3 + $0x28] sm:$0xff] %vm272_vm2, %v779_v57  ;;  %v1213_v48 = vld [vmem:[#allocation2 + $0x13c] sm:$0xff]  ;;  %v833_v40 = vld [vmem:[#allocation2 + $0x189] sm:$0xff]  ;;  %v831_v42 = vld [vmem:[#allocation2 + $0x171] sm:$0xff] }
 0x12a   : > { %999 = vrot.lane.b32.xlu1 %v967_v63, %s4813_s26  ;;  %v664_v63 = vadd.f32 %v4552_v56, %v5195_v2  ;;  %v1344_v52 = vld [vmem:[#allocation2 + $0x155] sm:$0xff]  ;;  %v1345_v53 = vld [vmem:[#allocation2 + $0x15d] sm:$0xff]  ;;  %v830_v41 = vld [vmem:[#allocation2 + $0x169] sm:$0xff] }
 0x12b   : > { %1531 = vrot.lane.b32.xlu0 %v1491_v0, %s4818_s4  ;;  %v655_v0 = vpop.f32.mrb[13].mxu1  ;;  %v1342_v54 = vld [vmem:[#allocation2 + $0x13d] sm:$0xff]  ;;  %v1365_v56 = vpack.c.bf16 %v1345_v53, %v1344_v52 }
 0x12c   : > { %v656_v9 = vadd.f32 %v5195_v2, %v655_v0  ;;  %v4553_v10 = vpop.f32.mrb[14].mxu1  ;;  %v700_v17 = vmax.f32 %v664_v63, 0.0  ;;  %v1364_v57 = vpack.c.bf16 %v1343_v55, %v1342_v54  ;;  %v1473_v58 = vld [vmem:[#allocation2 + $0x156] sm:$0xff]  ;;  %v1474_v59 = vld [vmem:[#allocation2 + $0x15e] sm:$0xff] }
 0x12d   : > { %v667_v18 = vadd.f32 %v4553_v10, %v5195_v2  ;;  %v658_v19 = vpop.f32.mrb[15].mxu1  ;;  %v1471_v60 = vld [vmem:[#allocation2 + $0x13e] sm:$0xff]  ;;  %v946_v10 = vld [vmem:[#allocation2 + $0xca] sm:$0xff]  ;;  %v1460_v34 = vld [vmem:[#allocation2 + $0xb6] sm:$0xff] }
 0x12e   : > { %876 = vrot.lane.b32.xlu1 %v841_v13, %s4814_s27  ;;  %v754_v13 = vld [vmem:[#allocation2 + $0xd8] sm:$0xff]  ;;  %v698_v24 = vmax.f32 %v656_v9, 0.0  ;;  %v659_v25 = vadd.f32 %v5195_v2, %v658_v19  ;;  %740 = vst.msk [vmem:[#allocation2 + $0x1b3] sm:$0xff] %vm272_vm2, %v700_v17  ;;  %v1493_v63 = vpack.c.bf16 %v1472_v61, %v1471_v60  ;;  %v816_v0 = vld [vmem:[#allocation2 + $0xc1] sm:$0xff]  ;;  %v1072_v17 = vld [vmem:[#allocation2 + $0xab] sm:$0xff] }
 0x12f   : > { %874 = vrot.lane.b32.xlu0 %v840_v14, %s4814_s27  ;;  %v755_v14 = vld [vmem:[#allocation2 + $0xe0] sm:$0xff]  ;;  %v701_v26 = vmax.f32 %v667_v18, 0.0  ;;  %v828_v2 = vld [vmem:[#allocation2 + $0x151] sm:$0xff]  ;;  %v843_v7 = vpack.c.bf16 %v817_v1, %v816_v0 }
 0x130   : > { %738 = vst.msk [vmem:[#allocation2 + $0x19b] sm:$0xff] %vm272_vm2, %v698_v24  ;;  %v699_v3 = vmax.f32 %v659_v25, 0.0  ;;  %v945_v9 = vld [vmem:[#allocation2 + $0xc2] sm:$0xff]  ;;  %v1073_v18 = vld [vmem:[#allocation2 + $0xb3] sm:$0xff] }
 0x131   : > { %741 = vst.msk [vmem:[#allocation2 + $0x1bb] sm:$0xff] %vm272_vm2, %v701_v26  ;;  %v1202_v24 = vld [vmem:[#allocation2 + $0xb4] sm:$0xff]  ;;  %v1090_v55 = vld [vmem:[#allocation2 + $0x183] sm:$0xff]  ;;  %v1220_v0 = vld [vmem:[#allocation2 + $0x18c] sm:$0xff] }
 0x132   : > { %1005 = vrot.lane.b32.xlu1 %v970_v20, %s4813_s26  ;;  %v780_v20 = vpack.c.bf16 %v755_v14, %v754_v13  ;;  %739 = vst.msk [vmem:[#allocation2 + $0x1a3] sm:$0xff] %vm272_vm2, %v699_v3  ;;  %v972_v13 = vpack.c.bf16 %v946_v10, %v945_v9  ;;  %v971_v14 = vpack.c.bf16 %v944_v12, %v943_v11  ;;  %v1332_v3 = vld [vmem:[#allocation2 + $0xc5] sm:$0xff]  ;;  %v820_v10 = vld [vmem:[#allocation2 + $0xf1] sm:$0xff]  ;;  %v821_v11 = vld [vmem:[#allocation2 + $0xf9] sm:$0xff] }
 0x133   : > { %1003 = vrot.lane.b32.xlu0 %v969_v21, %s4813_s26  ;;  %v1458_v21 = vld [vmem:[#allocation2 + $0x9e] sm:$0xff]  ;;  %v1229_v26 = vpack.c.bf16 %v1202_v24, %v1201_v23  ;;  %v1217_v1 = vld [vmem:[#allocation2 + $0x16c] sm:$0xff] }
 0x134   : > { %796 = vst.msk [vmem:[#allocation3 + $0x30] sm:$0xff] %vm272_vm2, %v780_v20  ;;  %v1486_v27 = vpack.c.bf16 %v1458_v21, %v1457_v15  ;;  %v1074_v15 = vld [vmem:[#allocation2 + $0xc3] sm:$0xff]  ;;  %v1100_v20 = vpack.c.bf16 %v1073_v18, %v1072_v17  ;;  %v818_v12 = vld [vmem:[#allocation2 + $0xd9] sm:$0xff] }
 0x135   : > { %v1101_v19 = vpack.c.bf16 %v1075_v16, %v1074_v15  ;;  %v1203_v21 = vld [vmem:[#allocation2 + $0xc4] sm:$0xff]  ;;  %v845_v16 = vpack.c.bf16 %v821_v11, %v820_v10  ;;  %v949_v18 = vld [vmem:[#allocation2 + $0xf2] sm:$0xff] }
 0x136   : > { %1134 = vrot.lane.b32.xlu1 %v1099_v31, %s4815_s28  ;;  %v827_v31 = vld [vmem:[#allocation2 + $0x141] sm:$0xff]  ;;  %v1230_v25 = vpack.c.bf16 %v1204_v22, %v1203_v21  ;;  %v772_v24 = vld [vmem:[#allocation2 + $0x1b0] sm:$0xff] }
 0x137   : > { %1132 = vrot.lane.b32.xlu0 %v1098_v32, %s4815_s28  ;;  %v849_v32 = vpack.c.bf16 %v829_v29, %v828_v2  ;;  %v848_v33 = vpack.c.bf16 %v827_v31, %v826_v30  ;;  %v1331_v2 = vld [vmem:[#allocation2 + $0xb5] sm:$0xff]  ;;  %v1461_v31 = vld [vmem:[#allocation2 + $0xc6] sm:$0xff] }
 0x138   : > { %v948_v21 = vld [vmem:[#allocation2 + $0xe2] sm:$0xff]  ;;  %v770_v22 = vld [vmem:[#allocation2 + $0x198] sm:$0xff] }
 0x139   : > { %v771_v23 = vld [vmem:[#allocation2 + $0x1a0] sm:$0xff] }
 0x13a   : > { %1263 = vrot.lane.b32.xlu1 %v1228_v50, %s4816_s29  ;;  %v1236_v50 = vpack.c.bf16 %v1216_v47, %v1215_v46  ;;  %v850_v46 = vpack.c.bf16 %v831_v42, %v830_v41  ;;  %v961_v47 = vld [vmem:[#allocation2 + $0x182] sm:$0xff] }
 0x13b   : > { %1261 = vrot.lane.b32.xlu0 %v1227_v51, %s4816_s29  ;;  %v1235_v51 = vpack.c.bf16 %v1214_v49, %v1213_v48  ;;  %v962_v48 = vld [vmem:[#allocation2 + $0x18a] sm:$0xff] }
 0x13c   : > { %v959_v49 = vld [vmem:[#allocation2 + $0x16a] sm:$0xff]  ;;  %v980_v53 = vpack.c.bf16 %v962_v48, %v961_v47  ;;  %v1337_v47 = vld [vmem:[#allocation2 + $0xfd] sm:$0xff] }
 0x13d   : > { %v1206_v41 = vld [vmem:[#allocation2 + $0xe4] sm:$0xff] }
 0x13e   : > { %1392 = vrot.lane.b32.xlu1 %v1357_v62, %s4817_s30  ;;  %v1494_v62 = vpack.c.bf16 %v1474_v59, %v1473_v58  ;;  %v1089_v58 = vld [vmem:[#allocation2 + $0x173] sm:$0xff]  ;;  %v1334_v48 = vld [vmem:[#allocation2 + $0xdd] sm:$0xff] }
 0x13f   : > { %1390 = vrot.lane.b32.xlu0 %v1356_v8, %s4817_s30  ;;  %v842_v8 = vpack.c.bf16 %v815_v6, %v814_v5  ;;  %v1218_v5 = vld [vmem:[#allocation2 + $0x174] sm:$0xff] }
 0x140   : > { %v1237_v9 = vpack.c.bf16 %v1218_v5, %v1217_v1  ;;  %v1349_v1 = vld [vmem:[#allocation2 + $0x18d] sm:$0xff] }
 0x141   : > { %v1346_v5 = vld [vmem:[#allocation2 + $0x16d] sm:$0xff] }
 0x142   : > { %1521 = vrot.lane.b32.xlu1 %v1486_v27, %s4818_s4  ;;  %v1333_v27 = vld [vmem:[#allocation2 + $0xcd] sm:$0xff] }
 0x143   : > { %1519 = vrot.lane.b32.xlu0 %v1485_v28, %s4818_s4  ;;  %v1330_v28 = vld [vmem:[#allocation2 + $0xad] sm:$0xff]  ;;  %v1359_v29 = vpack.c.bf16 %v1333_v27, %v1332_v3 }
 0x144   : > { %v1358_v30 = vpack.c.bf16 %v1331_v2, %v1330_v28  ;;  %v1078_v28 = vld [vmem:[#allocation2 + $0xf3] sm:$0xff]  ;;  %v788_v2 = vpack.c.bf16 %v771_v23, %v770_v22 }
 0x146   : > { %892 = vrot.lane.b32.xlu1 %v849_v32, %s4814_s27  ;;  %v1462_v32 = vld [vmem:[#allocation2 + $0xce] sm:$0xff]  ;;  %804 = vst.msk [vmem:[#allocation3 + $0x70] sm:$0xff] %vm272_vm2, %v788_v2 }
 0x147   : > { %890 = vrot.lane.b32.xlu0 %v848_v33, %s4814_s27  ;;  %v1459_v33 = vld [vmem:[#allocation2 + $0xae] sm:$0xff]  ;;  %v1488_v37 = vpack.c.bf16 %v1462_v32, %v1461_v31  ;;  %v1076_v31 = vld [vmem:[#allocation2 + $0xdb] sm:$0xff]  ;;  %v1077_v32 = vld [vmem:[#allocation2 + $0xe3] sm:$0xff] }
 0x14a   : > { %1021 = vrot.lane.b32.xlu1 %v978_v38, %s4813_s26  ;;  %v1487_v38 = vpack.c.bf16 %v1460_v34, %v1459_v33 }
 0x14b   : > { %1019 = vrot.lane.b32.xlu0 %v977_v39, %s4813_s26  ;;  %v832_v39 = vld [vmem:[#allocation2 + $0x181] sm:$0xff] }
 0x14e   : > { %1150 = vrot.lane.b32.xlu1 %v1107_v44, %s4815_s28 }
 0x14f   : > { %1148 = vrot.lane.b32.xlu0 %v1106_v45, %s4815_s28  ;;  %v851_v45 = vpack.c.bf16 %v833_v40, %v832_v39  ;;  %v1208_v39 = vld [vmem:[#allocation2 + $0xfc] sm:$0xff] }
 0x150   : > { %v1205_v40 = vld [vmem:[#allocation2 + $0xdc] sm:$0xff] }
 0x152   : > { %1279 = vrot.lane.b32.xlu1 %v1236_v50, %s4816_s29  ;;  %v960_v50 = vld [vmem:[#allocation2 + $0x172] sm:$0xff] }
 0x153   : > { %1277 = vrot.lane.b32.xlu0 %v1235_v51, %s4816_s29  ;;  %v979_v54 = vpack.c.bf16 %v960_v50, %v959_v49  ;;  %v1335_v49 = vld [vmem:[#allocation2 + $0xe5] sm:$0xff] }
 0x156   : > { %1408 = vrot.lane.b32.xlu1 %v1365_v56, %s4817_s30  ;;  %v1091_v56 = vld [vmem:[#allocation2 + $0x18b] sm:$0xff] }
 0x157   : > { %1406 = vrot.lane.b32.xlu0 %v1364_v57, %s4817_s30  ;;  %v1088_v57 = vld [vmem:[#allocation2 + $0x16b] sm:$0xff]  ;;  %v1109_v61 = vpack.c.bf16 %v1091_v56, %v1090_v55  ;;  %v1465_v55 = vld [vmem:[#allocation2 + $0xf6] sm:$0xff]  ;;  %v1466_v56 = vld [vmem:[#allocation2 + $0xfe] sm:$0xff] }
 0x15a   : > { %1537 = vrot.lane.b32.xlu1 %v1494_v62, %s4818_s4  ;;  %v1108_v62 = vpack.c.bf16 %v1089_v58, %v1088_v57  ;;  %v1463_v57 = vld [vmem:[#allocation2 + $0xde] sm:$0xff]  ;;  %v1464_v58 = vld [vmem:[#allocation2 + $0xe6] sm:$0xff] }
 0x15b   : > { %1535 = vrot.lane.b32.xlu0 %v1493_v63, %s4818_s4  ;;  %v1219_v63 = vld [vmem:[#allocation2 + $0x184] sm:$0xff] }
 0x15e   : > { %880 = vrot.lane.b32.xlu1 %v843_v7, %s4814_s27 }
 0x15f   : > { %878 = vrot.lane.b32.xlu0 %v842_v8, %s4814_s27  ;;  %v1238_v8 = vpack.c.bf16 %v1220_v0, %v1219_v63  ;;  %v1489_v63 = vpack.c.bf16 %v1464_v58, %v1463_v57  ;;  %v1348_v0 = vld [vmem:[#allocation2 + $0x185] sm:$0xff] }
 0x160   : > { %v1367_v10 = vpack.c.bf16 %v1349_v1, %v1348_v0  ;;  %v1480_v57 = vld [vmem:[#allocation2 + $0x1a6] sm:$0xff] }
 0x162   : > { %1009 = vrot.lane.b32.xlu1 %v972_v13, %s4813_s26  ;;  %v819_v13 = vld [vmem:[#allocation2 + $0xe1] sm:$0xff] }
 0x163   : > { %1007 = vrot.lane.b32.xlu0 %v971_v14, %s4813_s26  ;;  %v844_v17 = vpack.c.bf16 %v819_v13, %v818_v12  ;;  %v1477_v12 = vld [vmem:[#allocation2 + $0x186] sm:$0xff]  ;;  %v1478_v13 = vld [vmem:[#allocation2 + $0x18e] sm:$0xff] }
 0x164   : > { %v1496_v23 = vpack.c.bf16 %v1478_v13, %v1477_v12 }
 0x166   : > { %1138 = vrot.lane.b32.xlu1 %v1101_v19, %s4815_s28  ;;  %v950_v19 = vld [vmem:[#allocation2 + $0xfa] sm:$0xff] }
 0x167   : > { %1136 = vrot.lane.b32.xlu0 %v1100_v20, %s4815_s28  ;;  %v947_v20 = vld [vmem:[#allocation2 + $0xda] sm:$0xff]  ;;  %v974_v3 = vpack.c.bf16 %v950_v19, %v949_v18  ;;  %v836_v19 = vld [vmem:[#allocation2 + $0x1b1] sm:$0xff] }
 0x168   : > { %v973_v27 = vpack.c.bf16 %v948_v21, %v947_v20  ;;  %v835_v18 = vld [vmem:[#allocation2 + $0x1a1] sm:$0xff]  ;;  %v837_v20 = vld [vmem:[#allocation2 + $0x1b9] sm:$0xff] }
 0x16a   : > { %1267 = vrot.lane.b32.xlu1 %v1230_v25, %s4816_s29 }
 0x16b   : > { %1265 = vrot.lane.b32.xlu0 %v1229_v26, %s4816_s29 }
 0x16e   : > { %1396 = vrot.lane.b32.xlu1 %v1359_v29, %s4817_s30  ;;  %v773_v29 = vld [vmem:[#allocation2 + $0x1b8] sm:$0xff] }
 0x16f   : > { %1394 = vrot.lane.b32.xlu0 %v1358_v30, %s4817_s30  ;;  %v1079_v30 = vld [vmem:[#allocation2 + $0xfb] sm:$0xff]  ;;  %v789_v33 = vpack.c.bf16 %v773_v29, %v772_v24 }
 0x170   : > { %v1002_v35 = vpop.permute.xlu1 %1001  ;;  %v1092_v29 = vld [vmem:[#allocation2 + $0x19b] sm:$0xff] }
 0x171   : > { %v873_v36 = vpop.permute.xlu0 %872  ;;  %805 = vst.msk [vmem:[#allocation3 + $0x78] sm:$0xff] %vm272_vm2, %v789_v33 }
 0x172   : > { %920 = vst.msk [vmem:[#allocation3 + $0x8] sm:$0xff] %vm918_vm6, %v873_v36  ;;  %1525 = vrot.lane.b32.xlu1 %v1488_v37, %s4818_s4  ;;  %v1103_v36 = vpack.c.bf16 %v1079_v30, %v1078_v28  ;;  %v1102_v37 = vpack.c.bf16 %v1077_v32, %v1076_v31  ;;  %v966_v28 = vld [vmem:[#allocation2 + $0x1ba] sm:$0xff]  ;;  %v1093_v30 = vld [vmem:[#allocation2 + $0x1a3] sm:$0xff] }
 0x173   : > { %1523 = vrot.lane.b32.xlu0 %v1487_v38, %s4818_s4  ;;  %1049 = vst.msk [vmem:[#allocation3 + $0x8] sm:$0xff] %vm1047_vm7, %v1002_v35  ;;  %v1207_v38 = vld [vmem:[#allocation2 + $0xf4] sm:$0xff] }
 0x174   : > { %v1131_v43 = vpop.permute.xlu1 %1130 }
 0x175   : > { %v871_v44 = vpop.permute.xlu0 %870  ;;  %1178 = vst.msk [vmem:[#allocation3 + $0x8] sm:$0xff] %vm1176_vm8, %v1131_v43 }
 0x176   : > { %919 = vst.msk [vmem:[#allocation3] sm:$0xff] %vm918_vm6, %v871_v44  ;;  %896 = vrot.lane.b32.xlu1 %v851_v45, %s4814_s27  ;;  %v1232_v44 = vpack.c.bf16 %v1208_v39, %v1207_v38  ;;  %v1231_v45 = vpack.c.bf16 %v1206_v41, %v1205_v40  ;;  %v1221_v39 = vld [vmem:[#allocation2 + $0x19c] sm:$0xff]  ;;  %v1222_v40 = vld [vmem:[#allocation2 + $0x1a4] sm:$0xff] }
 0x177   : > { %894 = vrot.lane.b32.xlu0 %v850_v46, %s4814_s27  ;;  %v1336_v46 = vld [vmem:[#allocation2 + $0xf5] sm:$0xff] }
 0x178   : > { %v1260_v51 = vpop.permute.xlu1 %1259 }
 0x179   : > { %v5364_v52 = vpop.permute.xlu0 %1128  ;;  %1307 = vst.msk [vmem:[#allocation3 + $0x8] sm:$0xff] %vm1305_vm9, %v1260_v51 }
 0x17a   : > { %1025 = vrot.lane.b32.xlu1 %v980_v53, %s4813_s26  ;;  %v1361_v53 = vpack.c.bf16 %v1337_v47, %v1336_v46  ;;  %v1350_v47 = vld [vmem:[#allocation2 + $0x19d] sm:$0xff] }
 0x17b   : > { %1023 = vrot.lane.b32.xlu0 %v979_v54, %s4813_s26  ;;  %v1360_v54 = vpack.c.bf16 %v1335_v49, %v1334_v48  ;;  %v1351_v48 = vld [vmem:[#allocation2 + $0x1a5] sm:$0xff] }
 0x17c   : > { %v1389_v59 = vpop.permute.xlu1 %1388 }
 0x17d   : > { %v5369_v60 = vpop.permute.xlu0 %1257  ;;  %1436 = vst.msk [vmem:[#allocation3 + $0x8] sm:$0xff] %vm1434_vm10, %v1389_v59 }
 0x17e   : > { %1154 = vrot.lane.b32.xlu1 %v1109_v61, %s4815_s28 }
 0x17f   : > { %1152 = vrot.lane.b32.xlu0 %v1108_v62, %s4815_s28  ;;  %v1490_v62 = vpack.c.bf16 %v1466_v56, %v1465_v55  ;;  %v1479_v56 = vld [vmem:[#allocation2 + $0x19e] sm:$0xff] }
 0x180   : > { %v1518_v6 = vpop.permute.xlu1 %1517 }
 0x181   : > { %v5374_v7 = vpop.permute.xlu0 %1386  ;;  %1565 = vst.msk [vmem:[#allocation3 + $0x8] sm:$0xff] %vm1563_vm11, %v1518_v6  ;;  %v1347_v6 = vld [vmem:[#allocation2 + $0x175] sm:$0xff] }
 0x182   : > { %1283 = vrot.lane.b32.xlu1 %v1238_v8, %s4816_s29  ;;  %v1366_v11 = vpack.c.bf16 %v1347_v6, %v1346_v5 }
 0x183   : > { %1281 = vrot.lane.b32.xlu0 %v1237_v9, %s4816_s29 }
 0x184   : > { %v889_v14 = vpop.permute.xlu1 %888 }
 0x185   : > { %v5379_v15 = vpop.permute.xlu0 %1515  ;;  %928 = vst.msk [vmem:[#allocation3 + $0x48] sm:$0xff] %vm918_vm6, %v889_v14  ;;  %v1475_v14 = vld [vmem:[#allocation2 + $0x16e] sm:$0xff] }
 0x186   : > { %884 = vrot.lane.b32.xlu1 %v845_v16, %s4814_s27  ;;  %v1476_v16 = vld [vmem:[#allocation2 + $0x176] sm:$0xff] }
 0x187   : > { %882 = vrot.lane.b32.xlu0 %v844_v17, %s4814_s27  ;;  %v834_v17 = vld [vmem:[#allocation2 + $0x199] sm:$0xff]  ;;  %v1495_v24 = vpack.c.bf16 %v1476_v16, %v1475_v14 }
 0x188   : > { %v1018_v25 = vpop.permute.xlu1 %1017 }
 0x189   : > { %v887_v26 = vpop.permute.xlu0 %886  ;;  %1057 = vst.msk [vmem:[#allocation3 + $0x48] sm:$0xff] %vm1047_vm7, %v1018_v25  ;;  %v963_v25 = vld [vmem:[#allocation2 + $0x19a] sm:$0xff] }
 0x18a   : > { %927 = vst.msk [vmem:[#allocation3 + $0x40] sm:$0xff] %vm918_vm6, %v887_v26  ;;  %1013 = vrot.lane.b32.xlu1 %v974_v3, %s4813_s26  ;;  %v964_v26 = vld [vmem:[#allocation2 + $0x1a2] sm:$0xff] }
 0x18b   : > { %1011 = vrot.lane.b32.xlu0 %v973_v27, %s4813_s26  ;;  %v965_v27 = vld [vmem:[#allocation2 + $0x1b2] sm:$0xff] }
 0x18c   : > { %v1147_v34 = vpop.permute.xlu1 %1146  ;;  %v982_v2 = vpack.c.bf16 %v966_v28, %v965_v27 }
 0x18d   : > { %v1016_v35 = vpop.permute.xlu0 %1015  ;;  %1186 = vst.msk [vmem:[#allocation3 + $0x48] sm:$0xff] %vm1176_vm8, %v1147_v34  ;;  %v1094_v34 = vld [vmem:[#allocation2 + $0x1b3] sm:$0xff] }
 0x18e   : > { %1056 = vst.msk [vmem:[#allocation3 + $0x40] sm:$0xff] %vm1047_vm7, %v1016_v35  ;;  %1142 = vrot.lane.b32.xlu1 %v1103_v36, %s4815_s28  ;;  %v1095_v35 = vld [vmem:[#allocation2 + $0x1bb] sm:$0xff] }
 0x18f   : > { %1140 = vrot.lane.b32.xlu0 %v1102_v37, %s4815_s28  ;;  %v1581_v36 = vld [vmem:[#allocation3 + $0x8] sm:$0xff]  ;;  %v1110_v37 = vpack.c.bf16 %v1093_v30, %v1092_v29  ;;  %v1111_v38 = vpack.c.bf16 %v1095_v35, %v1094_v34 }
 0x190   : > { %v1276_v42 = vpop.permute.xlu1 %1275 }
 0x191   : > { %v1145_v43 = vpop.permute.xlu0 %1144  ;;  %1315 = vst.msk [vmem:[#allocation3 + $0x48] sm:$0xff] %vm1305_vm9, %v1276_v42 }
 0x192   : > { %1185 = vst.msk [vmem:[#allocation3 + $0x40] sm:$0xff] %vm1176_vm8, %v1145_v43  ;;  %1271 = vrot.lane.b32.xlu1 %v1232_v44, %s4816_s29  ;;  %v1223_v43 = vld [vmem:[#allocation2 + $0x1b4] sm:$0xff]  ;;  %v1224_v44 = vld [vmem:[#allocation2 + $0x1bc] sm:$0xff] }
 0x193   : > { %1269 = vrot.lane.b32.xlu0 %v1231_v45, %s4816_s29  ;;  %v1239_v45 = vpack.c.bf16 %v1222_v40, %v1221_v39  ;;  %v1240_v46 = vpack.c.bf16 %v1224_v44, %v1223_v43  ;;  %v1981_v44 = vld [vmem:[#allocation2 + $0x33] sm:$0xff] }
 0x194   : > { %v1405_v50 = vpop.permute.xlu1 %1404 }
 0x195   : > { %v1274_v51 = vpop.permute.xlu0 %1273  ;;  %1444 = vst.msk [vmem:[#allocation3 + $0x48] sm:$0xff] %vm1434_vm10, %v1405_v50 }
 0x196   : > { %1314 = vst.msk [vmem:[#allocation3 + $0x40] sm:$0xff] %vm1305_vm9, %v1274_v51  ;;  %1400 = vrot.lane.b32.xlu1 %v1361_v53, %s4817_s30  ;;  %v1352_v51 = vld [vmem:[#allocation2 + $0x1b5] sm:$0xff]  ;;  %v1353_v53 = vld [vmem:[#allocation2 + $0x1bd] sm:$0xff] }
 0x197   : > { %1398 = vrot.lane.b32.xlu0 %v1360_v54, %s4817_s30  ;;  %v1368_v54 = vpack.c.bf16 %v1351_v48, %v1350_v47  ;;  %v1369_v55 = vpack.c.bf16 %v1353_v53, %v1352_v51  ;;  %v2655_v48 = vld [vmem:[#allocation2 + $0x1d3] sm:$0xff] }
 0x198   : > { %v1534_v59 = vpop.permute.xlu1 %1533 }
 0x199   : > { %v1403_v61 = vpop.permute.xlu0 %1402  ;;  %1573 = vst.msk [vmem:[#allocation3 + $0x48] sm:$0xff] %vm1563_vm11, %v1534_v59 }
 0x19a   : > { %1443 = vst.msk [vmem:[#allocation3 + $0x40] sm:$0xff] %vm1434_vm10, %v1403_v61  ;;  %1529 = vrot.lane.b32.xlu1 %v1490_v62, %s4818_s4  ;;  %v1481_v61 = vld [vmem:[#allocation2 + $0x1b6] sm:$0xff]  ;;  %v1482_v62 = vld [vmem:[#allocation2 + $0x1be] sm:$0xff] }
 0x19b   : > { %1527 = vrot.lane.b32.xlu0 %v1489_v63, %s4818_s4  ;;  %v1497_v63 = vpack.c.bf16 %v1480_v57, %v1479_v56  ;;  %v1498_v0 = vpack.c.bf16 %v1482_v62, %v1481_v61 }
 0x19c   : > { %v1000_v8 = vpop.permute.xlu1 %999 }
 0x19d   : > { %v1532_v9 = vpop.permute.xlu0 %1531  ;;  %1048 = vst.msk [vmem:[#allocation3] sm:$0xff] %vm1047_vm7, %v1000_v8 }
 0x19e   : > { %1572 = vst.msk [vmem:[#allocation3 + $0x40] sm:$0xff] %vm1563_vm11, %v1532_v9  ;;  %1412 = vrot.lane.b32.xlu1 %v1367_v10, %s4817_s30 }
 0x19f   : > { %1177 = vst.msk [vmem:[#allocation3] sm:$0xff] %vm1176_vm8, %v5364_v52  ;;  %1410 = vrot.lane.b32.xlu0 %v1366_v11, %s4817_s30  ;;  %v852_v52 = vpack.c.bf16 %v835_v18, %v834_v17 }
 0x1a0   : > { %1306 = vst.msk [vmem:[#allocation3] sm:$0xff] %vm1305_vm9, %v5369_v60  ;;  %v877_v21 = vpop.permute.xlu1 %876  ;;  %v853_v60 = vpack.c.bf16 %v837_v20, %v836_v19 }
 0x1a1   : > { %1435 = vst.msk [vmem:[#allocation3] sm:$0xff] %vm1434_vm10, %v5374_v7  ;;  %v875_v22 = vpop.permute.xlu0 %874 }
 0x1a2   : > { %1564 = vst.msk [vmem:[#allocation3] sm:$0xff] %vm1563_vm11, %v5379_v15  ;;  %1541 = vrot.lane.b32.xlu1 %v1496_v23, %s4818_s4  ;;  %v981_v15 = vpack.c.bf16 %v964_v26, %v963_v25 }
 0x1a3   : > { %922 = vst.msk [vmem:[#allocation3 + $0x18] sm:$0xff] %vm918_vm6, %v877_v21  ;;  %921 = vst.msk [vmem:[#allocation3 + $0x10] sm:$0xff] %vm918_vm6, %v875_v22  ;;  %1539 = vrot.lane.b32.xlu0 %v1495_v24, %s4818_s4 }
 0x1a4   : > { %v1006_v7 = vpop.permute.xlu1 %1005 }
 0x1a5   : > { %v1004_v3 = vpop.permute.xlu0 %1003  ;;  %1051 = vst.msk [vmem:[#allocation3 + $0x18] sm:$0xff] %vm1047_vm7, %v1006_v7 }
 0x1a6   : > { %1050 = vst.msk [vmem:[#allocation3 + $0x10] sm:$0xff] %vm1047_vm7, %v1004_v3  ;;  %900 = vrot.lane.b32.xlu1 %v853_v60, %s4814_s27 }
 0x1a7   : > { %898 = vrot.lane.b32.xlu0 %v852_v52, %s4814_s27 }
 0x1a8   : > { %v1135_v31 = vpop.permute.xlu1 %1134 }
 0x1a9   : > { %v1133_v32 = vpop.permute.xlu0 %1132  ;;  %v1580_v33 = vld [vmem:[#allocation3] sm:$0xff]  ;;  %1180 = vst.msk [vmem:[#allocation3 + $0x18] sm:$0xff] %vm1176_vm8, %v1135_v31 }
 0x1aa   : > { %1179 = vst.msk [vmem:[#allocation3 + $0x10] sm:$0xff] %vm1176_vm8, %v1133_v32  ;;  %4562 = vmatprep.mubr.msk.bf16.mxu1 %vm1622_vm12, %v1580_v33  ;;  %1029 = vrot.lane.b32.xlu1 %v982_v2, %s4813_s26 }
 0x1ab   : > { %4563 = vmatmul.mubr.msk.bf16.vlgmr.msra.gmra.mrb[16].mxu1 %vm1622_vm12, %v1581_v36  ;;  %1027 = vrot.lane.b32.xlu0 %v981_v15, %s4813_s26 }
 0x1ac   : > { %v1264_v41 = vpop.permute.xlu1 %1263 }
 0x1ad   : > { %v1262_v42 = vpop.permute.xlu0 %1261  ;;  %1309 = vst.msk [vmem:[#allocation3 + $0x18] sm:$0xff] %vm1305_vm9, %v1264_v41 }
 0x1ae   : > { %1308 = vst.msk [vmem:[#allocation3 + $0x10] sm:$0xff] %vm1305_vm9, %v1262_v42  ;;  %1158 = vrot.lane.b32.xlu1 %v1111_v38, %s4815_s28 }
 0x1af   : > { %1156 = vrot.lane.b32.xlu0 %v1110_v37, %s4815_s28 }
 0x1b0   : > { %v1393_v49 = vpop.permute.xlu1 %1392 }
 0x1b1   : > { %v1391_v50 = vpop.permute.xlu0 %1390  ;;  %1438 = vst.msk [vmem:[#allocation3 + $0x18] sm:$0xff] %vm1434_vm10, %v1393_v49  ;;  %v1979_v49 = vld [vmem:[#allocation2 + $0x1b] sm:$0xff] }
 0x1b2   : > { %1437 = vst.msk [vmem:[#allocation3 + $0x10] sm:$0xff] %vm1434_vm10, %v1391_v50  ;;  %1287 = vrot.lane.b32.xlu1 %v1240_v46, %s4816_s29  ;;  %v2654_v46 = vld [vmem:[#allocation2 + $0x1cb] sm:$0xff]  ;;  %v1980_v50 = vld [vmem:[#allocation2 + $0x23] sm:$0xff] }
 0x1b3   : > { %1285 = vrot.lane.b32.xlu0 %v1239_v45, %s4816_s29  ;;  %v1982_v45 = vld [vmem:[#allocation2 + $0x3b] sm:$0xff]  ;;  %v2011_v51 = vpack.c.bf16 %v1980_v50, %v1979_v49 }
 0x1b4   : > { %v1522_v58 = vpop.permute.xlu1 %1521  ;;  %v2012_v47 = vpack.c.bf16 %v1982_v45, %v1981_v44 }
 0x1b5   : > { %v1520_v59 = vpop.permute.xlu0 %1519  ;;  %1567 = vst.msk [vmem:[#allocation3 + $0x18] sm:$0xff] %vm1563_vm11, %v1522_v58 }
 0x1b6   : > { %1566 = vst.msk [vmem:[#allocation3 + $0x10] sm:$0xff] %vm1563_vm11, %v1520_v59  ;;  %1416 = vrot.lane.b32.xlu1 %v1369_v55, %s4817_s30  ;;  %v2673_v55 = vpack.c.bf16 %v2655_v48, %v2654_v46 }
 0x1b7   : > { %1414 = vrot.lane.b32.xlu0 %v1368_v54, %s4817_s30  ;;  %1963 = vst.msk [vmem:[#allocation3 + $0x8] sm:$0xff] %vm204_vm1, %v2011_v51 }
 0x1b8   : > { %v893_v1 = vpop.permute.xlu1 %892 }
 0x1b9   : > { %v891_v5 = vpop.permute.xlu0 %890  ;;  %930 = vst.msk [vmem:[#allocation3 + $0x58] sm:$0xff] %vm918_vm6, %v893_v1  ;;  %v1588_v1 = vld [vmem:[#allocation3 + $0x40] sm:$0xff] }
 0x1ba   : > { %929 = vst.msk [vmem:[#allocation3 + $0x50] sm:$0xff] %vm918_vm6, %v891_v5  ;;  %1545 = vrot.lane.b32.xlu1 %v1498_v0, %s4818_s4 }
 0x1bb   : > { %1543 = vrot.lane.b32.xlu0 %v1497_v63, %s4818_s4 }
 0x1bc   : > { %v1022_v6 = vpop.permute.xlu1 %1021  ;;  %v1583_v10 = vld [vmem:[#allocation3 + $0x18] sm:$0xff] }
 0x1bd   : > { %v1020_v8 = vpop.permute.xlu0 %1019  ;;  %v1582_v9 = vld [vmem:[#allocation3 + $0x10] sm:$0xff]  ;;  %1059 = vst.msk [vmem:[#allocation3 + $0x58] sm:$0xff] %vm1047_vm7, %v1022_v6 }
 0x1be   : > { %1058 = vst.msk [vmem:[#allocation3 + $0x50] sm:$0xff] %vm1047_vm7, %v1020_v8  ;;  %4566 = vmatprep.mubr.msk.bf16.mxu1 %vm1622_vm12, %v1582_v9  ;;  %2045 = vrot.lane.b32.xlu1 %v2012_v47, %s4813_s26  ;;  %v1589_v9 = vld [vmem:[#allocation3 + $0x48] sm:$0xff] }
 0x1bf   : > { %4567 = vmatmul.mubr.msk.bf16.gmra.mrb[20].mxu1 %vm1622_vm12, %v1583_v10  ;;  %1964 = vst.msk [vmem:[#allocation3 + $0x10] sm:$0xff] %vm204_vm1, %v2012_v47  ;;  %2043 = vrot.lane.b32.xlu0 %v2011_v51, %s4813_s26 }
 0x1c0   : > { %v1151_v11 = vpop.permute.xlu1 %1150 }
 0x1c1   : > { %v1149_v12 = vpop.permute.xlu0 %1148  ;;  %1188 = vst.msk [vmem:[#allocation3 + $0x58] sm:$0xff] %vm1176_vm8, %v1151_v11 }
 0x1c2   : > { %1187 = vst.msk [vmem:[#allocation3 + $0x50] sm:$0xff] %vm1176_vm8, %v1149_v12  ;;  %2718 = vrot.lane.b32.xlu1 %v2673_v55, %s4819_s15 }
 0x1c3   : > { %2173 = vrot.lane.b32.xlu0 %v2012_v47, %s4816_s29 }
 0x1c4   : > { %v1280_v13 = vpop.permute.xlu1 %1279 }
 0x1c5   : > { %v1278_v14 = vpop.permute.xlu0 %1277  ;;  %1317 = vst.msk [vmem:[#allocation3 + $0x58] sm:$0xff] %vm1305_vm9, %v1280_v13 }
 0x1c6   : > { %1316 = vst.msk [vmem:[#allocation3 + $0x50] sm:$0xff] %vm1305_vm9, %v1278_v14  ;;  %2462 = vrot.lane.b32.xlu1 %v2673_v55, %s4820_s16 }
 0x1c8   : > { %v1409_v16 = vpop.permute.xlu1 %1408 }
 0x1c9   : > { %v1407_v17 = vpop.permute.xlu0 %1406  ;;  %1446 = vst.msk [vmem:[#allocation3 + $0x58] sm:$0xff] %vm1434_vm10, %v1409_v16 }
 0x1ca   : > { %1445 = vst.msk [vmem:[#allocation3 + $0x50] sm:$0xff] %vm1434_vm10, %v1407_v17 }
 0x1cc   : > { %v1538_v18 = vpop.permute.xlu1 %1537 }
 0x1cd   : > { %v1536_v19 = vpop.permute.xlu0 %1535  ;;  %1575 = vst.msk [vmem:[#allocation3 + $0x58] sm:$0xff] %vm1563_vm11, %v1538_v18 }
 0x1ce   : > { %1574 = vst.msk [vmem:[#allocation3 + $0x50] sm:$0xff] %vm1563_vm11, %v1536_v19 }
 0x1d0   : > { %v881_v20 = vpop.permute.xlu1 %880 }
 0x1d1   : > { %v879_v21 = vpop.permute.xlu0 %878  ;;  %924 = vst.msk [vmem:[#allocation3 + $0x28] sm:$0xff] %vm918_vm6, %v881_v20 }
 0x1d2   : > { %923 = vst.msk [vmem:[#allocation3 + $0x20] sm:$0xff] %vm918_vm6, %v879_v21 }
 0x1d4   : > { %v1010_v22 = vpop.permute.xlu1 %1009  ;;  %v1591_v16 = vld [vmem:[#allocation3 + $0x58] sm:$0xff] }
 0x1d5   : > { %v1008_v23 = vpop.permute.xlu0 %1007  ;;  %1053 = vst.msk [vmem:[#allocation3 + $0x28] sm:$0xff] %vm1047_vm7, %v1010_v22  ;;  %v1590_v11 = vld [vmem:[#allocation3 + $0x50] sm:$0xff] }
 0x1d6   : > { %1052 = vst.msk [vmem:[#allocation3 + $0x20] sm:$0xff] %vm1047_vm7, %v1008_v23 }
 0x1d8   : > { %v1139_v24 = vpop.permute.xlu1 %1138 }
 0x1d9   : > { %v1137_v52 = vpop.permute.xlu0 %1136  ;;  %1182 = vst.msk [vmem:[#allocation3 + $0x28] sm:$0xff] %vm1176_vm8, %v1139_v24 }
 0x1da   : > { %1181 = vst.msk [vmem:[#allocation3 + $0x20] sm:$0xff] %vm1176_vm8, %v1137_v52 }
 0x1dc   : > { %v1268_v60 = vpop.permute.xlu1 %1267 }
 0x1dd   : > { %v1266_v25 = vpop.permute.xlu0 %1265  ;;  %1311 = vst.msk [vmem:[#allocation3 + $0x28] sm:$0xff] %vm1305_vm9, %v1268_v60  ;;  %v1914_v60 = vld [vmem:[#allocation2 + $0x3] sm:$0xff] }
 0x1de   : > { %1310 = vst.msk [vmem:[#allocation3 + $0x20] sm:$0xff] %vm1305_vm9, %v1266_v25  ;;  %v1915_v25 = vld [vmem:[#allocation2 + $0xb] sm:$0xff] }
 0x1e0   : > { %v1397_v26 = vpop.permute.xlu1 %1396 }
 0x1e1   : > { %v1395_v7 = vpop.permute.xlu0 %1394  ;;  %1440 = vst.msk [vmem:[#allocation3 + $0x28] sm:$0xff] %vm1434_vm10, %v1397_v26 }
 0x1e2   : > { %1439 = vst.msk [vmem:[#allocation3 + $0x20] sm:$0xff] %vm1434_vm10, %v1395_v7  ;;  %v1946_v7 = vpack.c.bf16 %v1915_v25, %v1914_v60 }
 0x1e4   : > { %v1526_v3 = vpop.permute.xlu1 %1525  ;;  %1962 = vst.msk [vmem:[#allocation3] sm:$0xff] %vm204_vm1, %v1946_v7 }
 0x1e5   : > { %v1524_v27 = vpop.permute.xlu0 %1523  ;;  %1569 = vst.msk [vmem:[#allocation3 + $0x28] sm:$0xff] %vm1563_vm11, %v1526_v3  ;;  %v5530_v3 = vld [vmem:[%s6635_s1 + $0x3] ss:$0 sm:$0xff] }
 0x1e6   : > { %1568 = vst.msk [vmem:[#allocation3 + $0x20] sm:$0xff] %vm1563_vm11, %v1524_v27 }
 0x1e8   : > { %v897_v28 = vpop.permute.xlu1 %896 }
 0x1e9   : > { %v895_v15 = vpop.permute.xlu0 %894  ;;  %932 = vst.msk [vmem:[#allocation3 + $0x68] sm:$0xff] %vm918_vm6, %v897_v28 }
 0x1ea   : > { %931 = vst.msk [vmem:[#allocation3 + $0x60] sm:$0xff] %vm918_vm6, %v895_v15 }
 0x1ec   : > { %v1026_v2 = vpop.permute.xlu1 %1025  ;;  %v1585_v31 = vld [vmem:[#allocation3 + $0x28] sm:$0xff] }
 0x1ed   : > { %v1024_v29 = vpop.permute.xlu0 %1023  ;;  %v1584_v30 = vld [vmem:[#allocation3 + $0x20] sm:$0xff]  ;;  %1061 = vst.msk [vmem:[#allocation3 + $0x68] sm:$0xff] %vm1047_vm7, %v1026_v2 }
 0x1ee   : > { %1060 = vst.msk [vmem:[#allocation3 + $0x60] sm:$0xff] %vm1047_vm7, %v1024_v29  ;;  %4570 = vmatprep.mubr.msk.bf16.mxu1 %vm1622_vm12, %v1584_v30 }
 0x1ef   : > { %4571 = vmatmul.mubr.msk.bf16.gmra.mrb[24].mxu1 %vm1622_vm12, %v1585_v31 }
 0x1f0   : > { %v1155_v32 = vpop.permute.xlu1 %1154 }
 0x1f1   : > { %v1153_v33 = vpop.permute.xlu0 %1152  ;;  %1190 = vst.msk [vmem:[#allocation3 + $0x68] sm:$0xff] %vm1176_vm8, %v1155_v32 }
 0x1f2   : > { %1189 = vst.msk [vmem:[#allocation3 + $0x60] sm:$0xff] %vm1176_vm8, %v1153_v33 }
 0x1f4   : > { %v1284_v34 = vpop.permute.xlu1 %1283 }
 0x1f5   : > { %v1282_v35 = vpop.permute.xlu0 %1281  ;;  %1319 = vst.msk [vmem:[#allocation3 + $0x68] sm:$0xff] %vm1305_vm9, %v1284_v34 }
 0x1f6   : > { %1318 = vst.msk [vmem:[#allocation3 + $0x60] sm:$0xff] %vm1305_vm9, %v1282_v35 }
 0x1f8   : > { %v885_v36 = vpop.permute.xlu1 %884 }
 0x1f9   : > { %v883_v37 = vpop.permute.xlu0 %882  ;;  %926 = vst.msk [vmem:[#allocation3 + $0x38] sm:$0xff] %vm918_vm6, %v885_v36 }
 0x1fa   : > { %925 = vst.msk [vmem:[#allocation3 + $0x30] sm:$0xff] %vm918_vm6, %v883_v37 }
 0x1fc   : > { %v1014_v38 = vpop.permute.xlu1 %1013 }
 0x1fd   : > { %v1012_v39 = vpop.permute.xlu0 %1011  ;;  %1055 = vst.msk [vmem:[#allocation3 + $0x38] sm:$0xff] %vm1047_vm7, %v1014_v38 }
 0x1fe   : > { %1054 = vst.msk [vmem:[#allocation3 + $0x30] sm:$0xff] %vm1047_vm7, %v1012_v39 }
 0x200   : > { %v1143_v40 = vpop.permute.xlu1 %1142 }
 0x201   : > { %v1141_v41 = vpop.permute.xlu0 %1140  ;;  %1184 = vst.msk [vmem:[#allocation3 + $0x38] sm:$0xff] %vm1176_vm8, %v1143_v40 }
 0x202   : > { %1183 = vst.msk [vmem:[#allocation3 + $0x30] sm:$0xff] %vm1176_vm8, %v1141_v41 }
 0x204   : > { %v1272_v42 = vpop.permute.xlu1 %1271 }
 0x205   : > { %v1270_v43 = vpop.permute.xlu0 %1269  ;;  %1313 = vst.msk [vmem:[#allocation3 + $0x38] sm:$0xff] %vm1305_vm9, %v1272_v42 }
 0x206   : > { %1312 = vst.msk [vmem:[#allocation3 + $0x30] sm:$0xff] %vm1305_vm9, %v1270_v43 }
 0x208   : > { %v1401_v53 = vpop.permute.xlu1 %1400 }
 0x209   : > { %v1399_v54 = vpop.permute.xlu0 %1398  ;;  %1442 = vst.msk [vmem:[#allocation3 + $0x38] sm:$0xff] %vm1434_vm10, %v1401_v53 }
 0x20a   : > { %1441 = vst.msk [vmem:[#allocation3 + $0x30] sm:$0xff] %vm1434_vm10, %v1399_v54 }
 0x20c   : > { %v1530_v56 = vpop.permute.xlu1 %1529 }
 0x20d   : > { %v1528_v57 = vpop.permute.xlu0 %1527  ;;  %1571 = vst.msk [vmem:[#allocation3 + $0x38] sm:$0xff] %vm1563_vm11, %v1530_v56 }
 0x20e   : > { %1570 = vst.msk [vmem:[#allocation3 + $0x30] sm:$0xff] %vm1563_vm11, %v1528_v57 }
 0x210   : > { %v1413_v58 = vpop.permute.xlu1 %1412 }
 0x211   : > { %v1411_v59 = vpop.permute.xlu0 %1410  ;;  %1448 = vst.msk [vmem:[#allocation3 + $0x68] sm:$0xff] %vm1434_vm10, %v1413_v58 }
 0x212   : > { %1447 = vst.msk [vmem:[#allocation3 + $0x60] sm:$0xff] %vm1434_vm10, %v1411_v59 }
 0x214   : > { %v1542_v61 = vpop.permute.xlu1 %1541  ;;  %v1587_v0 = vld [vmem:[#allocation3 + $0x38] sm:$0xff] }
 0x215   : > { %v1540_v62 = vpop.permute.xlu0 %1539  ;;  %v1586_v63 = vld [vmem:[#allocation3 + $0x30] sm:$0xff]  ;;  %1577 = vst.msk [vmem:[#allocation3 + $0x68] sm:$0xff] %vm1563_vm11, %v1542_v61 }
 0x216   : > { %1576 = vst.msk [vmem:[#allocation3 + $0x60] sm:$0xff] %vm1563_vm11, %v1540_v62  ;;  %4574 = vmatprep.mubr.msk.bf16.mxu1 %vm1622_vm12, %v1586_v63 }
 0x217   : > { %4575 = vmatmul.mubr.msk.bf16.gmra.mrb[28].mxu1 %vm1622_vm12, %v1587_v0 }
 0x218   : > { %4578 = vmatprep.mubr.msk.bf16.mxu1 %vm1622_vm12, %v1588_v1  ;;  %v901_v6 = vpop.permute.xlu1 %900 }
 0x219   : > { %v899_v5 = vpop.permute.xlu0 %898  ;;  %934 = vst.msk [vmem:[#allocation3 + $0x78] sm:$0xff] %vm918_vm6, %v901_v6 }
 0x21a   : > { %933 = vst.msk [vmem:[#allocation3 + $0x70] sm:$0xff] %vm918_vm6, %v899_v5  ;;  %vm2820_vm6 = vcmask 916480  }
 0x21c   : > { %v1030_v10 = vpop.permute.xlu1 %1029  ;;  %v1593_v22 = vld [vmem:[#allocation3 + $0x68] sm:$0xff] }
 0x21d   : > { %v1028_v8 = vpop.permute.xlu0 %1027  ;;  %1063 = vst.msk [vmem:[#allocation3 + $0x78] sm:$0xff] %vm1047_vm7, %v1030_v10  ;;  %v1592_v18 = vld [vmem:[#allocation3 + $0x60] sm:$0xff] }
 0x21e   : > { %1062 = vst.msk [vmem:[#allocation3 + $0x70] sm:$0xff] %vm1047_vm7, %v1028_v8  ;;  %v5570_v8 = vld [vmem:[%s6635_s1 + $0x5] ss:$0 sm:$0xff] }
 0x21f   : > { %4579 = vmatmul.mubr.msk.bf16.gmra.mrb[32].mxu1 %vm1622_vm12, %v1589_v9  ;;  %v5573_v9 = vld [vmem:[%s5034_s23 + $0x10] sm:$0xff] }
 0x220   : > { %4582 = vmatprep.mubr.msk.bf16.mxu1 %vm1622_vm12, %v1590_v11  ;;  %v1159_v13 = vpop.permute.xlu1 %1158  ;;  %v3037_v10 = vmul.f32 %v5573_v9, %v5570_v8  ;;  %v5578_v11 = vld [vmem:[%s5034_s23 + $0x18] sm:$0xff] }
 0x221   : > { %v1157_v12 = vpop.permute.xlu0 %1156  ;;  %1192 = vst.msk [vmem:[#allocation3 + $0x78] sm:$0xff] %vm1176_vm8, %v1159_v13  ;;  %v5587_v13 = vld [vmem:[%s6635_s1 + $0x6] ss:$0 sm:$0xff] }
 0x222   : > { %1191 = vst.msk [vmem:[#allocation3 + $0x70] sm:$0xff] %vm1176_vm8, %v1157_v12  ;;  %v3038_v12 = vmul.f32 %v5578_v11, %v5570_v8 }
 0x224   : > { %v1288_v17 = vpop.permute.xlu1 %1287 }
 0x225   : > { %v1286_v14 = vpop.permute.xlu0 %1285  ;;  %1321 = vst.msk [vmem:[#allocation3 + $0x78] sm:$0xff] %vm1305_vm9, %v1288_v17  ;;  %v5594_v17 = vld [vmem:[%s5034_s23] sm:$0xff] }
 0x226   : > { %1320 = vst.msk [vmem:[#allocation3 + $0x70] sm:$0xff] %vm1305_vm9, %v1286_v14  ;;  %v3074_v14 = vadd.f32 %v5587_v13, %v3037_v10 }
 0x227   : > { %4583 = vmatmul.mubr.msk.bf16.gmra.mrb[36].mxu1 %vm1622_vm12, %v1591_v16  ;;  %v3075_v16 = vadd.f32 %v5587_v13, %v3038_v12 }
 0x228   : > { %4586 = vmatprep.mubr.msk.bf16.mxu1 %vm1622_vm12, %v1592_v18  ;;  %v1417_v20 = vpop.permute.xlu1 %1416  ;;  %v3035_v18 = vmul.f32 %v5594_v17, %v5570_v8 }
 0x229   : > { %v1415_v19 = vpop.permute.xlu0 %1414  ;;  %1450 = vst.msk [vmem:[#allocation3 + $0x78] sm:$0xff] %vm1434_vm10, %v1417_v20 }
 0x22a   : > { %1449 = vst.msk [vmem:[#allocation3 + $0x70] sm:$0xff] %vm1434_vm10, %v1415_v19  ;;  %v5599_v19 = vld [vmem:[%s5034_s23 + $0x8] sm:$0xff] }
 0x22b   : > { %v3036_v20 = vmul.f32 %v5599_v19, %v5570_v8 }
 0x22c   : > { %v1546_v23 = vpop.permute.xlu1 %1545 }
 0x22d   : > { %v1544_v21 = vpop.permute.xlu0 %1543  ;;  %1579 = vst.msk [vmem:[#allocation3 + $0x78] sm:$0xff] %vm1563_vm11, %v1546_v23  ;;  %v3136_v23 = vld [vmem:[%s6636_s2 + $0x58] sm:$0x3]  ;;  %v3073_v60 = vadd.f32 %v5587_v13, %v3036_v20  ;;  %v4743_v20 = vld [vmem:[%s6636_s2 + $0x50] sm:$0xff]  }
 0x22e   : > { %1578 = vst.msk [vmem:[#allocation3 + $0x70] sm:$0xff] %vm1563_vm11, %v1544_v21  ;;  %v3106_v21 = vmax.f32 %v3074_v14, 0.0  ;;  %4713 = vmatprep.subr.msk.bf16.mxu1 %vm505_vm0, %v3136_v23 }
 0x22f   : > { %4587 = vmatmul.mubr.msk.bf16.gmra.mrb[40].mxu1 %vm1622_vm12, %v1593_v22  ;;  %v3107_v22 = vmax.f32 %v3075_v16, 0.0  ;;  %v3105_v7 = vmax.f32 %v3073_v60, 0.0 }
 0x230   : > { %v2046_v26 = vpop.permute.xlu1 %2045 }
 0x231   : > { %2093 = vst.msk [vmem:[#allocation3 + $0x8] sm:$0xff] %vm2091_vm13, %v2046_v26  ;;  %v2044_v27 = vpop.permute.xlu0 %2043  ;;  %v3138_v25 = vpack.c.bf16 %v3107_v22, %v3106_v21  ;;  %v4752_v21 = vld [vmem:[%s5034_s23 + $0x40] sm:$0xff] }
 0x232   : > { %2092 = vst.msk [vmem:[#allocation3] sm:$0xff] %vm2091_vm13, %v2044_v27  ;;  %v3043_v22 = vmul.f32 %v4752_v21, %v5570_v8 }
 0x234   : > { %v1595_v52 = vld [vmem:[#allocation3 + $0x78] sm:$0xff] }
 0x235   : > { %v1594_v24 = vld [vmem:[#allocation3 + $0x70] sm:$0xff]  ;;  %v2174_v34 = vpop.permute.xlu0 %2173 }
 0x236   : > { %4590 = vmatprep.mubr.msk.bf16.mxu1 %vm1622_vm12, %v1594_v24  ;;  %2222 = vst.msk [vmem:[#allocation3] sm:$0xff] %vm2221_vm14, %v2174_v34  ;;  %v3207_v24 = vsel %vm505_vm0, %v3136_v23, 0  ;;  %v4753_v23 = vld [vmem:[%s5034_s23 + $0x48] sm:$0xff] }
 0x237   : > { %4591 = vmatmul.mubr.msk.bf16.gmra.mrb[44].mxu1 %vm1622_vm12, %v1595_v52  ;;  %v3072_v52 = vadd.f32 %v5587_v13, %v3035_v18  ;;  %v4742_v18 = vld [vmem:[%s6636_s2 + $0x48] sm:$0xff]  }
 0x238   : > { %4641 = vmatpush3.bf16.msra.mxu1 %v3207_v24  ;;  %v3044_v24 = vmul.f32 %v4753_v23, %v5570_v8 }
 0x239   : > { %v3104_v26 = vmax.f32 %v3072_v52, 0.0  ;;  %v4754_v52 = vld [vmem:[%s5034_s23 + $0x50] sm:$0xff] }
 0x23a   : > { %v3045_v60 = vmul.f32 %v4754_v52, %v5570_v8 }
 0x23b   : > { %v3137_v27 = vpack.c.bf16 %v3105_v7, %v3104_v26  ;;  %v3080_v7 = vadd.f32 %v5587_v13, %v3043_v22 }
 0x23d   : > { %4642 = vmatprep.mubr.msk.bf16.mxu1 %vm456_vm3, %v3137_v27  ;;  %v3081_v27 = vadd.f32 %v5587_v13, %v3044_v24 }
 0x23f   : > { %4643 = vmatmul.mubr.msk.bf16.vlgmr.msra.gmra.mrb[48].mxu1 %vm456_vm3, %v3138_v25  ;;  %v4755_v25 = vld [vmem:[%s5034_s23 + $0x58] sm:$0xff] }
 0x240   : > { %v3046_v26 = vmul.f32 %v4755_v25, %v5570_v8 }
 0x27e   : > { %v4564_v28 = vpop.f32.mrb[16].mxu1 }
 0x27f   : > { %v1718_v15 = vadd.f32 %v4564_v28, %v5530_v3  ;;  %v1709_v2 = vpop.f32.mrb[17].mxu1  ;;  %v4737_v28 = vld [vmem:[%s6636_s2 + $0x20] sm:$0xff]  }
 0x280   : > { %v1710_v29 = vadd.f32 %v5530_v3, %v1709_v2  ;;  %v4565_v30 = vpop.f32.mrb[18].mxu1  ;;  %4594 = vmatprep.subr.bf16.mxu0 %v4737_v28 }
 0x281   : > { %v1838_v31 = vmax.f32 %v1718_v15, 0.0  ;;  %v1721_v32 = vadd.f32 %v4565_v30, %v5530_v3  ;;  %v1712_v33 = vpop.f32.mrb[19].mxu1  ;;  %4595 = vmatpush3.bf16.msra.mxu0 %v4737_v28  ;;  %v4748_v15 = vld [vmem:[%s5034_s23 + $0x20] sm:$0xff]  ;;  %v3082_v28 = vadd.f32 %v5587_v13, %v3045_v60 }
 0x282   : > { %v1836_v35 = vmax.f32 %v1710_v29, 0.0  ;;  %v1713_v36 = vadd.f32 %v5530_v3, %v1712_v33  ;;  %v3039_v2 = vmul.f32 %v4748_v15, %v5570_v8  ;;  %v4749_v29 = vld [vmem:[%s5034_s23 + $0x28] sm:$0xff]  ;;  %v4751_v33 = vld [vmem:[%s5034_s23 + $0x38] sm:$0xff] }
 0x283   : > { %1884 = vst.msk [vmem:[#allocation2 + $0x63] sm:$0xff] %vm204_vm1, %v1838_v31  ;;  %v1839_v37 = vmax.f32 %v1721_v32, 0.0  ;;  %v3040_v30 = vmul.f32 %v4749_v29, %v5570_v8  ;;  %v4750_v31 = vld [vmem:[%s5034_s23 + $0x30] sm:$0xff]  ;;  %v3042_v34 = vmul.f32 %v4751_v33, %v5570_v8  ;;  %v3114_v33 = vmax.f32 %v3082_v28, 0.0  ;;  %v4757_v28 = vld [vmem:[%s5034_s23 + $0x68] sm:$0xff] }
 0x284   : > { %1882 = vst.msk [vmem:[#allocation2 + $0x4b] sm:$0xff] %vm204_vm1, %v1836_v35  ;;  %v1837_v38 = vmax.f32 %v1713_v36, 0.0  ;;  %v3041_v32 = vmul.f32 %v4750_v31, %v5570_v8  ;;  %v4738_v35 = vld [vmem:[%s6636_s2 + $0x28] sm:$0xff]   ;;  %v3076_v36 = vadd.f32 %v5587_v13, %v3039_v2  ;;  %v3083_v2 = vadd.f32 %v5587_v13, %v3046_v26 }
 0x285   : > { %1885 = vst.msk [vmem:[#allocation2 + $0x6b] sm:$0xff] %vm204_vm1, %v1839_v37  ;;  %v3077_v37 = vadd.f32 %v5587_v13, %v3040_v30  ;;  %4596 = vmatprep.subr.bf16.mxu0 %v4738_v35  ;;  %v3112_v31 = vmax.f32 %v3080_v7, 0.0  ;;  %v4756_v7 = vld [vmem:[%s5034_s23 + $0x60] sm:$0xff] }
 0x286   : > { %1883 = vst.msk [vmem:[#allocation2 + $0x53] sm:$0xff] %vm204_vm1, %v1837_v38  ;;  %v3078_v38 = vadd.f32 %v5587_v13, %v3041_v32  ;;  %4597 = vmatpush3.bf16.msra.mxu0 %v4738_v35  ;;  %v3113_v32 = vmax.f32 %v3081_v27, 0.0  ;;  %v3047_v27 = vmul.f32 %v4756_v7, %v5570_v8 }
 0x28a   : > { %v2368_v39 = vld [vmem:[#allocation2 + $0x63] sm:$0xff] }
 0x28b   : > { %v2238_v42 = vld [vmem:[#allocation2 + $0x4b] sm:$0xff] }
 0x28c   : > { %v2369_v40 = vld [vmem:[#allocation2 + $0x6b] sm:$0xff] }
 0x28d   : > { %v2400_v41 = vpack.c.bf16 %v2369_v40, %v2368_v39  ;;  %v2239_v43 = vld [vmem:[#allocation2 + $0x53] sm:$0xff]  ;;  %v3079_v39 = vadd.f32 %v5587_v13, %v3042_v34 }
 0x28e   : > { %v2270_v44 = vpack.c.bf16 %v2239_v43, %v2238_v42  ;;  %v3108_v43 = vmax.f32 %v3076_v36, 0.0  ;;  %v3115_v36 = vmax.f32 %v3083_v2, 0.0  ;;  %v4758_v2 = vld [vmem:[%s5034_s23 + $0x70] sm:$0xff] }
 0x28f   : > { %2432 = vrot.lane.b32.xlu0 %v2400_v41, %s4820_s16  ;;  %2304 = vrot.lane.b32.xlu1 %v2400_v41, %s4818_s4  ;;  %1966 = vst.msk [vmem:[#allocation3 + $0x20] sm:$0xff] %vm204_vm1, %v2400_v41 }
 0x290   : > { %1965 = vst.msk [vmem:[#allocation3 + $0x18] sm:$0xff] %vm204_vm1, %v2270_v44 }
 0x292   : > { %v4568_v45 = vpop.f32.mrb[20].mxu1 }
 0x293   : > { %v1734_v46 = vadd.f32 %v4568_v45, %v5530_v3  ;;  %2177 = vrot.lane.b32.xlu0 %v2400_v41, %s4816_s29  ;;  %2049 = vrot.lane.b32.xlu1 %v2400_v41, %s4813_s26  ;;  %v1725_v47 = vpop.f32.mrb[21].mxu1  ;;  %v3110_v45 = vmax.f32 %v3078_v38, 0.0 }
 0x294   : > { %v1726_v48 = vadd.f32 %v5530_v3, %v1725_v47  ;;  %v4569_v49 = vpop.f32.mrb[22].mxu1 }
 0x295   : > { %v1842_v50 = vmax.f32 %v1734_v46, 0.0  ;;  %v1737_v51 = vadd.f32 %v4569_v49, %v5530_v3  ;;  %v1728_v53 = vpop.f32.mrb[23].mxu1 }
 0x296   : > { %v1840_v54 = vmax.f32 %v1726_v48, 0.0  ;;  %v1729_v55 = vadd.f32 %v5530_v3, %v1728_v53  ;;  %v3111_v48 = vmax.f32 %v3079_v39, 0.0 }
 0x297   : > { %1888 = vst.msk [vmem:[#allocation2 + $0x93] sm:$0xff] %vm204_vm1, %v1842_v50  ;;  %v1843_v56 = vmax.f32 %v1737_v51, 0.0  ;;  %2302 = vrot.lane.b32.xlu0 %v2270_v44, %s4818_s4  ;;  %2175 = vrot.lane.b32.xlu1 %v2270_v44, %s4816_s29 }
 0x298   : > { %1886 = vst.msk [vmem:[#allocation2 + $0x7b] sm:$0xff] %vm204_vm1, %v1840_v54  ;;  %v1841_v57 = vmax.f32 %v1729_v55, 0.0  ;;  %v4739_v54 = vld [vmem:[%s6636_s2 + $0x30] sm:$0xff]  }
 0x299   : > { %1889 = vst.msk [vmem:[#allocation2 + $0x9b] sm:$0xff] %vm204_vm1, %v1843_v56  ;;  %4598 = vmatprep.subr.bf16.mxu0 %v4739_v54 }
 0x29a   : > { %1887 = vst.msk [vmem:[#allocation2 + $0x83] sm:$0xff] %vm204_vm1, %v1841_v57  ;;  %v3140_v57 = vpack.c.bf16 %v3111_v48, %v3110_v45  ;;  %4599 = vmatpush3.bf16.msra.mxu0 %v4739_v54 }
 0x29b   : > { %2047 = vrot.lane.b32.xlu0 %v2270_v44, %s4813_s26  ;;  %v3109_v44 = vmax.f32 %v3077_v37, 0.0 }
 0x29d   : > { %v3139_v53 = vpack.c.bf16 %v3109_v44, %v3108_v43  ;;  %v3142_v43 = vpack.c.bf16 %v3115_v36, %v3114_v33  ;;  %v4759_v33 = vld [vmem:[%s5034_s23 + $0x78] sm:$0xff] }
 0x29e   : > { %v2500_v58 = vld [vmem:[#allocation2 + $0x93] sm:$0xff] }
 0x29f   : > { %v1926_v61 = vld [vmem:[#allocation2 + $0x93] sm:$0xff]  ;;  %v2370_v0 = vld [vmem:[#allocation2 + $0x7b] sm:$0xff]  ;;  %4646 = vmatprep.mubr.msk.bf16.mxu1 %vm456_vm3, %v3139_v53 }
 0x2a0   : > { %v2501_v59 = vld [vmem:[#allocation2 + $0x9b] sm:$0xff]  ;;  %4647 = vmatmul.mubr.msk.bf16.gmra.mrb[52].mxu1 %vm456_vm3, %v3140_v57 }
 0x2a1   : > { %v1927_v62 = vld [vmem:[#allocation2 + $0x9b] sm:$0xff]  ;;  %v2531_v63 = vpack.c.bf16 %v2501_v59, %v2500_v58  ;;  %v2371_v1 = vld [vmem:[#allocation2 + $0x83] sm:$0xff] }
 0x2a2   : > { %v1952_v5 = vpack.c.bf16 %v1927_v62, %v1926_v61  ;;  %v2401_v6 = vpack.c.bf16 %v2371_v1, %v2370_v0  ;;  %v4740_v61 = vld [vmem:[%s6636_s2 + $0x38] sm:$0xff]   ;;  %v4741_v62 = vld [vmem:[%s6636_s2 + $0x40] sm:$0xff]  }
 0x2a3   : > { %2564 = vrot.lane.b32.xlu1 %v2531_v63, %s4821_s20  ;;  %2692 = vrot.lane.b32.xlu0 %v2531_v63, %s4819_s15 }
 0x2a4   : > { %1968 = vst.msk [vmem:[#allocation3 + $0x30] sm:$0xff] %vm204_vm1, %v1952_v5  ;;  %1967 = vst.msk [vmem:[#allocation3 + $0x28] sm:$0xff] %vm204_vm1, %v2401_v6  ;;  %4600 = vmatprep.subr.bf16.mxu0 %v4740_v61 }
 0x2a5   : > { %4601 = vmatpush3.bf16.msra.mxu0 %v4740_v61 }
 0x2a6   : > { %4602 = vmatprep.subr.bf16.mxu0 %v4741_v62 }
 0x2a7   : > { %2308 = vrot.lane.b32.xlu1 %v2531_v63, %s4818_s4  ;;  %2436 = vrot.lane.b32.xlu0 %v2531_v63, %s4820_s16 }
 0x2a9   : > { %4603 = vmatpush3.bf16.msra.mxu0 %v4741_v62 }
 0x2aa   : > { %4604 = vmatprep.subr.bf16.mxu0 %v4742_v18 }
 0x2ab   : > { %2053 = vrot.lane.b32.xlu1 %v2531_v63, %s4813_s26  ;;  %2181 = vrot.lane.b32.xlu0 %v2531_v63, %s4816_s29 }
 0x2ad   : > { %4605 = vmatpush3.bf16.msra.mxu0 %v4742_v18 }
 0x2ae   : > { %4606 = vmatprep.subr.bf16.mxu0 %v4743_v20 }
 0x2af   : > { %2434 = vrot.lane.b32.xlu1 %v2401_v6, %s4820_s16  ;;  %2562 = vrot.lane.b32.xlu0 %v2401_v6, %s4821_s20 }
 0x2b1   : > { %4607 = vmatpush3.bf16.msra.mxu0 %v4743_v20 }
 0x2b3   : > { %2179 = vrot.lane.b32.xlu1 %v2401_v6, %s4816_s29  ;;  %2306 = vrot.lane.b32.xlu0 %v2401_v6, %s4818_s4 }
 0x2b7   : > { %2051 = vrot.lane.b32.xlu0 %v2401_v6, %s4813_s26 }
 0x2c2   : > { %v4572_v40 = vpop.f32.mrb[24].mxu1 }
 0x2c3   : > { %v1750_v41 = vadd.f32 %v4572_v40, %v5530_v3  ;;  %v1741_v42 = vpop.f32.mrb[25].mxu1  ;;  %v3141_v40 = vpack.c.bf16 %v3113_v32, %v3112_v31 }
 0x2c4   : > { %v1742_v46 = vadd.f32 %v5530_v3, %v1741_v42  ;;  %v4573_v47 = vpop.f32.mrb[26].mxu1 }
 0x2c5   : > { %v1846_v49 = vmax.f32 %v1750_v41, 0.0  ;;  %v1753_v50 = vadd.f32 %v4573_v47, %v5530_v3  ;;  %v1744_v51 = vpop.f32.mrb[27].mxu1  ;;  %4650 = vmatprep.mubr.msk.bf16.mxu1 %vm456_vm3, %v3141_v40  ;;  %v3084_v40 = vadd.f32 %v5587_v13, %v3047_v27 }
 0x2c6   : > { %v1844_v55 = vmax.f32 %v1742_v46, 0.0  ;;  %v1745_v56 = vadd.f32 %v5530_v3, %v1744_v51  ;;  %4651 = vmatmul.mubr.msk.bf16.gmra.mrb[56].mxu1 %vm456_vm3, %v3142_v43 }
 0x2c7   : > { %1892 = vst.msk [vmem:[#allocation2 + $0xc3] sm:$0xff] %vm204_vm1, %v1846_v49  ;;  %v1847_v58 = vmax.f32 %v1753_v50, 0.0 }
 0x2c8   : > { %1890 = vst.msk [vmem:[#allocation2 + $0xab] sm:$0xff] %vm204_vm1, %v1844_v55  ;;  %v1845_v59 = vmax.f32 %v1745_v56, 0.0  ;;  %v5697_v55 = vpop.permute.xlu1 %2718 }
 0x2c9   : > { %1893 = vst.msk [vmem:[#allocation2 + $0xcb] sm:$0xff] %vm204_vm1, %v1847_v58 }
 0x2ca   : > { %1891 = vst.msk [vmem:[#allocation2 + $0xb3] sm:$0xff] %vm204_vm1, %v1845_v59 }
 0x2cc   : > { %v5709_v20 = vpop.permute.xlu1 %2462 }
 0x2ce   : > { %v2504_v63 = vld [vmem:[#allocation2 + $0xc3] sm:$0xff] }
 0x2cf   : > { %v1930_v1 = vld [vmem:[#allocation2 + $0xc3] sm:$0xff]  ;;  %v2630_v10 = vld [vmem:[#allocation2 + $0xab] sm:$0xff] }
 0x2d0   : > { %v2505_v0 = vld [vmem:[#allocation2 + $0xcb] sm:$0xff] }
 0x2d1   : > { %v1931_v5 = vld [vmem:[#allocation2 + $0xcb] sm:$0xff]  ;;  %v2533_v6 = vpack.c.bf16 %v2505_v0, %v2504_v63  ;;  %v2631_v12 = vld [vmem:[#allocation2 + $0xb3] sm:$0xff] }
 0x2d2   : > { %v1954_v14 = vpack.c.bf16 %v1931_v5, %v1930_v1  ;;  %v2661_v16 = vpack.c.bf16 %v2631_v12, %v2630_v10 }
 0x2d3   : > { %2568 = vrot.lane.b32.xlu1 %v2533_v6, %s4821_s20  ;;  %2696 = vrot.lane.b32.xlu0 %v2533_v6, %s4819_s15 }
 0x2d4   : > { %1970 = vst.msk [vmem:[#allocation3 + $0x40] sm:$0xff] %vm204_vm1, %v1954_v14  ;;  %1969 = vst.msk [vmem:[#allocation3 + $0x38] sm:$0xff] %vm204_vm1, %v2661_v16 }
 0x2d7   : > { %2312 = vrot.lane.b32.xlu1 %v2533_v6, %s4818_s4  ;;  %2440 = vrot.lane.b32.xlu0 %v2533_v6, %s4820_s16 }
 0x2db   : > { %2057 = vrot.lane.b32.xlu1 %v2533_v6, %s4813_s26  ;;  %2185 = vrot.lane.b32.xlu0 %v2533_v6, %s4816_s29 }
 0x2df   : > { %2694 = vrot.lane.b32.xlu1 %v2661_v16, %s4819_s15  ;;  %2566 = vrot.lane.b32.xlu0 %v2661_v16, %s4821_s20 }
 0x2e3   : > { %2438 = vrot.lane.b32.xlu1 %v2661_v16, %s4820_s16  ;;  %2310 = vrot.lane.b32.xlu0 %v2661_v16, %s4818_s4 }
 0x2e7   : > { %2183 = vrot.lane.b32.xlu1 %v2661_v16, %s4816_s29  ;;  %2055 = vrot.lane.b32.xlu0 %v2661_v16, %s4813_s26 }
 0x2ea   : > { %v4576_v15 = vpop.f32.mrb[28].mxu1 }
 0x2eb   : > { %v1766_v29 = vadd.f32 %v4576_v15, %v5530_v3  ;;  %v1757_v30 = vpop.f32.mrb[29].mxu1  ;;  %v3048_v15 = vmul.f32 %v4757_v28, %v5570_v8 }
 0x2ec   : > { %v1758_v34 = vadd.f32 %v5530_v3, %v1757_v30  ;;  %v4577_v35 = vpop.f32.mrb[30].mxu1 }
 0x2ed   : > { %v1850_v37 = vmax.f32 %v1766_v29, 0.0  ;;  %v1769_v38 = vadd.f32 %v4577_v35, %v5530_v3  ;;  %v1760_v39 = vpop.f32.mrb[31].mxu1  ;;  %v3049_v29 = vmul.f32 %v4758_v2, %v5570_v8 }
 0x2ee   : > { %v1848_v41 = vmax.f32 %v1758_v34, 0.0  ;;  %v1761_v42 = vadd.f32 %v5530_v3, %v1760_v39  ;;  %v3050_v34 = vmul.f32 %v4759_v33, %v5570_v8 }
 0x2ef   : > { %1896 = vst.msk [vmem:[#allocation2 + $0xf3] sm:$0xff] %vm204_vm1, %v1850_v37  ;;  %v1851_v44 = vmax.f32 %v1769_v38, 0.0 }
 0x2f0   : > { %1894 = vst.msk [vmem:[#allocation2 + $0xdb] sm:$0xff] %vm204_vm1, %v1848_v41  ;;  %v1849_v45 = vmax.f32 %v1761_v42, 0.0  ;;  %v3085_v41 = vadd.f32 %v5587_v13, %v3048_v15  ;;  %v3086_v42 = vadd.f32 %v5587_v13, %v3049_v29 }
 0x2f1   : > { %1897 = vst.msk [vmem:[#allocation2 + $0xfb] sm:$0xff] %vm204_vm1, %v1851_v44 }
 0x2f2   : > { %1895 = vst.msk [vmem:[#allocation2 + $0xe3] sm:$0xff] %vm204_vm1, %v1849_v45  ;;  %v4580_v46 = vpop.f32.mrb[32].mxu1  ;;  %v3087_v45 = vadd.f32 %v5587_v13, %v3050_v34  ;;  %v5791_v34 = vld [vmem:[%s5034_s23 + $0x80] sm:$0xff] }
 0x2f3   : > { %v1782_v47 = vadd.f32 %v4580_v46, %v5530_v3  ;;  %v1773_v48 = vpop.f32.mrb[33].mxu1 }
 0x2f4   : > { %v1774_v49 = vadd.f32 %v5530_v3, %v1773_v48  ;;  %v4581_v50 = vpop.f32.mrb[34].mxu1  ;;  %v3116_v48 = vmax.f32 %v3084_v40, 0.0 }
 0x2f5   : > { %v1854_v51 = vmax.f32 %v1782_v47, 0.0  ;;  %v1785_v53 = vadd.f32 %v4581_v50, %v5530_v3  ;;  %v1776_v54 = vpop.f32.mrb[35].mxu1  ;;  %v3118_v50 = vmax.f32 %v3086_v42, 0.0 }
 0x2f6   : > { %v1852_v56 = vmax.f32 %v1774_v49, 0.0  ;;  %v1777_v57 = vadd.f32 %v5530_v3, %v1776_v54  ;;  %v2508_v59 = vld [vmem:[#allocation2 + $0xf3] sm:$0xff]  ;;  %v3117_v49 = vmax.f32 %v3085_v41, 0.0  ;;  %v3119_v54 = vmax.f32 %v3087_v45, 0.0 }
 0x2f7   : > { %1900 = vst.msk [vmem:[#allocation2 + $0x123] sm:$0xff] %vm204_vm1, %v1854_v51  ;;  %v1855_v58 = vmax.f32 %v1785_v53, 0.0  ;;  %v1934_v63 = vld [vmem:[#allocation2 + $0xf3] sm:$0xff]  ;;  %v2634_v5 = vld [vmem:[#allocation2 + $0xdb] sm:$0xff] }
 0x2f8   : > { %1898 = vst.msk [vmem:[#allocation2 + $0x10b] sm:$0xff] %vm204_vm1, %v1852_v56  ;;  %v1853_v61 = vmax.f32 %v1777_v57, 0.0  ;;  %v2509_v62 = vld [vmem:[#allocation2 + $0xfb] sm:$0xff] }
 0x2f9   : > { %v1935_v0 = vld [vmem:[#allocation2 + $0xfb] sm:$0xff]  ;;  %1901 = vst.msk [vmem:[#allocation2 + $0x12b] sm:$0xff] %vm204_vm1, %v1855_v58  ;;  %v2535_v1 = vpack.c.bf16 %v2509_v62, %v2508_v59  ;;  %v2635_v6 = vld [vmem:[#allocation2 + $0xe3] sm:$0xff] }
 0x2fa   : > { %v1956_v10 = vpack.c.bf16 %v1935_v0, %v1934_v63  ;;  %1899 = vst.msk [vmem:[#allocation2 + $0x113] sm:$0xff] %vm204_vm1, %v1853_v61  ;;  %v4584_v12 = vpop.f32.mrb[36].mxu1  ;;  %v5704_v14 = vpack.c.bf16 %v2635_v6, %v2634_v5  ;;  %v3143_v61 = vpack.c.bf16 %v3117_v49, %v3116_v48  ;;  %v3144_v0 = vpack.c.bf16 %v3119_v54, %v3118_v50 }
 0x2fb   : > { %v1798_v16 = vadd.f32 %v4584_v12, %v5530_v3  ;;  %v1789_v18 = vpop.f32.mrb[37].mxu1  ;;  %2572 = vrot.lane.b32.xlu1 %v2535_v1, %s4821_s20  ;;  %2700 = vrot.lane.b32.xlu0 %v2535_v1, %s4819_s15 }
 0x2fc   : > { %1972 = vst.msk [vmem:[#allocation3 + $0x50] sm:$0xff] %vm204_vm1, %v1956_v10  ;;  %v1790_v21 = vadd.f32 %v5530_v3, %v1789_v18  ;;  %v4585_v22 = vpop.f32.mrb[38].mxu1  ;;  %1971 = vst.msk [vmem:[#allocation3 + $0x48] sm:$0xff] %vm204_vm1, %v5704_v14  ;;  %4654 = vmatprep.mubr.msk.bf16.mxu1 %vm456_vm3, %v3143_v61 }
 0x2fd   : > { %v1858_v23 = vmax.f32 %v1798_v16, 0.0  ;;  %v1801_v24 = vadd.f32 %v4585_v22, %v5530_v3  ;;  %v1792_v52 = vpop.f32.mrb[39].mxu1  ;;  %4655 = vmatmul.mubr.msk.bf16.gmra.mrb[60].mxu1 %vm456_vm3, %v3144_v0 }
 0x2fe   : > { %v1856_v60 = vmax.f32 %v1790_v21, 0.0  ;;  %v1793_v25 = vadd.f32 %v5530_v3, %v1792_v52  ;;  %v2512_v31 = vld [vmem:[#allocation2 + $0x123] sm:$0xff] }
 0x2ff   : > { %1904 = vst.msk [vmem:[#allocation2 + $0x153] sm:$0xff] %vm204_vm1, %v1858_v23  ;;  %v1859_v26 = vmax.f32 %v1801_v24, 0.0  ;;  %2316 = vrot.lane.b32.xlu1 %v2535_v1, %s4818_s4  ;;  %2444 = vrot.lane.b32.xlu0 %v2535_v1, %s4820_s16  ;;  %v2638_v38 = vld [vmem:[#allocation2 + $0x10b] sm:$0xff] }
 0x300   : > { %1902 = vst.msk [vmem:[#allocation2 + $0x13b] sm:$0xff] %vm204_vm1, %v1856_v60  ;;  %v1857_v30 = vmax.f32 %v1793_v25, 0.0  ;;  %v2513_v32 = vld [vmem:[#allocation2 + $0x12b] sm:$0xff] }
 0x301   : > { %1905 = vst.msk [vmem:[#allocation2 + $0x15b] sm:$0xff] %vm204_vm1, %v1859_v26  ;;  %v2433_v35 = vpop.permute.xlu0 %2432  ;;  %v2305_v36 = vpop.permute.xlu1 %2304  ;;  %v5730_v37 = vpack.c.bf16 %v2513_v32, %v2512_v31  ;;  %v2639_v39 = vld [vmem:[#allocation2 + $0x113] sm:$0xff] }
 0x302   : > { %1903 = vst.msk [vmem:[#allocation2 + $0x143] sm:$0xff] %vm204_vm1, %v1857_v30  ;;  %v4588_v43 = vpop.f32.mrb[40].mxu1  ;;  %v5736_v44 = vpack.c.bf16 %v2639_v39, %v2638_v38 }
 0x303   : > { %v1814_v46 = vadd.f32 %v4588_v43, %v5530_v3  ;;  %v1805_v47 = vpop.f32.mrb[41].mxu1  ;;  %2061 = vrot.lane.b32.xlu1 %v2535_v1, %s4813_s26  ;;  %2189 = vrot.lane.b32.xlu0 %v2535_v1, %s4816_s29  ;;  %1974 = vst.msk [vmem:[#allocation3 + $0x60] sm:$0xff] %vm204_vm1, %v5730_v37  ;;  %v4762_v43 = vld [vmem:[%s5034_s23 + $0x90] sm:$0xff] }
 0x304   : > { %v1806_v51 = vadd.f32 %v5530_v3, %v1805_v47  ;;  %v4589_v53 = vpop.f32.mrb[42].mxu1  ;;  %1973 = vst.msk [vmem:[#allocation3 + $0x58] sm:$0xff] %vm204_vm1, %v5736_v44  ;;  %v3053_v45 = vmul.f32 %v4762_v43, %v5570_v8 }
 0x305   : > { %v1862_v56 = vmax.f32 %v1814_v46, 0.0  ;;  %v1817_v57 = vadd.f32 %v4589_v53, %v5530_v3  ;;  %v2178_v58 = vpop.permute.xlu0 %2177  ;;  %v2050_v59 = vpop.permute.xlu1 %2049  ;;  %v4763_v46 = vld [vmem:[%s5034_s23 + $0x98] sm:$0xff] }
 0x306   : > { %v1860_v62 = vmax.f32 %v1806_v51, 0.0  ;;  %2095 = vst.msk [vmem:[#allocation3 + $0x18] sm:$0xff] %vm2091_vm13, %v2050_v59  ;;  %v1808_v63 = vpop.f32.mrb[43].mxu1  ;;  %v2516_v6 = vld [vmem:[#allocation2 + $0x153] sm:$0xff]  ;;  %v3054_v47 = vmul.f32 %v4763_v46, %v5570_v8  ;;  %v3090_v53 = vadd.f32 %v5587_v13, %v3053_v45 }
 0x307   : > { %1908 = vst.msk [vmem:[#allocation2 + $0x183] sm:$0xff] %vm204_vm1, %v1862_v56  ;;  %v1863_v1 = vmax.f32 %v1817_v57, 0.0  ;;  %v1809_v5 = vadd.f32 %v5530_v3, %v1808_v63  ;;  %2698 = vrot.lane.b32.xlu1 %v5704_v14, %s4819_s15  ;;  %2570 = vrot.lane.b32.xlu0 %v5704_v14, %s4821_s20  ;;  %v2642_v22 = vld [vmem:[#allocation2 + $0x13b] sm:$0xff] }
 0x308   : > { %1906 = vst.msk [vmem:[#allocation2 + $0x16b] sm:$0xff] %vm204_vm1, %v1860_v62  ;;  %v2517_v10 = vld [vmem:[#allocation2 + $0x15b] sm:$0xff]  ;;  %v3091_v54 = vadd.f32 %v5587_v13, %v3054_v47  ;;  %v3122_v57 = vmax.f32 %v3090_v53, 0.0 }
 0x309   : > { %1909 = vst.msk [vmem:[#allocation2 + $0x18b] sm:$0xff] %vm204_vm1, %v1863_v1  ;;  %v1861_v12 = vmax.f32 %v1809_v5, 0.0  ;;  %v2303_v16 = vpop.permute.xlu0 %2302  ;;  %v2176_v18 = vpop.permute.xlu1 %2175  ;;  %v5758_v21 = vpack.c.bf16 %v2517_v10, %v2516_v6  ;;  %v2643_v23 = vld [vmem:[#allocation2 + $0x143] sm:$0xff] }
 0x30a   : > { %2351 = vst.msk [vmem:[#allocation3] sm:$0xff] %vm2350_vm15, %v2303_v16  ;;  %v4592_v24 = vpop.f32.mrb[44].mxu1  ;;  %v5763_v52 = vpack.c.bf16 %v2643_v23, %v2642_v22  ;;  %v4767_v23 = vld [vmem:[%s5034_s23 + $0xb8] sm:$0xff] }
 0x30b   : > { %2223 = vst.msk [vmem:[#allocation3 + $0x8] sm:$0xff] %vm2221_vm14, %v2176_v18  ;;  %2442 = vrot.lane.b32.xlu1 %v5704_v14, %s4820_s16  ;;  %2314 = vrot.lane.b32.xlu0 %v5704_v14, %s4818_s4  ;;  %v1830_v60 = vadd.f32 %v4592_v24, %v5530_v3  ;;  %v1821_v25 = vpop.f32.mrb[45].mxu1  ;;  %v4766_v18 = vld [vmem:[%s5034_s23 + $0xb0] sm:$0xff]  ;;  %v3058_v24 = vmul.f32 %v4767_v23, %v5570_v8 }
 0x30c   : > { %1907 = vst.msk [vmem:[#allocation2 + $0x173] sm:$0xff] %vm204_vm1, %v1861_v12  ;;  %1976 = vst.msk [vmem:[#allocation3 + $0x70] sm:$0xff] %vm204_vm1, %v5758_v21  ;;  %v1822_v26 = vadd.f32 %v5530_v3, %v1821_v25  ;;  %v4593_v7 = vpop.f32.mrb[46].mxu1  ;;  %v4765_v12 = vld [vmem:[%s5034_s23 + $0xa8] sm:$0xff]  ;;  %v3057_v22 = vmul.f32 %v4766_v18, %v5570_v8 }
 0x30d   : > { %2352 = vst.msk [vmem:[#allocation3 + $0x8] sm:$0xff] %vm2350_vm15, %v2305_v36  ;;  %v2048_v27 = vpop.permute.xlu0 %2047  ;;  %v1866_v28 = vmax.f32 %v1830_v60, 0.0  ;;  %v1833_v15 = vadd.f32 %v4593_v7, %v5530_v3  ;;  %v1824_v2 = vpop.f32.mrb[47].mxu1  ;;  %v3056_v16 = vmul.f32 %v4765_v12, %v5570_v8  ;;  %v3095_v7 = vadd.f32 %v5587_v13, %v3058_v24 }
 0x30e   : > { %2481 = vst.msk [vmem:[#allocation3] sm:$0xff] %vm2480_vm4, %v2433_v35  ;;  %v1864_v29 = vmax.f32 %v1822_v26, 0.0  ;;  %v1825_v30 = vadd.f32 %v5530_v3, %v1824_v2  ;;  %v3051_v35 = vmul.f32 %v5791_v34, %v5570_v8  ;;  %v3094_v26 = vadd.f32 %v5587_v13, %v3057_v22  ;;  %v5877_v2 = vld [vmem:[%s6636_s2 + $0x5c] sm:$0x3] }
 0x30f   : > { %1975 = vst.msk [vmem:[#allocation3 + $0x68] sm:$0xff] %vm204_vm1, %v5763_v52  ;;  %2187 = vrot.lane.b32.xlu1 %v5704_v14, %s4816_s29  ;;  %2059 = vrot.lane.b32.xlu0 %v5704_v14, %s4813_s26  ;;  %1912 = vst.msk [vmem:[#allocation2 + $0x1b3] sm:$0xff] %vm204_vm1, %v1866_v28  ;;  %v1867_v31 = vmax.f32 %v1833_v15, 0.0  ;;  %v2646_v33 = vld [vmem:[#allocation2 + $0x16b] sm:$0xff]  ;;  %v3093_v25 = vadd.f32 %v5587_v13, %v3056_v16 }
 0x310   : > { %2094 = vst.msk [vmem:[#allocation3 + $0x10] sm:$0xff] %vm2091_vm13, %v2048_v27  ;;  %v1865_v32 = vmax.f32 %v1825_v30, 0.0  ;;  %v5796_v14 = vld [vmem:[%s5034_s23 + $0x88] sm:$0xff]  ;;  %v3088_v41 = vadd.f32 %v5587_v13, %v3051_v35  ;;  %v3126_v15 = vmax.f32 %v3094_v26, 0.0  ;;  %4714 = vmatprep.subr.msk.bf16.mxu0 %vm505_vm0, %v5877_v2 }
 0x311   : > { %2224 = vst.msk [vmem:[#allocation3 + $0x10] sm:$0xff] %vm2221_vm14, %v2178_v58  ;;  %v3052_v36 = vmul.f32 %v5796_v14, %v5570_v8  ;;  %v3123_v58 = vmax.f32 %v3091_v54, 0.0  ;;  %v3125_v28 = vmax.f32 %v3093_v25, 0.0 }
 0x312   : > { %1910 = vst.msk [vmem:[#allocation2 + $0x19b] sm:$0xff] %vm204_vm1, %v1864_v29  ;;  %1913 = vst.msk [vmem:[#allocation2 + $0x1bb] sm:$0xff] %vm204_vm1, %v1867_v31  ;;  %v3120_v50 = vmax.f32 %v3088_v41, 0.0  ;;  %v3127_v29 = vmax.f32 %v3095_v7, 0.0 }
 0x313   : > { %1911 = vst.msk [vmem:[#allocation2 + $0x1a3] sm:$0xff] %vm204_vm1, %v1865_v32  ;;  %v2647_v3 = vld [vmem:[#allocation2 + $0x173] sm:$0xff]  ;;  %2576 = vrot.lane.b32.xlu1 %v5730_v37, %s4821_s20  ;;  %2704 = vrot.lane.b32.xlu0 %v5730_v37, %s4819_s15  ;;  %v3089_v42 = vadd.f32 %v5587_v13, %v3052_v36  ;;  %v3146_v62 = vpack.c.bf16 %v3123_v58, %v3122_v57  ;;  %v2520_v32 = vld [vmem:[#allocation2 + $0x183] sm:$0xff] }
 0x314   : > { %v5804_v38 = vpack.c.bf16 %v2647_v3, %v2646_v33  ;;  %v3148_v31 = vpack.c.bf16 %v3127_v29, %v3126_v15  ;;  %v4768_v3 = vld [vmem:[%s5034_s23 + $0xc0] sm:$0xff]  ;;  %v4769_v36 = vld [vmem:[%s5034_s23 + $0xc8] sm:$0xff] }
 0x315   : > { %v2565_v39 = vpop.permute.xlu1 %2564  ;;  %v2693_v40 = vpop.permute.xlu0 %2692  ;;  %v3121_v51 = vmax.f32 %v3089_v42, 0.0  ;;  %v3059_v35 = vmul.f32 %v4768_v3, %v5570_v8  ;;  %v4771_v42 = vld [vmem:[%s5034_s23 + $0xd8] sm:$0xff] }
 0x316   : > { %1977 = vst.msk [vmem:[#allocation3 + $0x78] sm:$0xff] %vm204_vm1, %v5804_v38  ;;  %vm2610_vm1 = vcmask 786048   ;;  %v3062_v43 = vmul.f32 %v4771_v42, %v5570_v8  ;;  %v2524_v15 = vld [vmem:[#allocation2 + $0x1b3] sm:$0xff] }
 0x317   : > { %2320 = vrot.lane.b32.xlu1 %v5730_v37, %s4818_s4  ;;  %2448 = vrot.lane.b32.xlu0 %v5730_v37, %s4820_s16  ;;  %v3145_v56 = vpack.c.bf16 %v3121_v51, %v3120_v50  ;;  %v3096_v46 = vadd.f32 %v5587_v13, %v3059_v35  ;;  %v5964_v35 = vld [vmem:[%s6635_s1 + $0x8] ss:$0 sm:$0xff] }
 0x318   : > { %v3828_v42 = vmul.f32 %v5578_v11, %v5964_v35  ;;  %v3825_v11 = vmul.f32 %v5594_v17, %v5964_v35 }
 0x319   : > { %v2309_v48 = vpop.permute.xlu1 %2308  ;;  %v2437_v49 = vpop.permute.xlu0 %2436  ;;  %4658 = vmatprep.mubr.msk.bf16.mxu1 %vm456_vm3, %v3145_v56  ;;  %v3128_v50 = vmax.f32 %v3096_v46, 0.0  ;;  %v2525_v29 = vld [vmem:[#allocation2 + $0x1bb] sm:$0xff]  ;;  %v2529_v46 = vld [vmem:[#allocation2 + $0x1eb] sm:$0xff] }
 0x31a   : > { %4659 = vmatmul.mubr.msk.bf16.gmra.mrb[64].mxu1 %vm456_vm3, %v3146_v62 }
 0x31b   : > { %2065 = vrot.lane.b32.xlu1 %v5730_v37, %s4813_s26  ;;  %2193 = vrot.lane.b32.xlu0 %v5730_v37, %s4816_s29 }
 0x31d   : > { %v2054_v59 = vpop.permute.xlu1 %2053  ;;  %v2182_v61 = vpop.permute.xlu0 %2181 }
 0x31e   : > { %2097 = vst.msk [vmem:[#allocation3 + $0x28] sm:$0xff] %vm2091_vm13, %v2054_v59 }
 0x31f   : > { %2702 = vrot.lane.b32.xlu1 %v5736_v44, %s4819_s15  ;;  %2574 = vrot.lane.b32.xlu0 %v5736_v44, %s4821_s20 }
 0x321   : > { %v2435_v37 = vpop.permute.xlu1 %2434  ;;  %v2563_v63 = vpop.permute.xlu0 %2562 }
 0x322   : > { %2482 = vst.msk [vmem:[#allocation3 + $0x8] sm:$0xff] %vm2480_vm4, %v2435_v37  ;;  %v4773_v37 = vld [vmem:[%s5034_s23 + $0xe8] sm:$0xff] }
 0x323   : > { %2611 = vst.msk [vmem:[#allocation3] sm:$0xff] %vm2610_vm1, %v2563_v63  ;;  %2612 = vst.msk [vmem:[#allocation3 + $0x8] sm:$0xff] %vm2610_vm1, %v2565_v39  ;;  %2446 = vrot.lane.b32.xlu1 %v5736_v44, %s4820_s16  ;;  %2318 = vrot.lane.b32.xlu0 %v5736_v44, %s4818_s4  ;;  %v3060_v39 = vmul.f32 %v4769_v36, %v5570_v8  ;;  %v3064_v63 = vmul.f32 %v4773_v37, %v5570_v8  ;;  %v2526_v36 = vld [vmem:[#allocation2 + $0x1cb] sm:$0xff] }
 0x324   : > { %2741 = vst.msk [vmem:[#allocation3] sm:$0xff] %vm2740_vm5, %v2693_v40  ;;  %v4770_v40 = vld [vmem:[%s5034_s23 + $0xd0] sm:$0xff] }
 0x325   : > { %v2180_v0 = vpop.permute.xlu1 %2179  ;;  %v2307_v1 = vpop.permute.xlu0 %2306  ;;  %v3061_v41 = vmul.f32 %v4770_v40, %v5570_v8  ;;  %v3097_v47 = vadd.f32 %v5587_v13, %v3060_v39  ;;  %v3101_v16 = vadd.f32 %v5587_v13, %v3064_v63  ;;  %v2527_v39 = vld [vmem:[#allocation2 + $0x1d3] sm:$0xff] }
 0x326   : > { %2225 = vst.msk [vmem:[#allocation3 + $0x18] sm:$0xff] %vm2221_vm14, %v2180_v0  ;;  %v4774_v0 = vld [vmem:[%s5034_s23 + $0xf0] sm:$0xff] }
 0x327   : > { %2353 = vst.msk [vmem:[#allocation3 + $0x10] sm:$0xff] %vm2350_vm15, %v2307_v1  ;;  %2354 = vst.msk [vmem:[#allocation3 + $0x18] sm:$0xff] %vm2350_vm15, %v2309_v48  ;;  %2191 = vrot.lane.b32.xlu1 %v5736_v44, %s4816_s29  ;;  %2063 = vrot.lane.b32.xlu0 %v5736_v44, %s4813_s26  ;;  %v4764_v44 = vld [vmem:[%s5034_s23 + $0xa0] sm:$0xff]  ;;  %v3098_v48 = vadd.f32 %v5587_v13, %v3061_v41  ;;  %v3129_v51 = vmax.f32 %v3097_v47, 0.0  ;;  %v3065_v1 = vmul.f32 %v4774_v0, %v5570_v8 }
 0x328   : > { %2483 = vst.msk [vmem:[#allocation3 + $0x10] sm:$0xff] %vm2480_vm4, %v2437_v49  ;;  %v3055_v10 = vmul.f32 %v4764_v44, %v5570_v8  ;;  %v3099_v49 = vadd.f32 %v5587_v13, %v3062_v43  ;;  %v3133_v23 = vmax.f32 %v3101_v16, 0.0  ;;  %v3827_v41 = vmul.f32 %v5573_v9, %v5964_v35 }
 0x329   : > { %v2052_v5 = vpop.permute.xlu0 %2051  ;;  %v3130_v53 = vmax.f32 %v3098_v48, 0.0  ;;  %v3149_v58 = vpack.c.bf16 %v3129_v51, %v3128_v50  ;;  %v3102_v18 = vadd.f32 %v5587_v13, %v3065_v1  ;;  %v2544_v43 = vpack.c.bf16 %v2527_v39, %v2526_v36 }
 0x32a   : > { %2096 = vst.msk [vmem:[#allocation3 + $0x20] sm:$0xff] %vm2091_vm13, %v2052_v5  ;;  %v3092_v60 = vadd.f32 %v5587_v13, %v3055_v10  ;;  %v3131_v54 = vmax.f32 %v3099_v49, 0.0  ;;  %v4775_v5 = vld [vmem:[%s5034_s23 + $0xf8] sm:$0xff]  ;;  %v3826_v49 = vmul.f32 %v5599_v19, %v5964_v35 }
 0x32b   : > { %v2757_v6 = vld [vmem:[#allocation3] sm:$0xff]  ;;  %2226 = vst.msk [vmem:[#allocation3 + $0x20] sm:$0xff] %vm2221_vm14, %v2182_v61  ;;  %2580 = vrot.lane.b32.xlu1 %v5758_v21, %s4821_s20  ;;  %2708 = vrot.lane.b32.xlu0 %v5758_v21, %s4819_s15  ;;  %v4772_v61 = vld [vmem:[%s5034_s23 + $0xe0] sm:$0xff]  ;;  %v3134_v24 = vmax.f32 %v3102_v18, 0.0 }
 0x32c   : > { %4608 = vmatprep.mubr.msk.bf16.mxu0 %vm2820_vm6, %v2757_v6  ;;  %v3124_v27 = vmax.f32 %v3092_v60, 0.0  ;;  %v3150_v59 = vpack.c.bf16 %v3131_v54, %v3130_v53  ;;  %v3063_v62 = vmul.f32 %v4772_v61, %v5570_v8  ;;  %v3066_v6 = vmul.f32 %v4775_v5, %v5570_v8  ;;  %v2658_v53 = vld [vmem:[#allocation2 + $0x1fb] sm:$0xff]  ;;  %v2659_v54 = vld [vmem:[#allocation2 + $0x203] sm:$0xff] }
 0x32d   : > { %v2675_v17 = vpack.c.bf16 %v2659_v54, %v2658_v53 }
 0x32e   : > { %v3147_v30 = vpack.c.bf16 %v3125_v28, %v3124_v27  ;;  %v3100_v12 = vadd.f32 %v5587_v13, %v3063_v62  ;;  %v3103_v22 = vadd.f32 %v5587_v13, %v3066_v6 }
 0x32f   : > { %2324 = vrot.lane.b32.xlu1 %v5758_v21, %s4818_s4  ;;  %2452 = vrot.lane.b32.xlu0 %v5758_v21, %s4820_s16 }
 0x330   : > { %4662 = vmatprep.mubr.msk.bf16.mxu1 %vm456_vm3, %v3147_v30  ;;  %v3132_v8 = vmax.f32 %v3100_v12, 0.0  ;;  %v3135_v60 = vmax.f32 %v3103_v22, 0.0 }
 0x331   : > { %4663 = vmatmul.mubr.msk.bf16.gmra.mrb[68].mxu1 %vm456_vm3, %v3148_v31 }
 0x332   : > { %4666 = vmatprep.mubr.msk.bf16.mxu1 %vm456_vm3, %v3149_v58  ;;  %v3151_v7 = vpack.c.bf16 %v3133_v23, %v3132_v8  ;;  %v3152_v27 = vpack.c.bf16 %v3135_v60, %v3134_v24 }
 0x333   : > { %2069 = vrot.lane.b32.xlu1 %v5758_v21, %s4813_s26  ;;  %2197 = vrot.lane.b32.xlu0 %v5758_v21, %s4816_s29  ;;  %v2521_v21 = vld [vmem:[#allocation2 + $0x18b] sm:$0xff] }
 0x334   : > { %v2541_v33 = vpack.c.bf16 %v2521_v21, %v2520_v32  ;;  %v2543_v32 = vpack.c.bf16 %v2525_v29, %v2524_v15 }
 0x337   : > { %2706 = vrot.lane.b32.xlu1 %v5763_v52, %s4819_s15  ;;  %2578 = vrot.lane.b32.xlu0 %v5763_v52, %s4821_s20 }
 0x339   : > { %4667 = vmatmul.mubr.msk.bf16.gmra.mrb[72].mxu1 %vm456_vm3, %v3150_v59 }
 0x33a   : > { %4670 = vmatprep.mubr.msk.bf16.mxu1 %vm456_vm3, %v3151_v7  ;;  %v3842_v7 = vmul.f32 %v5796_v14, %v5964_v35 }
 0x33b   : > { %2450 = vrot.lane.b32.xlu1 %v5763_v52, %s4820_s16  ;;  %2322 = vrot.lane.b32.xlu0 %v5763_v52, %s4818_s4 }
 0x33f   : > { %2195 = vrot.lane.b32.xlu1 %v5763_v52, %s4816_s29  ;;  %2067 = vrot.lane.b32.xlu0 %v5763_v52, %s4813_s26 }
 0x341   : > { %4671 = vmatmul.mubr.msk.bf16.gmra.mrb[76].mxu1 %vm456_vm3, %v3152_v27 }
 0x343   : > { %2584 = vrot.lane.b32.xlu1 %v2541_v33, %s4821_s20  ;;  %2712 = vrot.lane.b32.xlu0 %v2541_v33, %s4819_s15 }
 0x345   : > { %v2569_v45 = vpop.permute.xlu1 %2568  ;;  %v2697_v52 = vpop.permute.xlu0 %2696 }
 0x347   : > { %2328 = vrot.lane.b32.xlu1 %v2541_v33, %s4818_s4  ;;  %2456 = vrot.lane.b32.xlu0 %v2541_v33, %s4820_s16 }
 0x349   : > { %v2313_v56 = vpop.permute.xlu1 %2312  ;;  %v2441_v57 = vpop.permute.xlu0 %2440 }
 0x34b   : > { %2073 = vrot.lane.b32.xlu1 %v2541_v33, %s4813_s26  ;;  %2201 = vrot.lane.b32.xlu0 %v2541_v33, %s4816_s29  ;;  %v3997_v33 = vsel %vm505_vm0, %v5877_v2, 0  ;;  %v2651_v2 = vld [vmem:[#allocation2 + $0x1a3] sm:$0xff]  ;;  %vm275_vm0 = vcmask 58368  }
 0x34c   : > { %282 = vst.msk [vmem:[#allocation4 + $0x40] sm:$0x3] %vm275_vm0, %v4812_v4  ;;  %276 = vst.msk [vmem:[#allocation4 + $0x10] sm:$0x3] %vm275_vm0, %v4812_v4 }
 0x34d   : > { %v2058_v44 = vpop.permute.xlu1 %2057  ;;  %v2186_v10 = vpop.permute.xlu0 %2185  ;;  %279 = vst.msk [vmem:[#allocation4 + $0x28] sm:$0x3] %vm275_vm0, %v4812_v4  ;;  %285 = vst.msk [vmem:[#allocation4 + $0x58] sm:$0x3] %vm275_vm0, %v4812_v4 }
 0x34e   : > { %2099 = vst.msk [vmem:[#allocation3 + $0x38] sm:$0xff] %vm2091_vm13, %v2058_v44 }
 0x34f   : > { %2710 = vrot.lane.b32.xlu1 %v5804_v38, %s4819_s15  ;;  %2582 = vrot.lane.b32.xlu0 %v5804_v38, %s4821_s20  ;;  %288 = vst.msk [vmem:[#allocation4 + $0x70] sm:$0x3] %vm275_vm0, %v4812_v4  ;;  %291 = vst.msk [vmem:[#allocation4 + $0x88] sm:$0x3] %vm275_vm0, %v4812_v4 }
 0x350   : > { %294 = vst.msk [vmem:[#allocation4 + $0xa0] sm:$0x3] %vm275_vm0, %v4812_v4  ;;  %297 = vst.msk [vmem:[#allocation4 + $0xb8] sm:$0x3] %vm275_vm0, %v4812_v4 }
 0x351   : > { %v2695_v25 = vpop.permute.xlu1 %2694  ;;  %v2567_v26 = vpop.permute.xlu0 %2566  ;;  %300 = vst.msk [vmem:[#allocation4 + $0xd0] sm:$0x3] %vm275_vm0, %v4812_v4  ;;  %303 = vst.msk [vmem:[#allocation4 + $0xe8] sm:$0x3] %vm275_vm0, %v4812_v4 }
 0x352   : > { %2742 = vst.msk [vmem:[#allocation3 + $0x8] sm:$0xff] %vm2740_vm5, %v2695_v25 }
 0x353   : > { %2613 = vst.msk [vmem:[#allocation3 + $0x10] sm:$0xff] %vm2610_vm1, %v2567_v26  ;;  %2454 = vrot.lane.b32.xlu1 %v5804_v38, %s4820_s16  ;;  %2326 = vrot.lane.b32.xlu0 %v5804_v38, %s4818_s4  ;;  %v3841_v26 = vmul.f32 %v5791_v34, %v5964_v35  ;;  %v6058_v34 = vld [vmem:[%s6635_s1 + $0x7] ss:$0 sm:$0xff] }
 0x354   : > { %2743 = vst.msk [vmem:[#allocation3 + $0x10] sm:$0xff] %vm2740_vm5, %v2697_v52  ;;  %v2528_v52 = vld [vmem:[#allocation2 + $0x1e3] sm:$0xff] }
 0x355   : > { %v2439_v13 = vpop.permute.xlu1 %2438  ;;  %v2311_v28 = vpop.permute.xlu0 %2310  ;;  %v2545_v9 = vpack.c.bf16 %v2529_v46, %v2528_v52  ;;  %306 = vst.msk [vmem:[#allocation4 + $0x100] sm:$0x3] %vm275_vm0, %v4812_v4  ;;  %309 = vst.msk [vmem:[#allocation4 + $0x118] sm:$0x3] %vm275_vm0, %v4812_v4 }
 0x356   : > { %2484 = vst.msk [vmem:[#allocation3 + $0x18] sm:$0xff] %vm2480_vm4, %v2439_v13 }
 0x357   : > { %2355 = vst.msk [vmem:[#allocation3 + $0x20] sm:$0xff] %vm2350_vm15, %v2311_v28  ;;  %2199 = vrot.lane.b32.xlu1 %v5804_v38, %s4816_s29  ;;  %2071 = vrot.lane.b32.xlu0 %v5804_v38, %s4813_s26  ;;  %v2650_v38 = vld [vmem:[#allocation2 + $0x19b] sm:$0xff] }
 0x358   : > { %2614 = vst.msk [vmem:[#allocation3 + $0x18] sm:$0xff] %vm2610_vm1, %v2569_v45  ;;  %v2671_v40 = vpack.c.bf16 %v2651_v2, %v2650_v38  ;;  %v5975_v45 = vld [vmem:[%s6635_s1 + $0x9] ss:$0 sm:$0xff] }
 0x359   : > { %2485 = vst.msk [vmem:[#allocation3 + $0x20] sm:$0xff] %vm2480_vm4, %v2441_v57  ;;  %v2184_v30 = vpop.permute.xlu1 %2183  ;;  %v2056_v31 = vpop.permute.xlu0 %2055  ;;  %v2758_v21 = vld [vmem:[#allocation3 + $0x8] sm:$0xff]  ;;  %v3864_v47 = vadd.f32 %v5975_v45, %v3827_v41  ;;  %v3865_v48 = vadd.f32 %v5975_v45, %v3828_v42  ;;  %v3862_v58 = vadd.f32 %v5975_v45, %v3825_v11  ;;  %v3863_v59 = vadd.f32 %v5975_v45, %v3826_v49 }
 0x35a   : > { %2227 = vst.msk [vmem:[#allocation3 + $0x28] sm:$0xff] %vm2221_vm14, %v2184_v30  ;;  %4609 = vmatmul.mubr.msk.bf16.vlgmr.msra.gmra.mrb[16].mxu0 %vm2820_vm6, %v2758_v21  ;;  %v3878_v28 = vadd.f32 %v5975_v45, %v3841_v26  ;;  %v3879_v15 = vadd.f32 %v5975_v45, %v3842_v7  ;;  %v4644_v21 = vpop.f32.mrb[48].mxu1 }
 0x35b   : > { %2098 = vst.msk [vmem:[#allocation3 + $0x30] sm:$0xff] %vm2091_vm13, %v2056_v31  ;;  %v2759_v3 = vld [vmem:[#allocation3 + $0x10] sm:$0xff]  ;;  %2588 = vrot.lane.b32.xlu1 %v2543_v32, %s4821_s20  ;;  %2716 = vrot.lane.b32.xlu0 %v2543_v32, %s4819_s15  ;;  %v3896_v50 = vmax.f32 %v3864_v47, 0.0  ;;  %v3897_v51 = vmax.f32 %v3865_v48, 0.0  ;;  %v3894_v61 = vmax.f32 %v3862_v58, 0.0  ;;  %v3895_v62 = vmax.f32 %v3863_v59, 0.0 }
 0x35c   : > { %2356 = vst.msk [vmem:[#allocation3 + $0x28] sm:$0xff] %vm2350_vm15, %v2313_v56  ;;  %4612 = vmatprep.mubr.msk.bf16.mxu0 %vm2820_vm6, %v2759_v3  ;;  %4675 = vmatpush3.bf16.msra.mxu0 %v3997_v33  ;;  %v3910_v14 = vmax.f32 %v3878_v28, 0.0  ;;  %v3911_v29 = vmax.f32 %v3879_v15, 0.0  ;;  %v3243_v33 = vpop.f32.mrb[49].mxu1 }
 0x35d   : > { %2228 = vst.msk [vmem:[#allocation3 + $0x30] sm:$0xff] %vm2221_vm14, %v2186_v10  ;;  %v5991_v19 = vpack.c.bf16 %v3897_v51, %v3896_v50  ;;  %v5993_v0 = vpack.c.bf16 %v3895_v62, %v3894_v61  ;;  %v3244_v3 = vadd.f32 %v6058_v34, %v3243_v33  ;;  %v4645_v38 = vpop.f32.mrb[50].mxu1 }
 0x35e   : > { %312 = vst.msk [vmem:[#allocation4 + $0x130] sm:$0x3] %vm275_vm0, %v4812_v4  ;;  %315 = vst.msk [vmem:[#allocation4 + $0x148] sm:$0x3] %vm275_vm0, %v4812_v4  ;;  %v3246_v42 = vpop.f32.mrb[51].mxu1 }
 0x35f   : > { %2332 = vrot.lane.b32.xlu1 %v2543_v32, %s4818_s4  ;;  %2460 = vrot.lane.b32.xlu0 %v2543_v32, %s4820_s16  ;;  %318 = vst.msk [vmem:[#allocation4 + $0x160] sm:$0x3] %vm275_vm0, %v4812_v4  ;;  %321 = vst.msk [vmem:[#allocation4 + $0x178] sm:$0x3] %vm275_vm0, %v4812_v4  ;;  %v6062_v32 = vpack.c.bf16 %v3911_v29, %v3910_v14  ;;  %v3370_v41 = vmax.f32 %v3244_v3, 0.0  ;;  %v3247_v52 = vadd.f32 %v6058_v34, %v3246_v42 }
 0x360   : > { %324 = vst.msk [vmem:[#allocation4 + $0x190] sm:$0x3] %vm275_vm0, %v4812_v4  ;;  %327 = vst.msk [vmem:[#allocation4 + $0x1a8] sm:$0x3] %vm275_vm0, %v4812_v4  ;;  %v3252_v4 = vadd.f32 %v4644_v21, %v6058_v34 }
 0x361   : > { %3403 = vst.msk [vmem:[#allocation4 + $0x19] sm:$0xff] %vm272_vm2, %v3370_v41 }
 0x362   : > { %v3372_v39 = vmax.f32 %v3252_v4, 0.0 }
 0x363   : > { %2714 = vrot.lane.b32.xlu1 %v2671_v40, %s4819_s15  ;;  %2586 = vrot.lane.b32.xlu0 %v2671_v40, %s4821_s20 }
 0x364   : > { %3405 = vst.msk [vmem:[#allocation4 + $0x31] sm:$0xff] %vm272_vm2, %v3372_v39 }
 0x367   : > { %2458 = vrot.lane.b32.xlu1 %v2671_v40, %s4820_s16  ;;  %2590 = vrot.lane.b32.xlu0 %v2544_v43, %s4821_s20 }
 0x368   : > { %v3435_v62 = vld [vmem:[#allocation4 + $0x18] sm:$0xff] }
 0x36b   : > { %2592 = vrot.lane.b32.xlu1 %v2545_v9, %s4821_s20  ;;  %2330 = vrot.lane.b32.xlu0 %v2671_v40, %s4818_s4  ;;  %v3469_v58 = vld [vmem:[#allocation4 + $0x31] sm:$0xff] }
 0x36d   : > { %v2573_v56 = vpop.permute.xlu1 %2572  ;;  %v2701_v57 = vpop.permute.xlu0 %2700 }
 0x36f   : > { %2203 = vrot.lane.b32.xlu1 %v2671_v40, %s4816_s29  ;;  %2720 = vrot.lane.b32.xlu0 %v2545_v9, %s4819_s15  ;;  %v3255_v40 = vadd.f32 %v4645_v38, %v6058_v34  ;;  %v3371_v9 = vmax.f32 %v3247_v52, 0.0 }
 0x371   : > { %v2317_v37 = vpop.permute.xlu1 %2316  ;;  %v2445_v63 = vpop.permute.xlu0 %2444  ;;  %v3373_v43 = vmax.f32 %v3255_v40, 0.0  ;;  %3404 = vst.msk [vmem:[#allocation4 + $0x21] sm:$0xff] %vm272_vm2, %v3371_v9 }
 0x373   : > { %2722 = vrot.lane.b32.xlu1 %v2675_v17, %s4819_s15  ;;  %3406 = vst.msk [vmem:[#allocation4 + $0x39] sm:$0xff] %vm272_vm2, %v3373_v43  ;;  %v4648_v49 = vpop.f32.mrb[52].mxu1 }
 0x374   : > { %v3268_v50 = vadd.f32 %v4648_v49, %v6058_v34  ;;  %v3259_v51 = vpop.f32.mrb[53].mxu1 }
 0x375   : > { %v2062_v1 = vpop.permute.xlu1 %2061  ;;  %v2190_v5 = vpop.permute.xlu0 %2189 }
 0x376   : > { %2101 = vst.msk [vmem:[#allocation3 + $0x48] sm:$0xff] %vm2091_vm13, %v2062_v1  ;;  %v3376_v59 = vmax.f32 %v3268_v50, 0.0  ;;  %v4649_v17 = vpop.f32.mrb[54].mxu1 }
 0x377   : > { %v3271_v1 = vadd.f32 %v4649_v17, %v6058_v34 }
 0x378   : > { %3409 = vst.msk [vmem:[#allocation4 + $0x61] sm:$0xff] %vm272_vm2, %v3376_v59  ;;  %v3468_v26 = vld [vmem:[#allocation4 + $0x21] sm:$0xff] }
 0x379   : > { %v2699_v6 = vpop.permute.xlu1 %2698  ;;  %v2571_v44 = vpop.permute.xlu0 %2570  ;;  %v3531_v7 = vld [vmem:[#allocation4 + $0x1a] sm:$0xff]  ;;  %v3532_v15 = vld [vmem:[#allocation4 + $0x22] sm:$0xff] }
 0x37a   : > { %2744 = vst.msk [vmem:[#allocation3 + $0x18] sm:$0xff] %vm2740_vm5, %v2699_v6  ;;  %v3438_v6 = vld [vmem:[#allocation4 + $0x38] sm:$0xff] }
 0x37b   : > { %2615 = vst.msk [vmem:[#allocation3 + $0x20] sm:$0xff] %vm2610_vm1, %v2571_v44  ;;  %v3470_v44 = vld [vmem:[#allocation4 + $0x39] sm:$0xff] }
 0x37c   : > { %2745 = vst.msk [vmem:[#allocation3 + $0x20] sm:$0xff] %vm2740_vm5, %v2701_v57  ;;  %v3437_v57 = vld [vmem:[#allocation4 + $0x30] sm:$0xff] }
 0x37d   : > { %v2443_v10 = vpop.permute.xlu1 %2442  ;;  %v2315_v12 = vpop.permute.xlu0 %2314  ;;  %v3501_v61 = vmax.f32 %v3437_v57, %v3469_v58 }
 0x37e   : > { %2486 = vst.msk [vmem:[#allocation3 + $0x28] sm:$0xff] %vm2480_vm4, %v2443_v10  ;;  %v3533_v10 = vld [vmem:[#allocation4 + $0x32] sm:$0xff] }
 0x37f   : > { %2357 = vst.msk [vmem:[#allocation3 + $0x30] sm:$0xff] %vm2350_vm15, %v2315_v12  ;;  %v3441_v21 = vld [vmem:[#allocation4 + $0x60] sm:$0xff] }
 0x380   : > { %2616 = vst.msk [vmem:[#allocation3 + $0x28] sm:$0xff] %vm2610_vm1, %v2573_v56  ;;  %v3260_v56 = vadd.f32 %v6058_v34, %v3259_v51  ;;  %v3473_v4 = vld [vmem:[#allocation4 + $0x61] sm:$0xff] }
 0x381   : > { %2487 = vst.msk [vmem:[#allocation3 + $0x30] sm:$0xff] %vm2480_vm4, %v2445_v63  ;;  %v2188_v16 = vpop.permute.xlu1 %2187  ;;  %v2060_v18 = vpop.permute.xlu0 %2059  ;;  %v2760_v22 = vld [vmem:[#allocation3 + $0x18] sm:$0xff]  ;;  %v3505_v33 = vmax.f32 %v3441_v21, %v3473_v4 }
 0x382   : > { %2229 = vst.msk [vmem:[#allocation3 + $0x38] sm:$0xff] %vm2221_vm14, %v2188_v16  ;;  %4613 = vmatmul.mubr.msk.bf16.gmra.mrb[20].mxu0 %vm2820_vm6, %v2760_v22  ;;  %v3374_v63 = vmax.f32 %v3260_v56, 0.0 }
 0x383   : > { %2100 = vst.msk [vmem:[#allocation3 + $0x40] sm:$0xff] %vm2091_vm13, %v2060_v18  ;;  %v2761_v8 = vld [vmem:[#allocation3 + $0x20] sm:$0xff] }
 0x384   : > { %2358 = vst.msk [vmem:[#allocation3 + $0x38] sm:$0xff] %vm2350_vm15, %v2317_v37  ;;  %4616 = vmatprep.mubr.msk.bf16.mxu0 %vm2820_vm6, %v2761_v8  ;;  %v3467_v37 = vld [vmem:[#allocation4 + $0x19] sm:$0xff]  ;;  %v3502_v8 = vmax.f32 %v3438_v6, %v3470_v44 }
 0x385   : > { %2230 = vst.msk [vmem:[#allocation3 + $0x40] sm:$0xff] %vm2221_vm14, %v2190_v5  ;;  %v2577_v23 = vpop.permute.xlu1 %2576  ;;  %v2705_v24 = vpop.permute.xlu0 %2704  ;;  %v3499_v12 = vmax.f32 %v3435_v62, %v3467_v37 }
 0x386   : > { %v3262_v5 = vpop.f32.mrb[55].mxu1  ;;  %3407 = vst.msk [vmem:[#allocation4 + $0x49] sm:$0xff] %vm272_vm2, %v3374_v63 }
 0x387   : > { %v3263_v16 = vadd.f32 %v6058_v34, %v3262_v5  ;;  %v3563_v14 = vmax.f32 %v3499_v12, %v3531_v7 }
 0x389   : > { %v6010_v60 = vpop.permute.xlu1 %2320  ;;  %v2449_v25 = vpop.permute.xlu0 %2448 }
 0x38d   : > { %v2066_v27 = vpop.permute.xlu1 %2065  ;;  %v2194_v13 = vpop.permute.xlu0 %2193  ;;  %v3439_v3 = vld [vmem:[#allocation4 + $0x48] sm:$0xff] }
 0x38e   : > { %2103 = vst.msk [vmem:[#allocation3 + $0x58] sm:$0xff] %vm2091_vm13, %v2066_v27  ;;  %v3375_v27 = vmax.f32 %v3263_v16, 0.0  ;;  %v3471_v38 = vld [vmem:[#allocation4 + $0x49] sm:$0xff] }
 0x38f   : > { %v3503_v39 = vmax.f32 %v3439_v3, %v3471_v38 }
 0x390   : > { %3408 = vst.msk [vmem:[#allocation4 + $0x51] sm:$0xff] %vm272_vm2, %v3375_v27 }
 0x391   : > { %v2703_v30 = vpop.permute.xlu1 %2702  ;;  %v2575_v31 = vpop.permute.xlu0 %2574 }
 0x392   : > { %2746 = vst.msk [vmem:[#allocation3 + $0x28] sm:$0xff] %vm2740_vm5, %v2703_v30 }
 0x393   : > { %2617 = vst.msk [vmem:[#allocation3 + $0x30] sm:$0xff] %vm2610_vm1, %v2575_v31 }
 0x394   : > { %2747 = vst.msk [vmem:[#allocation3 + $0x30] sm:$0xff] %vm2740_vm5, %v2705_v24  ;;  %v3565_v24 = vmax.f32 %v3501_v61, %v3533_v10 }
 0x395   : > { %v2447_v2 = vpop.permute.xlu1 %2446  ;;  %v2319_v36 = vpop.permute.xlu0 %2318 }
 0x396   : > { %2488 = vst.msk [vmem:[#allocation3 + $0x38] sm:$0xff] %vm2480_vm4, %v2447_v2 }
 0x397   : > { %2359 = vst.msk [vmem:[#allocation3 + $0x40] sm:$0xff] %vm2350_vm15, %v2319_v36  ;;  %v3536_v49 = vld [vmem:[#allocation4 + $0x52] sm:$0xff] }
 0x398   : > { %2618 = vst.msk [vmem:[#allocation3 + $0x38] sm:$0xff] %vm2610_vm1, %v2577_v23  ;;  %v3534_v23 = vld [vmem:[#allocation4 + $0x3a] sm:$0xff] }
 0x399   : > { %2489 = vst.msk [vmem:[#allocation3 + $0x40] sm:$0xff] %vm2480_vm4, %v2449_v25  ;;  %v2192_v46 = vpop.permute.xlu1 %2191  ;;  %v2064_v47 = vpop.permute.xlu0 %2063  ;;  %v2762_v48 = vld [vmem:[#allocation3 + $0x28] sm:$0xff]  ;;  %v3436_v25 = vld [vmem:[#allocation4 + $0x20] sm:$0xff] }
 0x39a   : > { %2231 = vst.msk [vmem:[#allocation3 + $0x48] sm:$0xff] %vm2221_vm14, %v2192_v46  ;;  %4617 = vmatmul.mubr.msk.bf16.gmra.mrb[24].mxu0 %vm2820_vm6, %v2762_v48  ;;  %v3500_v28 = vmax.f32 %v3436_v25, %v3468_v26  ;;  %v3472_v48 = vld [vmem:[#allocation4 + $0x51] sm:$0xff]  ;;  %v4652_v10 = vpop.f32.mrb[56].mxu1 }
 0x39b   : > { %2102 = vst.msk [vmem:[#allocation3 + $0x50] sm:$0xff] %vm2091_vm13, %v2064_v47  ;;  %v2763_v11 = vld [vmem:[#allocation3 + $0x30] sm:$0xff]  ;;  %v3284_v12 = vadd.f32 %v4652_v10, %v6058_v34  ;;  %v3275_v16 = vpop.f32.mrb[57].mxu1 }
 0x39c   : > { %2360 = vst.msk [vmem:[#allocation3 + $0x48] sm:$0xff] %vm2350_vm15, %v6010_v60  ;;  %4620 = vmatprep.mubr.msk.bf16.mxu0 %vm2820_vm6, %v2763_v11  ;;  %v3377_v60 = vmax.f32 %v3271_v1, 0.0  ;;  %v3564_v31 = vmax.f32 %v3500_v28, %v3532_v15  ;;  %v3440_v47 = vld [vmem:[#allocation4 + $0x50] sm:$0xff] }
 0x39d   : > { %2232 = vst.msk [vmem:[#allocation3 + $0x50] sm:$0xff] %vm2221_vm14, %v2194_v13  ;;  %v6085_v53 = vpop.permute.xlu1 %2580  ;;  %v2709_v54 = vpop.permute.xlu0 %2708  ;;  %v3566_v13 = vmax.f32 %v3502_v8, %v3534_v23  ;;  %v3504_v9 = vmax.f32 %v3440_v47, %v3472_v48  ;;  %v3535_v11 = vld [vmem:[#allocation4 + $0x4a] sm:$0xff]  ;;  %v3276_v8 = vadd.f32 %v6058_v34, %v3275_v16  ;;  %v3380_v23 = vmax.f32 %v3284_v12, 0.0 }
 0x39e   : > { %3597 = vst.msk [vmem:[#allocation4 + $0x31] sm:$0xff] %vm272_vm2, %v3565_v24  ;;  %3410 = vst.msk [vmem:[#allocation4 + $0x69] sm:$0xff] %vm272_vm2, %v3377_v60  ;;  %v3567_v57 = vmax.f32 %v3503_v39, %v3535_v11  ;;  %v4653_v24 = vpop.f32.mrb[58].mxu1 }
 0x39f   : > { %3598 = vst.msk [vmem:[#allocation4 + $0x39] sm:$0xff] %vm272_vm2, %v3566_v13  ;;  %3595 = vst.msk [vmem:[#allocation4 + $0x19] sm:$0xff] %vm272_vm2, %v3563_v14  ;;  %v3568_v58 = vmax.f32 %v3504_v9, %v3536_v49  ;;  %v3378_v60 = vmax.f32 %v3276_v8, 0.0  ;;  %v3287_v25 = vadd.f32 %v4653_v24, %v6058_v34  ;;  %v3278_v26 = vpop.f32.mrb[59].mxu1 }
 0x3a0   : > { %3596 = vst.msk [vmem:[#allocation4 + $0x21] sm:$0xff] %vm272_vm2, %v3564_v31  ;;  %3599 = vst.msk [vmem:[#allocation4 + $0x49] sm:$0xff] %vm272_vm2, %v3567_v57  ;;  %v3279_v7 = vadd.f32 %v6058_v34, %v3278_v26 }
 0x3a1   : > { %v6091_v18 = vpop.permute.xlu1 %2324  ;;  %v2453_v22 = vpop.permute.xlu0 %2452  ;;  %3600 = vst.msk [vmem:[#allocation4 + $0x51] sm:$0xff] %vm272_vm2, %v3568_v58  ;;  %3413 = vst.msk [vmem:[#allocation4 + $0x91] sm:$0xff] %vm272_vm2, %v3380_v23  ;;  %v3381_v15 = vmax.f32 %v3287_v25, 0.0  ;;  %v4776_v25 = vld [vmem:[%s5034_s23 + $0x20] sm:$0xff] }
 0x3a2   : > { %3411 = vst.msk [vmem:[#allocation4 + $0x79] sm:$0xff] %vm272_vm2, %v3378_v60  ;;  %v3829_v26 = vmul.f32 %v4776_v25, %v5964_v35  ;;  %v4784_v25 = vld [vmem:[%s5034_s23 + $0x60] sm:$0xff] }
 0x3a3   : > { %3414 = vst.msk [vmem:[#allocation4 + $0x99] sm:$0xff] %vm272_vm2, %v3381_v15 }
 0x3a5   : > { %v2070_v29 = vpop.permute.xlu1 %2069  ;;  %v2198_v30 = vpop.permute.xlu0 %2197  ;;  %v3442_v40 = vld [vmem:[#allocation4 + $0x68] sm:$0xff] }
 0x3a6   : > { %2105 = vst.msk [vmem:[#allocation3 + $0x68] sm:$0xff] %vm2091_vm13, %v2070_v29  ;;  %v3474_v41 = vld [vmem:[#allocation4 + $0x69] sm:$0xff]  ;;  %v3379_v29 = vmax.f32 %v3279_v7, 0.0  ;;  %v4777_v7 = vld [vmem:[%s5034_s23 + $0x28] sm:$0xff] }
 0x3a7   : > { %v3537_v42 = vld [vmem:[#allocation4 + $0x62] sm:$0xff]  ;;  %v3506_v43 = vmax.f32 %v3442_v40, %v3474_v41  ;;  %v3538_v52 = vld [vmem:[#allocation4 + $0x6a] sm:$0xff] }
 0x3a8   : > { %v3569_v46 = vmax.f32 %v3505_v33, %v3537_v42  ;;  %3412 = vst.msk [vmem:[#allocation4 + $0x81] sm:$0xff] %vm272_vm2, %v3379_v29  ;;  %v3445_v21 = vld [vmem:[#allocation4 + $0x90] sm:$0xff] }
 0x3a9   : > { %v2707_v2 = vpop.permute.xlu1 %2706  ;;  %v2579_v36 = vpop.permute.xlu0 %2578  ;;  %v3570_v56 = vmax.f32 %v3506_v43, %v3538_v52  ;;  %v3477_v4 = vld [vmem:[#allocation4 + $0x91] sm:$0xff]  ;;  %v3475_v38 = vld [vmem:[#allocation4 + $0x79] sm:$0xff] }
 0x3aa   : > { %2748 = vst.msk [vmem:[#allocation3 + $0x38] sm:$0xff] %vm2740_vm5, %v2707_v2  ;;  %v3509_v33 = vmax.f32 %v3445_v21, %v3477_v4  ;;  %v3443_v3 = vld [vmem:[#allocation4 + $0x78] sm:$0xff] }
 0x3ab   : > { %2619 = vst.msk [vmem:[#allocation3 + $0x40] sm:$0xff] %vm2610_vm1, %v2579_v36  ;;  %v3507_v39 = vmax.f32 %v3443_v3, %v3475_v38  ;;  %v3446_v40 = vld [vmem:[#allocation4 + $0x98] sm:$0xff]  ;;  %v4778_v38 = vld [vmem:[%s5034_s23 + $0x30] sm:$0xff] }
 0x3ac   : > { %2749 = vst.msk [vmem:[#allocation3 + $0x40] sm:$0xff] %vm2740_vm5, %v2709_v54  ;;  %v3478_v41 = vld [vmem:[#allocation4 + $0x99] sm:$0xff] }
 0x3ad   : > { %v2451_v50 = vpop.permute.xlu1 %2450  ;;  %v2323_v51 = vpop.permute.xlu0 %2322  ;;  %3601 = vst.msk [vmem:[#allocation4 + $0x61] sm:$0xff] %vm272_vm2, %v3569_v46  ;;  %3602 = vst.msk [vmem:[#allocation4 + $0x69] sm:$0xff] %vm272_vm2, %v3570_v56  ;;  %v3541_v42 = vld [vmem:[#allocation4 + $0x92] sm:$0xff]  ;;  %v3510_v43 = vmax.f32 %v3446_v40, %v3478_v41  ;;  %v3542_v52 = vld [vmem:[#allocation4 + $0x9a] sm:$0xff] }
 0x3ae   : > { %2490 = vst.msk [vmem:[#allocation3 + $0x48] sm:$0xff] %vm2480_vm4, %v2451_v50  ;;  %v3573_v46 = vmax.f32 %v3509_v33, %v3541_v42 }
 0x3af   : > { %2361 = vst.msk [vmem:[#allocation3 + $0x50] sm:$0xff] %vm2350_vm15, %v2323_v51  ;;  %v3444_v47 = vld [vmem:[#allocation4 + $0x80] sm:$0xff]  ;;  %v3574_v56 = vmax.f32 %v3510_v43, %v3542_v52  ;;  %v4779_v52 = vld [vmem:[%s5034_s23 + $0x38] sm:$0xff] }
 0x3b0   : > { %2620 = vst.msk [vmem:[#allocation3 + $0x48] sm:$0xff] %vm2610_vm1, %v6085_v53  ;;  %v3476_v48 = vld [vmem:[#allocation4 + $0x81] sm:$0xff] }
 0x3b1   : > { %2491 = vst.msk [vmem:[#allocation3 + $0x50] sm:$0xff] %vm2480_vm4, %v2453_v22  ;;  %v2196_v54 = vpop.permute.xlu1 %2195  ;;  %v2068_v59 = vpop.permute.xlu0 %2067  ;;  %v2764_v17 = vld [vmem:[#allocation3 + $0x38] sm:$0xff]  ;;  %v3508_v9 = vmax.f32 %v3444_v47, %v3476_v48  ;;  %v3540_v49 = vld [vmem:[#allocation4 + $0x82] sm:$0xff] }
 0x3b2   : > { %2233 = vst.msk [vmem:[#allocation3 + $0x58] sm:$0xff] %vm2221_vm14, %v2196_v54  ;;  %4621 = vmatmul.mubr.msk.bf16.gmra.mrb[28].mxu0 %vm2820_vm6, %v2764_v17  ;;  %v3539_v11 = vld [vmem:[#allocation4 + $0x7a] sm:$0xff] }
 0x3b3   : > { %2104 = vst.msk [vmem:[#allocation3 + $0x60] sm:$0xff] %vm2091_vm13, %v2068_v59  ;;  %v2765_v61 = vld [vmem:[#allocation3 + $0x40] sm:$0xff]  ;;  %v3571_v57 = vmax.f32 %v3507_v39, %v3539_v11  ;;  %v3572_v58 = vmax.f32 %v3508_v9, %v3540_v49  ;;  %v4780_v11 = vld [vmem:[%s5034_s23 + $0x40] sm:$0xff] }
 0x3b4   : > { %2362 = vst.msk [vmem:[#allocation3 + $0x58] sm:$0xff] %vm2350_vm15, %v6091_v18  ;;  %4624 = vmatprep.mubr.msk.bf16.mxu0 %vm2820_vm6, %v2765_v61  ;;  %v3833_v49 = vmul.f32 %v4780_v11, %v5964_v35 }
 0x3b5   : > { %2234 = vst.msk [vmem:[#allocation3 + $0x60] sm:$0xff] %vm2221_vm14, %v2198_v30  ;;  %v2585_v53 = vpop.permute.xlu1 %2584  ;;  %v2713_v62 = vpop.permute.xlu0 %2712 }
 0x3b6   : > { %3605 = vst.msk [vmem:[#allocation4 + $0x91] sm:$0xff] %vm272_vm2, %v3573_v46  ;;  %3606 = vst.msk [vmem:[#allocation4 + $0x99] sm:$0xff] %vm272_vm2, %v3574_v56  ;;  %v3832_v46 = vmul.f32 %v4779_v52, %v5964_v35 }
 0x3b7   : > { %3603 = vst.msk [vmem:[#allocation4 + $0x79] sm:$0xff] %vm272_vm2, %v3571_v57  ;;  %3604 = vst.msk [vmem:[#allocation4 + $0x81] sm:$0xff] %vm272_vm2, %v3572_v58 }
 0x3b9   : > { %v2329_v37 = vpop.permute.xlu1 %2328  ;;  %v2457_v63 = vpop.permute.xlu0 %2456 }
 0x3bd   : > { %v2074_v1 = vpop.permute.xlu1 %2073  ;;  %v2202_v5 = vpop.permute.xlu0 %2201 }
 0x3be   : > { %2107 = vst.msk [vmem:[#allocation3 + $0x78] sm:$0xff] %vm2091_vm13, %v2074_v1 }
 0x3c1   : > { %v2711_v6 = vpop.permute.xlu1 %2710  ;;  %v2583_v44 = vpop.permute.xlu0 %2582 }
 0x3c2   : > { %2750 = vst.msk [vmem:[#allocation3 + $0x48] sm:$0xff] %vm2740_vm5, %v2711_v6 }
 0x3c3   : > { %2621 = vst.msk [vmem:[#allocation3 + $0x50] sm:$0xff] %vm2610_vm1, %v2583_v44 }
 0x3c4   : > { %2751 = vst.msk [vmem:[#allocation3 + $0x50] sm:$0xff] %vm2740_vm5, %v2713_v62 }
 0x3c5   : > { %v2455_v18 = vpop.permute.xlu1 %2454  ;;  %v2327_v22 = vpop.permute.xlu0 %2326 }
 0x3c6   : > { %2492 = vst.msk [vmem:[#allocation3 + $0x58] sm:$0xff] %vm2480_vm4, %v2455_v18 }
 0x3c7   : > { %2363 = vst.msk [vmem:[#allocation3 + $0x60] sm:$0xff] %vm2350_vm15, %v2327_v22 }
 0x3c8   : > { %2622 = vst.msk [vmem:[#allocation3 + $0x58] sm:$0xff] %vm2610_vm1, %v2585_v53 }
 0x3c9   : > { %2493 = vst.msk [vmem:[#allocation3 + $0x60] sm:$0xff] %vm2480_vm4, %v2457_v63  ;;  %v2200_v27 = vpop.permute.xlu1 %2199  ;;  %v2072_v13 = vpop.permute.xlu0 %2071  ;;  %v2766_v28 = vld [vmem:[#allocation3 + $0x48] sm:$0xff] }
 0x3ca   : > { %2235 = vst.msk [vmem:[#allocation3 + $0x68] sm:$0xff] %vm2221_vm14, %v2200_v27  ;;  %4625 = vmatmul.mubr.msk.bf16.gmra.mrb[32].mxu0 %vm2820_vm6, %v2766_v28  ;;  %v3830_v27 = vmul.f32 %v4777_v7, %v5964_v35  ;;  %v4785_v7 = vld [vmem:[%s5034_s23 + $0x68] sm:$0xff] }
 0x3cb   : > { %2106 = vst.msk [vmem:[#allocation3 + $0x70] sm:$0xff] %vm2091_vm13, %v2072_v13  ;;  %v2767_v14 = vld [vmem:[#allocation3 + $0x50] sm:$0xff] }
 0x3cc   : > { %2364 = vst.msk [vmem:[#allocation3 + $0x68] sm:$0xff] %vm2350_vm15, %v2329_v37  ;;  %4628 = vmatprep.mubr.msk.bf16.mxu0 %vm2820_vm6, %v2767_v14 }
 0x3cd   : > { %2236 = vst.msk [vmem:[#allocation3 + $0x70] sm:$0xff] %vm2221_vm14, %v2202_v5  ;;  %v2589_v30 = vpop.permute.xlu1 %2588  ;;  %v2717_v31 = vpop.permute.xlu0 %2716 }
 0x3d0   : > { %v4656_v17 = vpop.f32.mrb[60].mxu1 }
 0x3d1   : > { %v2333_v2 = vpop.permute.xlu1 %2332  ;;  %v2461_v36 = vpop.permute.xlu0 %2460  ;;  %v3300_v37 = vadd.f32 %v4656_v17, %v6058_v34 }
 0x3d2   : > { %v3291_v1 = vpop.f32.mrb[61].mxu1 }
 0x3d3   : > { %v3384_v5 = vmax.f32 %v3300_v37, 0.0  ;;  %v3292_v6 = vadd.f32 %v6058_v34, %v3291_v1 }
 0x3d5   : > { %v2715_v50 = vpop.permute.xlu1 %2714  ;;  %v2587_v51 = vpop.permute.xlu0 %2586  ;;  %3417 = vst.msk [vmem:[#allocation4 + $0xc1] sm:$0xff] %vm272_vm2, %v3384_v5  ;;  %v3382_v18 = vmax.f32 %v3292_v6, 0.0 }
 0x3d6   : > { %2752 = vst.msk [vmem:[#allocation3 + $0x58] sm:$0xff] %vm2740_vm5, %v2715_v50  ;;  %v4781_v50 = vld [vmem:[%s5034_s23 + $0x48] sm:$0xff] }
 0x3d7   : > { %2623 = vst.msk [vmem:[#allocation3 + $0x60] sm:$0xff] %vm2610_vm1, %v2587_v51  ;;  %v3834_v51 = vmul.f32 %v4781_v50, %v5964_v35 }
 0x3d8   : > { %2753 = vst.msk [vmem:[#allocation3 + $0x60] sm:$0xff] %vm2740_vm5, %v2717_v31  ;;  %v3867_v31 = vadd.f32 %v5975_v45, %v3830_v27  ;;  %v3838_v27 = vmul.f32 %v4785_v7, %v5964_v35 }
 0x3d9   : > { %v2459_v54 = vpop.permute.xlu1 %2458  ;;  %v2591_v59 = vpop.permute.xlu0 %2590  ;;  %3415 = vst.msk [vmem:[#allocation4 + $0xa9] sm:$0xff] %vm272_vm2, %v3382_v18 }
 0x3da   : > { %2494 = vst.msk [vmem:[#allocation3 + $0x68] sm:$0xff] %vm2480_vm4, %v2459_v54  ;;  %v3899_v54 = vmax.f32 %v3867_v31, 0.0 }
 0x3db   : > { %2624 = vst.msk [vmem:[#allocation3 + $0x68] sm:$0xff] %vm2610_vm1, %v2589_v30  ;;  %v3866_v30 = vadd.f32 %v5975_v45, %v3829_v26  ;;  %v3837_v26 = vmul.f32 %v4784_v25, %v5964_v35 }
 0x3dc   : > { %2754 = vst.msk [vmem:[#allocation3 + $0x68] sm:$0xff] %vm2740_vm5, %v5697_v55  ;;  %v4657_v55 = vpop.f32.mrb[62].mxu1  ;;  %v3481_v13 = vld [vmem:[#allocation4 + $0xc1] sm:$0xff] }
 0x3dd   : > { %v2593_v61 = vpop.permute.xlu1 %2592  ;;  %v2331_v53 = vpop.permute.xlu0 %2330  ;;  %v2768_v62 = vld [vmem:[#allocation3 + $0x58] sm:$0xff]  ;;  %v3303_v44 = vadd.f32 %v4657_v55, %v6058_v34  ;;  %v3898_v58 = vmax.f32 %v3866_v30, 0.0  ;;  %v4782_v55 = vld [vmem:[%s5034_s23 + $0x50] sm:$0xff]  ;;  %v3874_v31 = vadd.f32 %v5975_v45, %v3837_v26 }
 0x3de   : > { %2365 = vst.msk [vmem:[#allocation3 + $0x70] sm:$0xff] %vm2350_vm15, %v2331_v53  ;;  %4629 = vmatmul.mubr.msk.bf16.gmra.mrb[36].mxu0 %vm2820_vm6, %v2768_v62  ;;  %v3294_v10 = vpop.f32.mrb[63].mxu1  ;;  %v3870_v53 = vadd.f32 %v5975_v45, %v3833_v49  ;;  %v3871_v62 = vadd.f32 %v5975_v45, %v3834_v51 }
 0x3df   : > { %v2769_v63 = vld [vmem:[#allocation3 + $0x60] sm:$0xff]  ;;  %2495 = vst.msk [vmem:[#allocation3 + $0x70] sm:$0xff] %vm2480_vm4, %v2461_v36  ;;  %v3295_v22 = vadd.f32 %v6058_v34, %v3294_v10  ;;  %v3385_v8 = vmax.f32 %v3303_v44, 0.0  ;;  %v3835_v44 = vmul.f32 %v4782_v55, %v5964_v35  ;;  %v4783_v10 = vld [vmem:[%s5034_s23 + $0x58] sm:$0xff] }
 0x3e0   : > { %4632 = vmatprep.mubr.msk.bf16.mxu0 %vm2820_vm6, %v2769_v63  ;;  %2625 = vst.msk [vmem:[#allocation3 + $0x70] sm:$0xff] %vm2610_vm1, %v2591_v59  ;;  %v3447_v14 = vld [vmem:[#allocation4 + $0xa8] sm:$0xff] }
 0x3e1   : > { %v2204_v12 = vpop.permute.xlu1 %2203  ;;  %v2721_v16 = vpop.permute.xlu0 %2720  ;;  %v3383_v23 = vmax.f32 %v3295_v22, 0.0  ;;  %3418 = vst.msk [vmem:[#allocation4 + $0xc9] sm:$0xff] %vm272_vm2, %v3385_v8  ;;  %v3479_v29 = vld [vmem:[#allocation4 + $0xa9] sm:$0xff]  ;;  %v3902_v22 = vmax.f32 %v3870_v53, 0.0  ;;  %v3903_v8 = vmax.f32 %v3871_v62, 0.0 }
 0x3e2   : > { %2237 = vst.msk [vmem:[#allocation3 + $0x78] sm:$0xff] %vm2221_vm14, %v2204_v12  ;;  %v3511_v3 = vmax.f32 %v3447_v14, %v3479_v29  ;;  %v3836_v12 = vmul.f32 %v4783_v10, %v5964_v35 }
 0x3e3   : > { %2755 = vst.msk [vmem:[#allocation3 + $0x70] sm:$0xff] %vm2740_vm5, %v2721_v16  ;;  %v2770_v60 = vld [vmem:[#allocation3 + $0x68] sm:$0xff]  ;;  %v3931_v30 = vpack.c.bf16 %v3903_v8, %v3902_v22 }
 0x3e4   : > { %2366 = vst.msk [vmem:[#allocation3 + $0x78] sm:$0xff] %vm2350_vm15, %v2333_v2  ;;  %v3831_v2 = vmul.f32 %v4778_v38, %v5964_v35 }
 0x3e5   : > { %2496 = vst.msk [vmem:[#allocation3 + $0x78] sm:$0xff] %vm2480_vm4, %v5709_v20  ;;  %v2723_v24 = vpop.permute.xlu1 %2722  ;;  %v3449_v20 = vld [vmem:[#allocation4 + $0xc0] sm:$0xff] }
 0x3e6   : > { %2626 = vst.msk [vmem:[#allocation3 + $0x78] sm:$0xff] %vm2610_vm1, %v2593_v61  ;;  %4633 = vmatmul.mubr.msk.bf16.gmra.mrb[40].mxu0 %vm2820_vm6, %v2770_v60  ;;  %v3513_v15 = vmax.f32 %v3449_v20, %v3481_v13  ;;  %v3868_v17 = vadd.f32 %v5975_v45, %v3831_v2  ;;  %v3869_v61 = vadd.f32 %v5975_v45, %v3832_v46  ;;  %v4787_v2 = vld [vmem:[%s5034_s23 + $0x78] sm:$0xff] }
 0x3e7   : > { %3416 = vst.msk [vmem:[#allocation4 + $0xb1] sm:$0xff] %vm272_vm2, %v3383_v23 }
 0x3e8   : > { %2756 = vst.msk [vmem:[#allocation3 + $0x78] sm:$0xff] %vm2740_vm5, %v2723_v24  ;;  %v3450_v21 = vld [vmem:[#allocation4 + $0xc8] sm:$0xff]  ;;  %v3900_v63 = vmax.f32 %v3868_v17, 0.0  ;;  %v3901_v6 = vmax.f32 %v3869_v61, 0.0 }
 0x3e9   : > { %v3482_v4 = vld [vmem:[#allocation4 + $0xc9] sm:$0xff] }
 0x3ea   : > { %v2771_v28 = vld [vmem:[#allocation3 + $0x70] sm:$0xff]  ;;  %v3545_v33 = vld [vmem:[#allocation4 + $0xc2] sm:$0xff]  ;;  %v3514_v36 = vmax.f32 %v3450_v21, %v3482_v4  ;;  %v3930_v29 = vpack.c.bf16 %v3901_v6, %v3900_v63  ;;  %v3875_v21 = vadd.f32 %v5975_v45, %v3838_v27 }
 0x3eb   : > { %4636 = vmatprep.mubr.msk.bf16.mxu0 %vm2820_vm6, %v2771_v28  ;;  %v3546_v39 = vld [vmem:[#allocation4 + $0xca] sm:$0xff]  ;;  %v3577_v40 = vmax.f32 %v3513_v15, %v3545_v33  ;;  %v3872_v28 = vadd.f32 %v5975_v45, %v3835_v44  ;;  %v3873_v15 = vadd.f32 %v5975_v45, %v3836_v12  ;;  %v4788_v63 = vld [vmem:[%s5034_s23 + $0x90] sm:$0xff] }
 0x3ec   : > { %v3578_v56 = vmax.f32 %v3514_v36, %v3546_v39  ;;  %v3840_v36 = vmul.f32 %v4787_v2, %v5964_v35  ;;  %v3906_v39 = vmax.f32 %v3874_v31, 0.0  ;;  %v4790_v12 = vld [vmem:[%s5034_s23 + $0xa0] sm:$0xff]  ;;  %v4795_v31 = vld [vmem:[%s5034_s23 + $0xc8] sm:$0xff] }
 0x3ed   : > { %3609 = vst.msk [vmem:[#allocation4 + $0xc1] sm:$0xff] %vm272_vm2, %v3577_v40  ;;  %v4660_v37 = vpop.f32.mrb[64].mxu1  ;;  %v3904_v4 = vmax.f32 %v3872_v28, 0.0  ;;  %v3905_v33 = vmax.f32 %v3873_v15, 0.0  ;;  %v3907_v40 = vmax.f32 %v3875_v21, 0.0  ;;  %v4793_v15 = vld [vmem:[%s5034_s23 + $0xb8] sm:$0xff]  ;;  %v3850_v21 = vmul.f32 %v4795_v31, %v5964_v35 }
 0x3ee   : > { %v3448_v41 = vld [vmem:[#allocation4 + $0xb0] sm:$0xff]  ;;  %3610 = vst.msk [vmem:[#allocation4 + $0xc9] sm:$0xff] %vm272_vm2, %v3578_v56  ;;  %v3316_v1 = vadd.f32 %v4660_v37, %v6058_v34  ;;  %v3307_v5 = vpop.f32.mrb[65].mxu1  ;;  %v3877_v51 = vadd.f32 %v5975_v45, %v3840_v36 }
 0x3ef   : > { %v3480_v42 = vld [vmem:[#allocation4 + $0xb1] sm:$0xff]  ;;  %v3308_v16 = vadd.f32 %v6058_v34, %v3307_v5  ;;  %v4661_v18 = vpop.f32.mrb[66].mxu1  ;;  %v3933_v17 = vpack.c.bf16 %v3907_v40, %v3906_v39  ;;  %v4789_v5 = vld [vmem:[%s5034_s23 + $0x98] sm:$0xff] }
 0x3f0   : > { %v2772_v43 = vld [vmem:[#allocation3 + $0x78] sm:$0xff]  ;;  %v3512_v47 = vmax.f32 %v3448_v41, %v3480_v42  ;;  %v3543_v48 = vld [vmem:[#allocation4 + $0xaa] sm:$0xff]  ;;  %v3388_v23 = vmax.f32 %v3316_v1, 0.0  ;;  %v3319_v24 = vadd.f32 %v4661_v18, %v6058_v34  ;;  %v3310_v60 = vpop.f32.mrb[67].mxu1  ;;  %v3843_v1 = vmul.f32 %v4788_v63, %v5964_v35 }
 0x3f1   : > { %v3544_v9 = vld [vmem:[#allocation4 + $0xb2] sm:$0xff]  ;;  %4637 = vmatmul.mubr.msk.bf16.gmra.mrb[44].mxu0 %vm2820_vm6, %v2772_v43  ;;  %v3575_v57 = vmax.f32 %v3511_v3, %v3543_v48  ;;  %v3386_v20 = vmax.f32 %v3308_v16, 0.0  ;;  %v3311_v13 = vadd.f32 %v6058_v34, %v3310_v60  ;;  %v4786_v3 = vld [vmem:[%s5034_s23 + $0x70] sm:$0xff]  ;;  %v3844_v6 = vmul.f32 %v4789_v5, %v5964_v35 }
 0x3f2   : > { %4676 = vmatprep.mubr.msk.bf16.mxu0 %vm456_vm3, %v5993_v0  ;;  %v3576_v59 = vmax.f32 %v3512_v47, %v3544_v9  ;;  %v3929_v0 = vpack.c.bf16 %v3899_v54, %v3898_v58  ;;  %3421 = vst.msk [vmem:[#allocation4 + $0xf1] sm:$0xff] %vm272_vm2, %v3388_v23  ;;  %v3839_v38 = vmul.f32 %v4786_v3, %v5964_v35  ;;  %v3909_v10 = vmax.f32 %v3877_v51, 0.0  ;;  %v4791_v18 = vld [vmem:[%s5034_s23 + $0xa8] sm:$0xff] }
 0x3f3   : > { %3607 = vst.msk [vmem:[#allocation4 + $0xa9] sm:$0xff] %vm272_vm2, %v3575_v57  ;;  %3419 = vst.msk [vmem:[#allocation4 + $0xd9] sm:$0xff] %vm272_vm2, %v3386_v20  ;;  %v3387_v14 = vmax.f32 %v3311_v13, 0.0  ;;  %v3932_v47 = vpack.c.bf16 %v3905_v33, %v3904_v4  ;;  %v3845_v16 = vmul.f32 %v4790_v12, %v5964_v35  ;;  %v3846_v22 = vmul.f32 %v4791_v18, %v5964_v35  ;;  %v4792_v20 = vld [vmem:[%s5034_s23 + $0xb0] sm:$0xff] }
 0x3f4   : > { %3608 = vst.msk [vmem:[#allocation4 + $0xb1] sm:$0xff] %vm272_vm2, %v3576_v59  ;;  %v3876_v50 = vadd.f32 %v5975_v45, %v3839_v38  ;;  %v3880_v8 = vadd.f32 %v5975_v45, %v3843_v1  ;;  %v3881_v23 = vadd.f32 %v5975_v45, %v3844_v6  ;;  %v3847_v13 = vmul.f32 %v4792_v20, %v5964_v35 }
 0x3f5   : > { %3420 = vst.msk [vmem:[#allocation4 + $0xe1] sm:$0xff] %vm272_vm2, %v3387_v14  ;;  %v3882_v60 = vadd.f32 %v5975_v45, %v3845_v16  ;;  %v3883_v25 = vadd.f32 %v5975_v45, %v3846_v22  ;;  %v3848_v14 = vmul.f32 %v4793_v15, %v5964_v35  ;;  %v4800_v22 = vld [vmem:[%s6635_s1 + $0x9] ss:$0 sm:$0xff]  ;;  %v4801_v15 = vld [vmem:[%s5034_s23 + $0xf0] sm:$0xff] }
 0x3f6   : > { %v3908_v44 = vmax.f32 %v3876_v50, 0.0  ;;  %v3912_v7 = vmax.f32 %v3880_v8, 0.0  ;;  %v3913_v27 = vmax.f32 %v3881_v23, 0.0 }
 0x3f7   : > { %v3914_v3 = vmax.f32 %v3882_v60, 0.0  ;;  %v3915_v38 = vmax.f32 %v3883_v25, 0.0 }
 0x3f9   : > { %4677 = vmatmul.mubr.msk.bf16.vlgmr.msra.gmra.mrb[48].mxu0 %vm456_vm3, %v5991_v19  ;;  %v3389_v19 = vmax.f32 %v3319_v24, 0.0  ;;  %v3453_v41 = vld [vmem:[#allocation4 + $0xf0] sm:$0xff]  ;;  %v3934_v24 = vpack.c.bf16 %v3909_v10, %v3908_v44 }
 0x3fa   : > { %4680 = vmatprep.mubr.msk.bf16.mxu0 %vm456_vm3, %v3929_v0  ;;  %v3485_v42 = vld [vmem:[#allocation4 + $0xf1] sm:$0xff]  ;;  %v3483_v46 = vld [vmem:[#allocation4 + $0xd9] sm:$0xff] }
 0x3fb   : > { %3422 = vst.msk [vmem:[#allocation4 + $0xf9] sm:$0xff] %vm272_vm2, %v3389_v19  ;;  %v3517_v43 = vmax.f32 %v3453_v41, %v3485_v42  ;;  %v3451_v52 = vld [vmem:[#allocation4 + $0xd8] sm:$0xff]  ;;  %v3936_v42 = vpack.c.bf16 %v3913_v27, %v3912_v7 }
 0x3fc   : > { %v3515_v49 = vmax.f32 %v3451_v52, %v3483_v46  ;;  %v3452_v54 = vld [vmem:[#allocation4 + $0xe0] sm:$0xff]  ;;  %v3885_v46 = vadd.f32 %v5975_v45, %v3848_v14  ;;  %v4802_v14 = vld [vmem:[%s6635_s1 + $0x8] ss:$0 sm:$0xff] }
 0x3fd   : > { %v3484_v59 = vld [vmem:[#allocation4 + $0xe1] sm:$0xff] }
 0x3fe   : > { %v3516_v61 = vmax.f32 %v3452_v54, %v3484_v59  ;;  %v3547_v53 = vld [vmem:[#allocation4 + $0xda] sm:$0xff]  ;;  %v3548_v62 = vld [vmem:[#allocation4 + $0xe2] sm:$0xff]  ;;  %v3917_v51 = vmax.f32 %v3885_v46, 0.0  ;;  %v4798_v59 = vld [vmem:[%s5034_s23 + $0xe0] sm:$0xff] }
 0x3ff   : > { %v3579_v37 = vmax.f32 %v3515_v49, %v3547_v53  ;;  %v4796_v49 = vld [vmem:[%s5034_s23 + $0xd0] sm:$0xff] }
 0x400   : > { %v3580_v55 = vmax.f32 %v3516_v61, %v3548_v62  ;;  %v3851_v50 = vmul.f32 %v4796_v49, %v5964_v35  ;;  %v4799_v61 = vld [vmem:[%s5034_s23 + $0xe8] sm:$0xff] }
 0x401   : > { %4681 = vmatmul.mubr.msk.bf16.gmra.mrb[52].mxu0 %vm456_vm3, %v3930_v29  ;;  %3611 = vst.msk [vmem:[#allocation4 + $0xd9] sm:$0xff] %vm272_vm2, %v3579_v37  ;;  %v4794_v29 = vld [vmem:[%s5034_s23 + $0xc0] sm:$0xff]  ;;  %v3854_v53 = vmul.f32 %v4799_v61, %v5964_v35 }
 0x402   : > { %4684 = vmatprep.mubr.msk.bf16.mxu0 %vm456_vm3, %v3931_v30  ;;  %v3454_v48 = vld [vmem:[#allocation4 + $0xf8] sm:$0xff]  ;;  %3612 = vst.msk [vmem:[#allocation4 + $0xe1] sm:$0xff] %vm272_vm2, %v3580_v55  ;;  %v3849_v30 = vmul.f32 %v4794_v29, %v5964_v35  ;;  %v3888_v37 = vadd.f32 %v5975_v45, %v3851_v50  ;;  %v3855_v29 = vmul.f32 %v4802_v14, %v4801_v15 }
 0x403   : > { %v3486_v9 = vld [vmem:[#allocation4 + $0xf9] sm:$0xff]  ;;  %v3891_v8 = vadd.f32 %v4800_v22, %v3854_v53 }
 0x404   : > { %v3549_v11 = vld [vmem:[#allocation4 + $0xf2] sm:$0xff]  ;;  %v3518_v56 = vmax.f32 %v3454_v48, %v3486_v9  ;;  %v3550_v57 = vld [vmem:[#allocation4 + $0xfa] sm:$0xff]  ;;  %v4664_v26 = vpop.f32.mrb[68].mxu1  ;;  %v3937_v9 = vpack.c.bf16 %v3915_v38, %v3914_v3  ;;  %v3920_v20 = vmax.f32 %v3888_v37, 0.0 }
 0x405   : > { %v3581_v58 = vmax.f32 %v3517_v43, %v3549_v11  ;;  %v3332_v19 = vadd.f32 %v4664_v26, %v6058_v34  ;;  %v3323_v28 = vpop.f32.mrb[69].mxu1  ;;  %v3884_v43 = vadd.f32 %v5975_v45, %v3847_v13 }
 0x406   : > { %v3582_v0 = vmax.f32 %v3518_v56, %v3550_v57  ;;  %v3324_v4 = vadd.f32 %v6058_v34, %v3323_v28  ;;  %v4665_v33 = vpop.f32.mrb[70].mxu1 }
 0x407   : > { %3613 = vst.msk [vmem:[#allocation4 + $0xf1] sm:$0xff] %vm272_vm2, %v3581_v58  ;;  %v3392_v2 = vmax.f32 %v3332_v19, 0.0  ;;  %v3335_v36 = vadd.f32 %v4665_v33, %v6058_v34  ;;  %v3326_v39 = vpop.f32.mrb[71].mxu1  ;;  %v3916_v11 = vmax.f32 %v3884_v43, 0.0  ;;  %v4797_v58 = vld [vmem:[%s5034_s23 + $0xd8] sm:$0xff]  ;;  %v3923_v33 = vmax.f32 %v3891_v8, 0.0 }
 0x408   : > { %3614 = vst.msk [vmem:[#allocation4 + $0xf9] sm:$0xff] %vm272_vm2, %v3582_v0  ;;  %v3390_v40 = vmax.f32 %v3324_v4, 0.0  ;;  %v3327_v41 = vadd.f32 %v6058_v34, %v3326_v39  ;;  %v3852_v54 = vmul.f32 %v4797_v58, %v5964_v35  ;;  %v3892_v39 = vadd.f32 %v4800_v22, %v3855_v29 }
 0x409   : > { %4685 = vmatmul.mubr.msk.bf16.gmra.mrb[56].mxu0 %vm456_vm3, %v3932_v47  ;;  %3425 = vst.msk [vmem:[#allocation4 + $0x121] sm:$0xff] %vm272_vm2, %v3392_v2  ;;  %v3393_v52 = vmax.f32 %v3335_v36, 0.0  ;;  %v3887_v47 = vadd.f32 %v5975_v45, %v3850_v21  ;;  %v3938_v6 = vpack.c.bf16 %v3917_v51, %v3916_v11 }
 0x40a   : > { %4688 = vmatprep.mubr.msk.bf16.mxu0 %vm456_vm3, %v3933_v17  ;;  %3423 = vst.msk [vmem:[#allocation4 + $0x109] sm:$0xff] %vm272_vm2, %v3390_v40  ;;  %v3391_v48 = vmax.f32 %v3327_v41, 0.0  ;;  %v3853_v17 = vmul.f32 %v4798_v59, %v5964_v35  ;;  %v3889_v44 = vadd.f32 %v5975_v45, %v3852_v54  ;;  %v3924_v11 = vmax.f32 %v3892_v39, 0.0 }
 0x40b   : > { %3426 = vst.msk [vmem:[#allocation4 + $0x129] sm:$0xff] %vm272_vm2, %v3393_v52  ;;  %v3919_v57 = vmax.f32 %v3887_v47, 0.0 }
 0x40c   : > { %3424 = vst.msk [vmem:[#allocation4 + $0x111] sm:$0xff] %vm272_vm2, %v3391_v48  ;;  %v3890_v35 = vadd.f32 %v4800_v22, %v3853_v17  ;;  %v3921_v28 = vmax.f32 %v3889_v44, 0.0  ;;  %v4668_v3 = vpop.f32.mrb[72].mxu1 }
 0x40d   : > { %v3348_v38 = vadd.f32 %v4668_v3, %v6058_v34  ;;  %v3339_v2 = vpop.f32.mrb[73].mxu1 }
 0x40e   : > { %v3922_v4 = vmax.f32 %v3890_v35, 0.0  ;;  %v3940_v36 = vpack.c.bf16 %v3921_v28, %v3920_v20  ;;  %v3340_v41 = vadd.f32 %v6058_v34, %v3339_v2 }
 0x40f   : > { %v3396_v52 = vmax.f32 %v3348_v38, 0.0 }
 0x410   : > { %v3457_v62 = vld [vmem:[#allocation4 + $0x120] sm:$0xff]  ;;  %v3941_v43 = vpack.c.bf16 %v3923_v33, %v3922_v4  ;;  %v3394_v47 = vmax.f32 %v3340_v41, 0.0 }
 0x411   : > { %4689 = vmatmul.mubr.msk.bf16.gmra.mrb[60].mxu0 %vm456_vm3, %v3934_v24  ;;  %v3489_v0 = vld [vmem:[#allocation4 + $0x121] sm:$0xff]  ;;  %v3487_v5 = vld [vmem:[#allocation4 + $0x109] sm:$0xff]  ;;  %3429 = vst.msk [vmem:[#allocation4 + $0x151] sm:$0xff] %vm272_vm2, %v3396_v52 }
 0x412   : > { %4692 = vmatprep.mubr.msk.bf16.mxu0 %vm456_vm3, %v6062_v32  ;;  %v3886_v32 = vadd.f32 %v5975_v45, %v3849_v30  ;;  %v3521_v63 = vmax.f32 %v3457_v62, %v3489_v0  ;;  %v3455_v1 = vld [vmem:[#allocation4 + $0x108] sm:$0xff]  ;;  %3427 = vst.msk [vmem:[#allocation4 + $0x139] sm:$0xff] %vm272_vm2, %v3394_v47 }
 0x413   : > { %v3458_v10 = vld [vmem:[#allocation4 + $0x128] sm:$0xff]  ;;  %v3519_v18 = vmax.f32 %v3455_v1, %v3487_v5  ;;  %v3456_v25 = vld [vmem:[#allocation4 + $0x110] sm:$0xff] }
 0x414   : > { %v3918_v56 = vmax.f32 %v3886_v32, 0.0  ;;  %v3490_v12 = vld [vmem:[#allocation4 + $0x129] sm:$0xff]  ;;  %v3488_v26 = vld [vmem:[#allocation4 + $0x111] sm:$0xff] }
 0x415   : > { %v3553_v16 = vld [vmem:[#allocation4 + $0x122] sm:$0xff]  ;;  %v3522_v23 = vmax.f32 %v3458_v10, %v3490_v12  ;;  %v3554_v24 = vld [vmem:[#allocation4 + $0x12a] sm:$0xff]  ;;  %v3520_v7 = vmax.f32 %v3456_v25, %v3488_v26  ;;  %v3552_v45 = vld [vmem:[#allocation4 + $0x112] sm:$0xff] }
 0x416   : > { %v3939_v55 = vpack.c.bf16 %v3919_v57, %v3918_v56  ;;  %v3585_v60 = vmax.f32 %v3521_v63, %v3553_v16  ;;  %v3551_v27 = vld [vmem:[#allocation4 + $0x10a] sm:$0xff] }
 0x417   : > { %v3586_v13 = vmax.f32 %v3522_v23, %v3554_v24  ;;  %v3583_v19 = vmax.f32 %v3519_v18, %v3551_v27  ;;  %v4803_v30 = vld [vmem:[%s5034_s23 + $0xf8] sm:$0xff]  ;;  %v3584_v21 = vmax.f32 %v3520_v7, %v3552_v45 }
 0x418   : > { %3617 = vst.msk [vmem:[#allocation4 + $0x121] sm:$0xff] %vm272_vm2, %v3585_v60  ;;  %v3856_v31 = vmul.f32 %v4803_v30, %v4802_v14  ;;  %v3461_v62 = vld [vmem:[#allocation4 + $0x150] sm:$0xff] }
 0x419   : > { %4693 = vmatmul.mubr.msk.bf16.gmra.mrb[64].mxu0 %vm456_vm3, %v3936_v42  ;;  %3618 = vst.msk [vmem:[#allocation4 + $0x129] sm:$0xff] %vm272_vm2, %v3586_v13  ;;  %3615 = vst.msk [vmem:[#allocation4 + $0x109] sm:$0xff] %vm272_vm2, %v3583_v19  ;;  %v4669_v42 = vpop.f32.mrb[74].mxu1  ;;  %v3493_v0 = vld [vmem:[#allocation4 + $0x151] sm:$0xff] }
 0x41a   : > { %4696 = vmatprep.mubr.msk.bf16.mxu0 %vm456_vm3, %v3937_v9  ;;  %3616 = vst.msk [vmem:[#allocation4 + $0x111] sm:$0xff] %vm272_vm2, %v3584_v21  ;;  %v3893_v40 = vadd.f32 %v4800_v22, %v3856_v31  ;;  %v3351_v46 = vadd.f32 %v4669_v42, %v6058_v34  ;;  %v3342_v32 = vpop.f32.mrb[75].mxu1  ;;  %v3525_v5 = vmax.f32 %v3461_v62, %v3493_v0 }
 0x41b   : > { %v3343_v48 = vadd.f32 %v6058_v34, %v3342_v32  ;;  %v4672_v51 = vpop.f32.mrb[76].mxu1 }
 0x41c   : > { %v3397_v9 = vmax.f32 %v3351_v46, 0.0  ;;  %v3925_v49 = vmax.f32 %v3893_v40, 0.0  ;;  %v3364_v56 = vadd.f32 %v4672_v51, %v6058_v34  ;;  %v3355_v57 = vpop.f32.mrb[77].mxu1 }
 0x41d   : > { %v3395_v50 = vmax.f32 %v3343_v48, 0.0  ;;  %v3356_v54 = vadd.f32 %v6058_v34, %v3355_v57  ;;  %v4673_v59 = vpop.f32.mrb[78].mxu1 }
 0x41e   : > { %3430 = vst.msk [vmem:[#allocation4 + $0x159] sm:$0xff] %vm272_vm2, %v3397_v9  ;;  %v3942_v58 = vpack.c.bf16 %v3925_v49, %v3924_v11  ;;  %v3400_v17 = vmax.f32 %v3364_v56, 0.0  ;;  %v3367_v61 = vadd.f32 %v4673_v59, %v6058_v34  ;;  %v3358_v53 = vpop.f32.mrb[79].mxu1 }
 0x41f   : > { %3428 = vst.msk [vmem:[#allocation4 + $0x141] sm:$0xff] %vm272_vm2, %v3395_v50  ;;  %v3398_v37 = vmax.f32 %v3356_v54, 0.0  ;;  %v3359_v63 = vadd.f32 %v6058_v34, %v3358_v53 }
 0x420   : > { %3433 = vst.msk [vmem:[#allocation4 + $0x181] sm:$0xff] %vm272_vm2, %v3400_v17  ;;  %v3401_v44 = vmax.f32 %v3367_v61, 0.0 }
 0x421   : > { %4697 = vmatmul.mubr.msk.bf16.gmra.mrb[68].mxu0 %vm456_vm3, %v3938_v6  ;;  %v3459_v6 = vld [vmem:[#allocation4 + $0x138] sm:$0xff]  ;;  %3431 = vst.msk [vmem:[#allocation4 + $0x169] sm:$0xff] %vm272_vm2, %v3398_v37  ;;  %v3399_v35 = vmax.f32 %v3359_v63, 0.0 }
 0x422   : > { %4700 = vmatprep.mubr.msk.bf16.mxu0 %vm456_vm3, %v3939_v55  ;;  %v3491_v55 = vld [vmem:[#allocation4 + $0x139] sm:$0xff]  ;;  %3434 = vst.msk [vmem:[#allocation4 + $0x189] sm:$0xff] %vm272_vm2, %v3401_v44 }
 0x423   : > { %v3523_v22 = vmax.f32 %v3459_v6, %v3491_v55  ;;  %3432 = vst.msk [vmem:[#allocation4 + $0x171] sm:$0xff] %vm272_vm2, %v3399_v35 }
 0x425   : > { %v3462_v12 = vld [vmem:[#allocation4 + $0x158] sm:$0xff] }
 0x426   : > { %v3494_v16 = vld [vmem:[#allocation4 + $0x159] sm:$0xff]  ;;  %v3492_v25 = vld [vmem:[#allocation4 + $0x141] sm:$0xff] }
 0x427   : > { %v3557_v18 = vld [vmem:[#allocation4 + $0x152] sm:$0xff]  ;;  %v3526_v8 = vmax.f32 %v3462_v12, %v3494_v16  ;;  %v3558_v23 = vld [vmem:[#allocation4 + $0x15a] sm:$0xff]  ;;  %v3556_v45 = vld [vmem:[#allocation4 + $0x142] sm:$0xff] }
 0x428   : > { %v3589_v24 = vmax.f32 %v3525_v5, %v3557_v18  ;;  %v3460_v60 = vld [vmem:[#allocation4 + $0x140] sm:$0xff]  ;;  %v3463_v29 = vld [vmem:[#allocation4 + $0x168] sm:$0xff]  ;;  %v3661_v16 = vld [vmem:[#allocation4 + $0x31] sm:$0xff] }
 0x429   : > { %4701 = vmatmul.mubr.msk.bf16.gmra.mrb[72].mxu0 %vm456_vm3, %v3940_v36  ;;  %v3524_v7 = vmax.f32 %v3460_v60, %v3492_v25  ;;  %v3555_v27 = vld [vmem:[#allocation4 + $0x13a] sm:$0xff]  ;;  %v3590_v20 = vmax.f32 %v3526_v8, %v3558_v23  ;;  %v3495_v30 = vld [vmem:[#allocation4 + $0x169] sm:$0xff] }
 0x42a   : > { %4704 = vmatprep.mubr.msk.bf16.mxu0 %vm456_vm3, %v3941_v43  ;;  %3621 = vst.msk [vmem:[#allocation4 + $0x151] sm:$0xff] %vm272_vm2, %v3589_v24  ;;  %v3587_v13 = vmax.f32 %v3523_v22, %v3555_v27  ;;  %v3465_v28 = vld [vmem:[#allocation4 + $0x180] sm:$0xff]  ;;  %v3466_v31 = vld [vmem:[#allocation4 + $0x188] sm:$0xff]  ;;  %v3527_v33 = vmax.f32 %v3463_v29, %v3495_v30  ;;  %v3464_v36 = vld [vmem:[#allocation4 + $0x170] sm:$0xff] }
 0x42b   : > { %v3588_v19 = vmax.f32 %v3524_v7, %v3556_v45  ;;  %3622 = vst.msk [vmem:[#allocation4 + $0x159] sm:$0xff] %vm272_vm2, %v3590_v20  ;;  %v3497_v15 = vld [vmem:[#allocation4 + $0x181] sm:$0xff]  ;;  %v3498_v21 = vld [vmem:[#allocation4 + $0x189] sm:$0xff]  ;;  %v3496_v39 = vld [vmem:[#allocation4 + $0x171] sm:$0xff] }
 0x42c   : > { %3619 = vst.msk [vmem:[#allocation4 + $0x139] sm:$0xff] %vm272_vm2, %v3587_v13  ;;  %v3529_v14 = vmax.f32 %v3465_v28, %v3497_v15  ;;  %v3561_v4 = vld [vmem:[#allocation4 + $0x182] sm:$0xff]  ;;  %v3530_v3 = vmax.f32 %v3466_v31, %v3498_v21  ;;  %v3562_v38 = vld [vmem:[#allocation4 + $0x18a] sm:$0xff]  ;;  %v3528_v40 = vmax.f32 %v3464_v36, %v3496_v39  ;;  %v3560_v42 = vld [vmem:[#allocation4 + $0x172] sm:$0xff] }
 0x42d   : > { %v6312_v1 = vpop.f32.mrb[16].mxu0  ;;  %3620 = vst.msk [vmem:[#allocation4 + $0x141] sm:$0xff] %vm272_vm2, %v3588_v19  ;;  %v3559_v41 = vld [vmem:[#allocation4 + $0x16a] sm:$0xff]  ;;  %v3629_v12 = vld [vmem:[#allocation4 + $0x19] sm:$0xff]  ;;  %v3627_v22 = vld [vmem:[#allocation4 + $0x1] sm:$0xff] }
 0x42e   : > { %v6315_v10 = vpop.f32.mrb[17].mxu0  ;;  %v3593_v2 = vmax.f32 %v3529_v14, %v3561_v4  ;;  %v3594_v43 = vmax.f32 %v3530_v3, %v3562_v38  ;;  %v3591_v52 = vmax.f32 %v3527_v33, %v3559_v41  ;;  %v3592_v46 = vmax.f32 %v3528_v40, %v3560_v42  ;;  %v3630_v8 = vld [vmem:[#allocation4 + $0x21] sm:$0xff]  ;;  %v6385_v23 = vld [vmem:[#allocation4 + $0x39] sm:$0xff]  ;;  %v3628_v25 = vld [vmem:[#allocation4 + $0x9] sm:$0xff] }
 0x42f   : > { %v6319_v34 = vpop.f32.mrb[18].mxu0  ;;  %v3693_v60 = vmax.f32 %v3629_v12, %v3661_v16  ;;  %v6394_v27 = vld [vmem:[%s6635_s1 + $0x4] ss:$0 sm:$0xff]  ;;  %v3726_v45 = vld [vmem:[#allocation4 + $0x49] sm:$0xff]  ;;  %v3691_v20 = vmax.f32 %v3627_v22, %v3629_v12  ;;  %v3694_v13 = vmax.f32 %v3630_v8, %v6385_v23  ;;  %v3692_v28 = vmax.f32 %v3628_v25, %v3630_v8  ;;  %v6400_v15 = vld [vmem:[%s6635_s1 + $0xa] ss:$0 sm:$0xff] }
 0x430   : > { %v6322_v26 = vpop.f32.mrb[19].mxu0  ;;  %3625 = vst.msk [vmem:[#allocation4 + $0x181] sm:$0xff] %vm272_vm2, %v3593_v2  ;;  %3626 = vst.msk [vmem:[#allocation4 + $0x189] sm:$0xff] %vm272_vm2, %v3594_v43  ;;  %v3727_v19 = vld [vmem:[#allocation4 + $0x51] sm:$0xff]  ;;  %v2912_v14 = vadd.f32 %v6312_v1, %v6394_v27  ;;  %v2904_v30 = vadd.f32 %v6394_v27, %v6315_v10  ;;  %v6406_v21 = vld [vmem:[#allocation4 + $0x61] sm:$0xff]  ;;  %v2915_v33 = vadd.f32 %v6319_v34, %v6394_v27 }
 0x431   : > { %4705 = vmatmul.mubr.msk.bf16.gmra.mrb[76].mxu0 %vm456_vm3, %v3942_v58  ;;  %3623 = vst.msk [vmem:[#allocation4 + $0x169] sm:$0xff] %vm272_vm2, %v3591_v52  ;;  %3624 = vst.msk [vmem:[#allocation4 + $0x171] sm:$0xff] %vm272_vm2, %v3592_v46  ;;  %v3758_v29 = vmax.f32 %v3693_v60, %v3726_v45  ;;  %v3756_v31 = vmax.f32 %v3691_v20, %v3661_v16  ;;  %v3759_v3 = vmax.f32 %v3694_v13, %v3727_v19  ;;  %v6414_v39 = vld [vmem:[#allocation4 + $0x69] sm:$0xff]  ;;  %v3730_v12 = vld [vmem:[#allocation4 + $0x79] sm:$0xff] }
 0x432   : > { %v2907_v36 = vadd.f32 %v6394_v27, %v6322_v26  ;;  %v3757_v1 = vmax.f32 %v3692_v28, %v6385_v23  ;;  %v3697_v42 = vmax.f32 %v3726_v45, %v6406_v21  ;;  %v3695_v22 = vmax.f32 %v3661_v16, %v3726_v45 }
 0x433   : > { %v3790_v41 = vadd.f32 %v3758_v29, %v2912_v14  ;;  %v3788_v46 = vadd.f32 %v3756_v31, %v2904_v30  ;;  %v3791_v60 = vadd.f32 %v3759_v3, %v2915_v33  ;;  %v3698_v25 = vmax.f32 %v3727_v19, %v6414_v39  ;;  %v3731_v14 = vld [vmem:[#allocation4 + $0x81] sm:$0xff] }
 0x434   : > { %v3789_v28 = vadd.f32 %v3757_v1, %v2907_v36  ;;  %v3696_v16 = vmax.f32 %v6385_v23, %v3727_v19  ;;  %v3762_v31 = vmax.f32 %v3697_v42, %v3730_v12  ;;  %v3760_v3 = vmax.f32 %v3695_v22, %v6406_v21 }
 0x455   : > { %v6333_v32 = vpop.f32.mrb[20].mxu0 }
 0x456   : > { %v6335_v47 = vpop.f32.mrb[21].mxu0  ;;  %v2928_v30 = vadd.f32 %v6333_v32, %v6394_v27  ;;  %v3763_v32 = vmax.f32 %v3698_v25, %v3731_v14 }
 0x457   : > { %v6337_v48 = vpop.f32.mrb[22].mxu0  ;;  %v2920_v33 = vadd.f32 %v6394_v27, %v6335_v47 }
 0x458   : > { %v6339_v9 = vpop.f32.mrb[23].mxu0 }
 0x459   : > { %v2923_v47 = vadd.f32 %v6394_v27, %v6339_v9  ;;  %v3792_v22 = vadd.f32 %v3760_v3, %v2920_v33  ;;  %v3699_v9 = vmax.f32 %v6406_v21, %v3730_v12 }
 0x46d   : > { %v6341_v11 = vpop.f32.mrb[24].mxu0 }
 0x46e   : > { %v6343_v49 = vpop.f32.mrb[25].mxu0 }
 0x46f   : > { %v6345_v50 = vpop.f32.mrb[26].mxu0  ;;  %v2936_v33 = vadd.f32 %v6394_v27, %v6343_v49 }
 0x470   : > { %v6347_v51 = vpop.f32.mrb[27].mxu0 }
 0x471   : > { %v2939_v49 = vadd.f32 %v6394_v27, %v6347_v51 }
 0x485   : > { %v6349_v56 = vpop.f32.mrb[28].mxu0 }
 0x486   : > { %v6351_v57 = vpop.f32.mrb[29].mxu0 }
 0x487   : > { %v6353_v58 = vpop.f32.mrb[30].mxu0 }
 0x488   : > { %v6355_v54 = vpop.f32.mrb[31].mxu0 }
 0x49d   : > { %v6357_v59 = vpop.f32.mrb[32].mxu0 }
 0x49e   : > { %v6359_v17 = vpop.f32.mrb[33].mxu0 }
 0x49f   : > { %v6361_v61 = vpop.f32.mrb[34].mxu0 }
 0x4a0   : > { %v6363_v53 = vpop.f32.mrb[35].mxu0 }
 0x4b1   : > { %v6365_v62 = vpop.f32.mrb[36].mxu0 }
 0x4b2   : > { %v6367_v0 = vpop.f32.mrb[37].mxu0 }
 0x4b3   : > { %v6369_v37 = vpop.f32.mrb[38].mxu0 }
 0x4b4   : > { %v6371_v63 = vpop.f32.mrb[39].mxu0 }
 0x4b9   : > { %v6373_v5 = vpop.f32.mrb[40].mxu0 }
 0x4ba   : > { %v6375_v6 = vpop.f32.mrb[41].mxu0 }
 0x4bb   : > { %v6377_v55 = vpop.f32.mrb[42].mxu0 }
 0x4bc   : > { %v6379_v44 = vpop.f32.mrb[43].mxu0 }
 0x4c4   : > { %v6381_v18 = vpop.f32.mrb[44].mxu0 }
 0x4c5   : > { %v6383_v35 = vpop.f32.mrb[45].mxu0 }
 0x4c6   : > { %v6387_v24 = vpop.f32.mrb[46].mxu0 }
 0x4c7   : > { %v6389_v7 = vpop.f32.mrb[47].mxu0 }
 0x4cc   : > { %v4678_v4 = vpop.f32.mrb[48].mxu0 }
 0x4cd   : > { %v4042_v38 = vadd.f32 %v4678_v4, %v6400_v15  ;;  %v4033_v2 = vpop.f32.mrb[49].mxu0 }
 0x4ce   : > { %v4034_v10 = vadd.f32 %v6400_v15, %v4033_v2  ;;  %v4679_v40 = vpop.f32.mrb[50].mxu0  ;;  %v2931_v2 = vadd.f32 %v6337_v48, %v6394_v27 }
 0x4cf   : > { %v4162_v43 = vmax.f32 %v4042_v38, 0.0  ;;  %v4045_v34 = vadd.f32 %v4679_v40, %v6400_v15  ;;  %v4036_v52 = vpop.f32.mrb[51].mxu0  ;;  %v6436_v38 = vld [vmem:[#allocation4 + $0x91] sm:$0xff]  ;;  %v6448_v40 = vld [vmem:[#allocation4 + $0x99] sm:$0xff] }
 0x4d0   : > { %v4160_v26 = vmax.f32 %v4034_v10, 0.0  ;;  %v4037_v8 = vadd.f32 %v6400_v15, %v4036_v52  ;;  %v3761_v10 = vmax.f32 %v3696_v16, %v6414_v39  ;;  %v3701_v48 = vmax.f32 %v3730_v12, %v6436_v38 }
 0x4d1   : > { %v4194_v20 = vadd.f32 %v4162_v43, %v3790_v41  ;;  %v4163_v13 = vmax.f32 %v4045_v34, 0.0  ;;  %v3794_v43 = vadd.f32 %v3762_v31, %v2928_v30  ;;  %v3795_v25 = vadd.f32 %v3763_v32, %v2931_v2 }
 0x4d2   : > { %v4192_v45 = vadd.f32 %v4160_v26, %v3788_v46  ;;  %v4161_v29 = vmax.f32 %v4037_v8, 0.0  ;;  %v3734_v26 = vld [vmem:[#allocation4 + $0xa9] sm:$0xff]  ;;  %v3793_v16 = vadd.f32 %v3761_v10, %v2923_v47  ;;  %v3764_v3 = vmax.f32 %v3699_v9, %v6436_v38 }
 0x4d3   : > { %4226 = vst.msk [vmem:[%s6424_s14 + $0x10] sm:$0xff] %vm272_vm2, %v4194_v20  ;;  %v4195_v4 = vadd.f32 %v4163_v13, %v3791_v60  ;;  %v3702_v20 = vmax.f32 %v3731_v14, %v6448_v40  ;;  %v3766_v21 = vmax.f32 %v3701_v48, %v3734_v26  ;;  %v3703_v51 = vmax.f32 %v6436_v38, %v3734_v26 }
 0x4d4   : > { %4224 = vst.msk [vmem:[%s6424_s14] sm:$0xff] %vm272_vm2, %v4192_v45  ;;  %v4193_v23 = vadd.f32 %v4161_v29, %v3789_v28  ;;  %v4682_v19 = vpop.f32.mrb[52].mxu0  ;;  %v3735_v45 = vld [vmem:[#allocation4 + $0xb1] sm:$0xff]  ;;  %v3700_v29 = vmax.f32 %v6414_v39, %v3731_v14 }
 0x4d5   : > { %4227 = vst.msk [vmem:[%s6424_s14 + $0x18] sm:$0xff] %vm272_vm2, %v4195_v4  ;;  %v4058_v36 = vadd.f32 %v4682_v19, %v6400_v15  ;;  %v4049_v1 = vpop.f32.mrb[53].mxu0  ;;  %v2944_v4 = vadd.f32 %v6341_v11, %v6394_v27  ;;  %v2947_v19 = vadd.f32 %v6345_v50, %v6394_v27  ;;  %v3767_v11 = vmax.f32 %v3702_v20, %v3735_v45 }
 0x4d6   : > { %4225 = vst.msk [vmem:[%s6424_s14 + $0x8] sm:$0xff] %vm272_vm2, %v4193_v23  ;;  %v4050_v41 = vadd.f32 %v6400_v15, %v4049_v1  ;;  %v4683_v42 = vpop.f32.mrb[54].mxu0  ;;  %v6466_v23 = vld [vmem:[#allocation4 + $0xc1] sm:$0xff]  ;;  %v6478_v1 = vld [vmem:[#allocation4 + $0xc9] sm:$0xff] }
 0x4d7   : > { %v4166_v34 = vmax.f32 %v4058_v36, 0.0  ;;  %v4061_v52 = vadd.f32 %v4683_v42, %v6400_v15  ;;  %v4052_v46 = vpop.f32.mrb[55].mxu0  ;;  %v3765_v36 = vmax.f32 %v3700_v29, %v6448_v40  ;;  %v3705_v50 = vmax.f32 %v3734_v26, %v6466_v23 }
 0x4d8   : > { %v4164_v8 = vmax.f32 %v4050_v41, 0.0  ;;  %v4053_v60 = vadd.f32 %v6400_v15, %v4052_v46  ;;  %v3798_v41 = vadd.f32 %v3766_v21, %v2944_v4  ;;  %v3799_v9 = vadd.f32 %v3767_v11, %v2947_v19  ;;  %v6496_v21 = vld [vmem:[#allocation4 + $0xf1] sm:$0xff] }
 0x4d9   : > { %v4198_v13 = vadd.f32 %v4166_v34, %v3794_v43  ;;  %v4167_v28 = vmax.f32 %v4061_v52, 0.0  ;;  %v3796_v34 = vadd.f32 %v3764_v3, %v2936_v33  ;;  %v3738_v52 = vld [vmem:[#allocation4 + $0xd9] sm:$0xff]  ;;  %v3797_v20 = vadd.f32 %v3765_v36, %v2939_v49 }
 0x4da   : > { %v4196_v30 = vadd.f32 %v4164_v8, %v3792_v22  ;;  %v4165_v31 = vmax.f32 %v4053_v60, 0.0  ;;  %v3706_v8 = vmax.f32 %v3735_v45, %v6478_v1  ;;  %v3770_v38 = vmax.f32 %v3705_v50, %v3738_v52 }
 0x4db   : > { %4230 = vst.msk [vmem:[%s6424_s14 + $0x30] sm:$0xff] %vm272_vm2, %v4198_v13  ;;  %v4199_v12 = vadd.f32 %v4167_v28, %v3795_v25  ;;  %v3739_v13 = vld [vmem:[#allocation4 + $0xe1] sm:$0xff]  ;;  %v3704_v28 = vmax.f32 %v6448_v40, %v3735_v45  ;;  %v3768_v4 = vmax.f32 %v3703_v51, %v6466_v23 }
 0x4dc   : > { %4228 = vst.msk [vmem:[%s6424_s14 + $0x20] sm:$0xff] %vm272_vm2, %v4196_v30  ;;  %v4197_v39 = vadd.f32 %v4165_v31, %v3793_v16  ;;  %v4686_v14 = vpop.f32.mrb[56].mxu0  ;;  %v2960_v30 = vadd.f32 %v6349_v56, %v6394_v27  ;;  %v2952_v31 = vadd.f32 %v6394_v27, %v6351_v57  ;;  %v3771_v56 = vmax.f32 %v3706_v8, %v3739_v13 }
 0x4dd   : > { %4231 = vst.msk [vmem:[%s6424_s14 + $0x38] sm:$0xff] %vm272_vm2, %v4199_v12  ;;  %v4074_v2 = vadd.f32 %v4686_v14, %v6400_v15  ;;  %v4065_v32 = vpop.f32.mrb[57].mxu0  ;;  %v2963_v12 = vadd.f32 %v6353_v58, %v6394_v27  ;;  %v2955_v57 = vadd.f32 %v6394_v27, %v6355_v54  ;;  %v6508_v14 = vld [vmem:[#allocation4 + $0xf9] sm:$0xff]  ;;  %v3709_v58 = vmax.f32 %v3738_v52, %v6496_v21 }
 0x4de   : > { %4229 = vst.msk [vmem:[%s6424_s14 + $0x28] sm:$0xff] %vm272_vm2, %v4197_v39  ;;  %v4066_v47 = vadd.f32 %v6400_v15, %v4065_v32  ;;  %v4687_v10 = vpop.f32.mrb[58].mxu0  ;;  %v3769_v39 = vmax.f32 %v3704_v28, %v6478_v1  ;;  %v3707_v54 = vmax.f32 %v6466_v23, %v3738_v52  ;;  %v6526_v28 = vld [vmem:[#allocation4 + $0x121] sm:$0xff] }
 0x4df   : > { %v4170_v42 = vmax.f32 %v4074_v2, 0.0  ;;  %v4077_v43 = vadd.f32 %v4687_v10, %v6400_v15  ;;  %v4068_v48 = vpop.f32.mrb[59].mxu0  ;;  %v3802_v2 = vadd.f32 %v3770_v38, %v2960_v30  ;;  %v3742_v10 = vld [vmem:[#allocation4 + $0x109] sm:$0xff] }
 0x4e0   : > { %v4168_v46 = vmax.f32 %v4066_v47, 0.0  ;;  %v4069_v22 = vadd.f32 %v6400_v15, %v4068_v48  ;;  %v3800_v47 = vadd.f32 %v3768_v4, %v2952_v31  ;;  %v3801_v51 = vadd.f32 %v3769_v39, %v2955_v57 }
 0x4e1   : > { %v4202_v60 = vadd.f32 %v4170_v42, %v3798_v41  ;;  %v4171_v25 = vmax.f32 %v4077_v43, 0.0  ;;  %v3803_v42 = vadd.f32 %v3771_v56, %v2963_v12  ;;  %v3710_v43 = vmax.f32 %v3739_v13, %v6508_v14 }
 0x4e2   : > { %v4200_v16 = vadd.f32 %v4168_v46, %v3796_v34  ;;  %v4169_v29 = vmax.f32 %v4069_v22, 0.0  ;;  %v3743_v46 = vld [vmem:[#allocation4 + $0x111] sm:$0xff]  ;;  %v3708_v22 = vmax.f32 %v6478_v1, %v3739_v13  ;;  %v3774_v23 = vmax.f32 %v3709_v58, %v3742_v10 }
 0x4e3   : > { %4234 = vst.msk [vmem:[%s6424_s14 + $0x50] sm:$0xff] %vm272_vm2, %v4202_v60  ;;  %v4203_v26 = vadd.f32 %v4171_v25, %v3799_v9  ;;  %v2976_v60 = vadd.f32 %v6357_v59, %v6394_v27  ;;  %v2968_v25 = vadd.f32 %v6394_v27, %v6359_v17  ;;  %v3775_v59 = vmax.f32 %v3710_v43, %v3743_v46  ;;  %v6556_v43 = vld [vmem:[#allocation4 + $0x151] sm:$0xff] }
 0x4e4   : > { %4232 = vst.msk [vmem:[%s6424_s14 + $0x40] sm:$0xff] %vm272_vm2, %v4200_v16  ;;  %v4201_v40 = vadd.f32 %v4169_v29, %v3797_v20  ;;  %v4690_v45 = vpop.f32.mrb[60].mxu0  ;;  %v3772_v20 = vmax.f32 %v3707_v54, %v6496_v21  ;;  %v2979_v16 = vadd.f32 %v6361_v61, %v6394_v27  ;;  %v2971_v17 = vadd.f32 %v6394_v27, %v6363_v53 }
 0x4e5   : > { %4235 = vst.msk [vmem:[%s6424_s14 + $0x58] sm:$0xff] %vm272_vm2, %v4203_v26  ;;  %v4090_v33 = vadd.f32 %v4690_v45, %v6400_v15  ;;  %v4081_v3 = vpop.f32.mrb[61].mxu0  ;;  %v3773_v38 = vmax.f32 %v3708_v22, %v6508_v14  ;;  %v6538_v26 = vld [vmem:[#allocation4 + $0x129] sm:$0xff]  ;;  %v3713_v61 = vmax.f32 %v3742_v10, %v6526_v28  ;;  %v3711_v53 = vmax.f32 %v6496_v21, %v3742_v10 }
 0x4e6   : > { %4233 = vst.msk [vmem:[%s6424_s14 + $0x48] sm:$0xff] %vm272_vm2, %v4201_v40  ;;  %v4082_v19 = vadd.f32 %v6400_v15, %v4081_v3  ;;  %v4691_v11 = vpop.f32.mrb[62].mxu0  ;;  %v3806_v40 = vadd.f32 %v3774_v23, %v2976_v60  ;;  %v3746_v3 = vld [vmem:[#allocation4 + $0x139] sm:$0xff] }
 0x4e7   : > { %v4174_v32 = vmax.f32 %v4090_v33, 0.0  ;;  %v4093_v49 = vadd.f32 %v4691_v11, %v6400_v15  ;;  %v4084_v36 = vpop.f32.mrb[63].mxu0  ;;  %v3804_v33 = vadd.f32 %v3772_v20, %v2968_v25  ;;  %v3714_v11 = vmax.f32 %v3743_v46, %v6538_v26 }
 0x4e8   : > { %v4172_v41 = vmax.f32 %v4082_v19, 0.0  ;;  %v4085_v50 = vadd.f32 %v6400_v15, %v4084_v36  ;;  %v3807_v19 = vadd.f32 %v3775_v59, %v2979_v16  ;;  %v3712_v36 = vmax.f32 %v6508_v14, %v3743_v46 }
 0x4e9   : > { %v4206_v48 = vadd.f32 %v4174_v32, %v3802_v2  ;;  %v4175_v34 = vmax.f32 %v4093_v49, 0.0  ;;  %v3805_v32 = vadd.f32 %v3773_v38, %v2971_v17  ;;  %v3747_v49 = vld [vmem:[#allocation4 + $0x141] sm:$0xff]  ;;  %v3778_v21 = vmax.f32 %v3713_v61, %v3746_v3 }
 0x4ea   : > { %v4204_v9 = vadd.f32 %v4172_v41, %v3800_v47  ;;  %v4173_v8 = vmax.f32 %v4085_v50, 0.0  ;;  %v2992_v41 = vadd.f32 %v6365_v62, %v6394_v27  ;;  %v2984_v50 = vadd.f32 %v6394_v27, %v6367_v0 }
 0x4eb   : > { %4238 = vst.msk [vmem:[%s6424_s14 + $0x70] sm:$0xff] %vm272_vm2, %v4206_v48  ;;  %v4207_v52 = vadd.f32 %v4175_v34, %v3803_v42  ;;  %v3776_v42 = vmax.f32 %v3711_v53, %v6526_v28  ;;  %v2995_v34 = vadd.f32 %v6369_v37, %v6394_v27  ;;  %v3779_v62 = vmax.f32 %v3714_v11, %v3747_v49  ;;  %v3689_v53 = vld [vmem:[#allocation4 + $0x181] sm:$0xff] }
 0x4ec   : > { %4236 = vst.msk [vmem:[%s6424_s14 + $0x60] sm:$0xff] %vm272_vm2, %v4204_v9  ;;  %v4205_v1 = vadd.f32 %v4173_v8, %v3801_v51  ;;  %v4694_v13 = vpop.f32.mrb[64].mxu0  ;;  %v2987_v0 = vadd.f32 %v6394_v27, %v6371_v63  ;;  %v3777_v22 = vmax.f32 %v3712_v36, %v6538_v26  ;;  %v6568_v9 = vld [vmem:[#allocation4 + $0x159] sm:$0xff]  ;;  %v3810_v23 = vadd.f32 %v3778_v21, %v2992_v41 }
 0x4ed   : > { %4239 = vst.msk [vmem:[%s6424_s14 + $0x78] sm:$0xff] %vm272_vm2, %v4207_v52  ;;  %v4106_v29 = vadd.f32 %v4694_v13, %v6400_v15  ;;  %v4097_v30 = vpop.f32.mrb[65].mxu0  ;;  %v3717_v37 = vmax.f32 %v3746_v3, %v6556_v43  ;;  %v3750_v13 = vld [vmem:[#allocation4 + $0x169] sm:$0xff]  ;;  %v3715_v63 = vmax.f32 %v6526_v28, %v3746_v3 }
 0x4ee   : > { %4237 = vst.msk [vmem:[%s6424_s14 + $0x68] sm:$0xff] %vm272_vm2, %v4205_v1  ;;  %v4098_v31 = vadd.f32 %v6400_v15, %v4097_v30  ;;  %v4695_v4 = vpop.f32.mrb[66].mxu0  ;;  %v3808_v1 = vadd.f32 %v3776_v42, %v2984_v50  ;;  %v3718_v30 = vmax.f32 %v3747_v49, %v6568_v9  ;;  %v3719_v50 = vmax.f32 %v6556_v43, %v3750_v13 }
 0x4ef   : > { %v4178_v45 = vmax.f32 %v4106_v29, 0.0  ;;  %v4109_v12 = vadd.f32 %v4695_v4, %v6400_v15  ;;  %v4100_v56 = vpop.f32.mrb[67].mxu0  ;;  %v3811_v29 = vadd.f32 %v3779_v62, %v2995_v34  ;;  %v3751_v4 = vld [vmem:[#allocation4 + $0x171] sm:$0xff]  ;;  %v3782_v28 = vmax.f32 %v3717_v37, %v3750_v13 }
 0x4f0   : > { %v4176_v57 = vmax.f32 %v4098_v31, 0.0  ;;  %v4101_v39 = vadd.f32 %v6400_v15, %v4100_v56  ;;  %v3809_v31 = vadd.f32 %v3777_v22, %v2987_v0  ;;  %v3780_v3 = vmax.f32 %v3715_v63, %v6556_v43 }
 0x4f1   : > { %v4210_v2 = vadd.f32 %v4178_v45, %v3806_v40  ;;  %v4179_v58 = vmax.f32 %v4109_v12, 0.0  ;;  %v3716_v40 = vmax.f32 %v6538_v26, %v3747_v49  ;;  %v3008_v12 = vadd.f32 %v6373_v5, %v6394_v27 }
 0x4f2   : > { %v4208_v47 = vadd.f32 %v4176_v57, %v3804_v33  ;;  %v4177_v54 = vmax.f32 %v4101_v39, 0.0  ;;  %v3000_v33 = vadd.f32 %v6394_v27, %v6375_v6  ;;  %v3011_v39 = vadd.f32 %v6377_v55, %v6394_v27 }
 0x4f3   : > { %4242 = vst.msk [vmem:[%s6424_s14 + $0x90] sm:$0xff] %vm272_vm2, %v4210_v2  ;;  %v4211_v10 = vadd.f32 %v4179_v58, %v3807_v19  ;;  %v3783_v19 = vmax.f32 %v3718_v30, %v3751_v4  ;;  %v3003_v2 = vadd.f32 %v6394_v27, %v6379_v44  ;;  %v3781_v6 = vmax.f32 %v3716_v40, %v6568_v9  ;;  %v3690_v58 = vld [vmem:[#allocation4 + $0x189] sm:$0xff] }
 0x4f4   : > { %4240 = vst.msk [vmem:[%s6424_s14 + $0x80] sm:$0xff] %vm272_vm2, %v4208_v47  ;;  %v4209_v14 = vadd.f32 %v4177_v54, %v3805_v32  ;;  %v4698_v48 = vpop.f32.mrb[68].mxu0  ;;  %v3814_v36 = vadd.f32 %v3782_v28, %v3008_v12  ;;  %v3721_v47 = vmax.f32 %v3750_v13, %v3689_v53  ;;  %v3812_v21 = vadd.f32 %v3780_v3, %v3000_v33 }
 0x4f5   : > { %4243 = vst.msk [vmem:[%s6424_s14 + $0x98] sm:$0xff] %vm272_vm2, %v4211_v10  ;;  %v4122_v51 = vadd.f32 %v4698_v48, %v6400_v15  ;;  %v4113_v46 = vpop.f32.mrb[69].mxu0  ;;  %v3754_v10 = vld [vmem:[#allocation4 + $0x199] sm:$0xff]  ;;  %v3722_v48 = vmax.f32 %v3751_v4, %v3690_v58  ;;  %v3720_v0 = vmax.f32 %v6568_v9, %v3751_v4  ;;  %v3016_v37 = vadd.f32 %v6394_v27, %v6383_v35 }
 0x4f6   : > { %4241 = vst.msk [vmem:[%s6424_s14 + $0x88] sm:$0xff] %vm272_vm2, %v4209_v14  ;;  %v4114_v8 = vadd.f32 %v6400_v15, %v4113_v46  ;;  %v4699_v60 = vpop.f32.mrb[70].mxu0  ;;  %v3815_v14 = vadd.f32 %v3783_v19, %v3011_v39  ;;  %v3755_v46 = vld [vmem:[#allocation4 + $0x1a1] sm:$0xff]  ;;  %v3786_v43 = vmax.f32 %v3721_v47, %v3754_v10  ;;  %v3027_v9 = vadd.f32 %v6387_v24, %v6394_v27 }
 0x4f7   : > { %v4182_v52 = vmax.f32 %v4122_v51, 0.0  ;;  %v4125_v25 = vadd.f32 %v4699_v60, %v6400_v15  ;;  %v4116_v20 = vpop.f32.mrb[71].mxu0  ;;  %v3813_v51 = vadd.f32 %v3781_v6, %v3003_v2  ;;  %v3024_v60 = vadd.f32 %v6381_v18, %v6394_v27 }
 0x4f8   : > { %v4180_v16 = vmax.f32 %v4114_v8, 0.0  ;;  %v4117_v59 = vadd.f32 %v6400_v15, %v4116_v20  ;;  %v3019_v63 = vadd.f32 %v6394_v27, %v6389_v7 }
 0x4f9   : > { %v4214_v17 = vadd.f32 %v4182_v52, %v3810_v23  ;;  %v4183_v38 = vmax.f32 %v4125_v25, 0.0  ;;  %v3784_v52 = vmax.f32 %v3719_v50, %v3689_v53 }
 0x4fa   : > { %v4212_v61 = vadd.f32 %v4180_v16, %v3808_v1  ;;  %v4181_v45 = vmax.f32 %v4117_v59, 0.0  ;;  %v3787_v1 = vmax.f32 %v3722_v48, %v3755_v46  ;;  %v3785_v16 = vmax.f32 %v3720_v0, %v3690_v58 }
 0x4fb   : > { %4246 = vst.msk [vmem:[%s6424_s14 + $0xb0] sm:$0xff] %vm272_vm2, %v4214_v17  ;;  %v4215_v56 = vadd.f32 %v4183_v38, %v3811_v29  ;;  %v3818_v29 = vadd.f32 %v3786_v43, %v3024_v60  ;;  %v3816_v38 = vadd.f32 %v3784_v52, %v3016_v37 }
 0x4fc   : > { %4244 = vst.msk [vmem:[%s6424_s14 + $0xa0] sm:$0xff] %vm272_vm2, %v4212_v61  ;;  %v4213_v57 = vadd.f32 %v4181_v45, %v3809_v31  ;;  %v4702_v26 = vpop.f32.mrb[72].mxu0  ;;  %v3819_v7 = vadd.f32 %v3787_v1, %v3027_v9  ;;  %v3817_v61 = vadd.f32 %v3785_v16, %v3019_v63 }
 0x4fd   : > { %4247 = vst.msk [vmem:[%s6424_s14 + $0xb8] sm:$0xff] %vm272_vm2, %v4215_v56  ;;  %v4138_v5 = vadd.f32 %v4702_v26, %v6400_v15  ;;  %v4129_v11 = vpop.f32.mrb[73].mxu0 }
 0x4fe   : > { %4245 = vst.msk [vmem:[%s6424_s14 + $0xa8] sm:$0xff] %vm272_vm2, %v4213_v57  ;;  %v4130_v32 = vadd.f32 %v6400_v15, %v4129_v11  ;;  %v4703_v49 = vpop.f32.mrb[74].mxu0 }
 0x4ff   : > { %v4186_v55 = vmax.f32 %v4138_v5, 0.0  ;;  %v4141_v54 = vadd.f32 %v4703_v49, %v6400_v15  ;;  %v4132_v41 = vpop.f32.mrb[75].mxu0 }
 0x500   : > { %v4184_v44 = vmax.f32 %v4130_v32, 0.0  ;;  %v4133_v42 = vadd.f32 %v6400_v15, %v4132_v41 }
 0x501   : > { %v4218_v34 = vadd.f32 %v4186_v55, %v3814_v36  ;;  %v4187_v62 = vmax.f32 %v4141_v54, 0.0 }
 0x502   : > { %v4216_v22 = vadd.f32 %v4184_v44, %v3812_v21  ;;  %v4185_v8 = vmax.f32 %v4133_v42, 0.0 }
 0x503   : > { %4250 = vst.msk [vmem:[%s6424_s14 + $0xd0] sm:$0xff] %vm272_vm2, %v4218_v34  ;;  %v4219_v23 = vadd.f32 %v4187_v62, %v3815_v14 }
 0x504   : > { %4248 = vst.msk [vmem:[%s6424_s14 + $0xc0] sm:$0xff] %vm272_vm2, %v4216_v22  ;;  %v4217_v25 = vadd.f32 %v4185_v8, %v3813_v51  ;;  %v4706_v20 = vpop.f32.mrb[76].mxu0 }
 0x505   : > { %4251 = vst.msk [vmem:[%s6424_s14 + $0xd8] sm:$0xff] %vm272_vm2, %v4219_v23  ;;  %v4154_v18 = vadd.f32 %v4706_v20, %v6400_v15  ;;  %v4145_v13 = vpop.f32.mrb[77].mxu0 }
 0x506   : > { %4249 = vst.msk [vmem:[%s6424_s14 + $0xc8] sm:$0xff] %vm272_vm2, %v4217_v25  ;;  %v4146_v35 = vadd.f32 %v6400_v15, %v4145_v13  ;;  %v4707_v59 = vpop.f32.mrb[78].mxu0 }
 0x507   : > { %v4190_v30 = vmax.f32 %v4154_v18, 0.0  ;;  %v4157_v24 = vadd.f32 %v4707_v59, %v6400_v15  ;;  %v4148_v17 = vpop.f32.mrb[79].mxu0 }
 0x508   : > { %v4188_v31 = vmax.f32 %v4146_v35, 0.0  ;;  %v4149_v4 = vadd.f32 %v6400_v15, %v4148_v17 }
 0x509   : > { %v4222_v27 = vadd.f32 %v4190_v30, %v3818_v29  ;;  %v4191_v40 = vmax.f32 %v4157_v24, 0.0 }
 0x50a   : > { %v4220_v45 = vadd.f32 %v4188_v31, %v3816_v38  ;;  %v4189_v12 = vmax.f32 %v4149_v4, 0.0 }
 0x50b   : > { %4254 = vst.msk [vmem:[%s6424_s14 + $0xf0] sm:$0xff] %vm272_vm2, %v4222_v27  ;;  %v4223_v28 = vadd.f32 %v4191_v40, %v3819_v7 }
 0x50c   : > { %4252 = vst.msk [vmem:[%s6424_s14 + $0xe0] sm:$0xff] %vm272_vm2, %v4220_v45  ;;  %v4221_v56 = vadd.f32 %v4189_v12, %v3817_v61 }
 0x50d   : > { %4255 = vst.msk [vmem:[%s6424_s14 + $0xf8] sm:$0xff] %vm272_vm2, %v4223_v28 }
 0x50e   : > { %4253 = vst.msk [vmem:[%s6424_s14 + $0xe8] sm:$0xff] %vm272_vm2, %v4221_v56 }
 0x50f PF: > { %s13_s12 = sadd.s32 1, %s4810_s12  }
 0x510   : > { %p10_p4 = scmp.ge.s32.totalorder %s13_s12, 4  }
 0x512   :  { %12 = sbr.rel (!%p10_p4) target bundleno = 1 (0x1), region = 70 }

</bundles_post_ra>
